<compile_context>
chip_gen: v5e
topology: v5e:2x2
jax: 0.10.0
libtpu: 0.0.40
codegen_flags: <defaults>
</compile_context>

<pallas_src>
import functools

import jax
import jax.numpy as jnp
import numpy as np
from jax.experimental import pallas as pl
from jax.experimental.pallas import tpu as pltpu

_LANE = 128
_VMEM_LIMIT = 32 * 1024 * 1024     # fits v7x's scoped budget; v5e/v6e have headroom
_EPS = 1e-5
_SLOPE = 0.1                       # LeakyReLU negative slope


def _pad128(c):
    return ((c + _LANE - 1) // _LANE) * _LANE


def _pick_tile(dim, candidates=(512, 256, 128, 64, 32, 16, 8)):
    for c in candidates:
        if dim % c == 0:
            return c
    return dim


def _leaky(y):
    return jnp.where(y >= 0, y, _SLOPE * y)


def _compiler_params(sem):
    return pltpu.CompilerParams(dimension_semantics=sem,
                                vmem_limit_bytes=_VMEM_LIMIT)


# ---------------------------------------------------------------------------
# Host-side parameter folding: BN scale into weights, channel zero-padding
# ---------------------------------------------------------------------------
def _fold_bn(p):
    inv_std = 1.0 / jnp.sqrt(p["var"] + _EPS)
    scale = p["gamma"] * inv_std                       # (Cout,)
    bias = p["beta"] - p["mean"] * scale               # (Cout,)
    w = p["w"] * scale[:, None, None, None]            # BN scale folded into conv
    return w, bias


def _w1x1(p, cin_pad, cout_pad):
    w, b = _fold_bn(p)
    cout, cin = w.shape[0], w.shape[1]
    w2d = jnp.zeros((cin_pad, cout_pad), jnp.float32)
    w2d = w2d.at[:cin, :cout].set(w[:, :, 0, 0].T)
    bias = jnp.zeros((1, cout_pad), jnp.float32).at[0, :cout].set(b)
    return w2d.astype(jnp.bfloat16), bias


def _w3x3(p, cin_pad, cout_pad):
    w, b = _fold_bn(p)
    cout, cin = w.shape[0], w.shape[1]
    w_t = jnp.transpose(w, (2, 3, 1, 0)).reshape(9, cin, cout)   # tap = 3*dy + dx
    taps = jnp.zeros((9, cin_pad, cout_pad), jnp.float32)
    taps = taps.at[:, :cin, :cout].set(w_t)
    bias = jnp.zeros((1, cout_pad), jnp.float32).at[0, :cout].set(b)
    return taps.astype(jnp.bfloat16), bias


# ---------------------------------------------------------------------------
# Kernel 1: front conv  (3x3, stride 2, pad 1) + BN + LeakyReLU, per image
# 9 shifted matmuls over 4 polyphase planes -> no im2col in HBM.
# ---------------------------------------------------------------------------
def _front_conv_kernel(ph_ref, w_ref, b_ref, o_ref, *, hs, ws):
    cin = ph_ref.shape[-1]
    cout = o_ref.shape[-1]
    acc = jnp.zeros((hs * ws, cout), jnp.float32)
    for dy in range(3):
        for dx in range(3):
            phase = (dy % 2) * 2 + (dx % 2)
            sub = ph_ref[phase, dy // 2:dy // 2 + hs, dx // 2:dx // 2 + ws, :]
            acc = acc + jnp.dot(sub.reshape(hs * ws, cin), w_ref[3 * dy + dx],
                                preferred_element_type=jnp.float32)
    y = _leaky(acc + b_ref[...])
    o_ref[0] = y.reshape(hs, ws, cout).astype(o_ref.dtype)


def front_conv(x_nhwc, w_taps, bias, cout_pad):
    n, h, w, cin = x_nhwc.shape
    hs = (h - 1) // 2 + 1
    ws = (w - 1) // 2 + 1
    hp, wp = hs + 1, ws + 1
    # 4 polyphase planes of the zero-padded input: 1x reorganization, not 9x im2col.
    xp = jnp.pad(x_nhwc.astype(jnp.bfloat16), ((0, 0), (1, 2), (1, 2), (0, 0)))
    phases = [xp[:, p:p + 2 * hp:2, q:q + 2 * wp:2, :]
              for p in range(2) for q in range(2)]
    ph = jnp.stack(phases, axis=1).reshape(n * 4, hp, wp, cin)

    flops = 2 * n * hs * ws * 9 * cin * cout_pad
    bytes_accessed = (4 * n * hp * wp * cin + 9 * cin * cout_pad
                      + n * hs * ws * cout_pad) * 2 + cout_pad * 4
    return pl.pallas_call(
        functools.partial(_front_conv_kernel, hs=hs, ws=ws),
        out_shape=jax.ShapeDtypeStruct((n, hs, ws, cout_pad), jnp.bfloat16),
        grid_spec=pltpu.PrefetchScalarGridSpec(
            num_scalar_prefetch=0,
            grid=(n,),
            in_specs=[
                pl.BlockSpec((4, hp, wp, cin), lambda i: (i, 0, 0, 0)),
                pl.BlockSpec((9, cin, cout_pad), lambda i: (0, 0, 0)),
                pl.BlockSpec((1, cout_pad), lambda i: (0, 0)),
            ],
            out_specs=pl.BlockSpec((1, hs, ws, cout_pad), lambda i: (i, 0, 0, 0)),
        ),
        compiler_params=_compiler_params(("parallel",)),
        cost_estimate=pl.CostEstimate(flops=flops, transcendentals=0,
                                      bytes_accessed=bytes_accessed),
    )(ph, w_taps, bias)


# ---------------------------------------------------------------------------
# Kernel 2: tiled matmul + bias + LeakyReLU (fused left0 + right 1x1 convs)
# grid (M/TM, N/TN, K/TK), f32 VMEM accumulator, pl.when init/finalize on K.
# ---------------------------------------------------------------------------
def _matmul_bias_leaky_kernel(x_ref, w_ref, b_ref, o_ref, acc_ref):
    @pl.when(pl.program_id(2) == 0)
    def _():
        acc_ref[...] = jnp.zeros_like(acc_ref)

    acc_ref[...] += jnp.dot(x_ref[...], w_ref[...],
                            preferred_element_type=jnp.float32)

    @pl.when(pl.program_id(2) == pl.num_programs(2) - 1)
    def _():
        o_ref[...] = _leaky(acc_ref[...] + b_ref[...]).astype(o_ref.dtype)


def matmul_bias_leaky(x2d, w2d, bias, out_dtype=jnp.bfloat16):
    m, k = x2d.shape
    _, nn = w2d.shape
    tm = _pick_tile(m)
    tn = _pick_tile(nn, (256, 128))
    tk = _pick_tile(k, (512, 256, 128))
    flops = 2 * m * k * nn
    bytes_accessed = (m * k + k * nn + m * nn) * 2 + nn * 4
    return pl.pallas_call(
        _matmul_bias_leaky_kernel,
        out_shape=jax.ShapeDtypeStruct((m, nn), out_dtype),
        grid_spec=pltpu.PrefetchScalarGridSpec(
            num_scalar_prefetch=0,
            grid=(m // tm, nn // tn, k // tk),
            in_specs=[
                pl.BlockSpec((tm, tk), lambda i, j, kk: (i, kk)),
                pl.BlockSpec((tk, tn), lambda i, j, kk: (kk, j)),
                pl.BlockSpec((1, tn), lambda i, j, kk: (0, j)),
            ],
            out_specs=pl.BlockSpec((tm, tn), lambda i, j, kk: (i, j)),
            scratch_shapes=[pltpu.VMEM((tm, tn), jnp.float32)],
        ),
        compiler_params=_compiler_params(("parallel", "parallel", "arbitrary")),
        cost_estimate=pl.CostEstimate(flops=flops, transcendentals=0,
                                      bytes_accessed=bytes_accessed),
    )(x2d, w2d, bias)


# ---------------------------------------------------------------------------
# Kernel 3: fused ResBlock (c1 1x1 -> c2 3x3 pad 1 -> residual add), per image.
# c2's zero-padded input plane is built in VMEM scratch; 3x3 = 9 shifted matmuls.
# ---------------------------------------------------------------------------
def _resblock_kernel(x_ref, w1_ref, b1_ref, w2_ref, b2_ref, o_ref, pad_ref,
                     *, hs, ws):
    cb = o_ref.shape[-1]
    x2d = x_ref[0].reshape(hs * ws, cb)                        # ResBlock input (bf16)
    # c1: 1x1 conv + bias + LeakyReLU
    t = _leaky(jnp.dot(x2d, w1_ref[...], preferred_element_type=jnp.float32)
               + b1_ref[...])
    # zero-padded plane in VMEM -> in-kernel 3x3 conv (no HBM im2col)
    pad_ref[...] = jnp.zeros_like(pad_ref)
    pad_ref[1:hs + 1, 1:ws + 1, :] = t.reshape(hs, ws, cb).astype(pad_ref.dtype)
    acc = jnp.zeros((hs * ws, cb), jnp.float32)
    for dy in range(3):
        for dx in range(3):
            sub = pad_ref[dy:dy + hs, dx:dx + ws, :].reshape(hs * ws, cb)
            acc = acc + jnp.dot(sub, w2_ref[3 * dy + dx],
                                preferred_element_type=jnp.float32)
    y = _leaky(acc + b2_ref[...]) + x2d.astype(jnp.float32)    # residual add
    o_ref[0] = y.reshape(hs, ws, cb).astype(o_ref.dtype)


def resblock(x4d, w1, b1, w2, b2, cb):
    n, hs, ws, _ = x4d.shape
    flops = 2 * n * hs * ws * cb * cb * 10
    bytes_accessed = (n * hs * ws * cb * 2 + 10 * cb * cb) * 2 + 2 * cb * 4
    return pl.pallas_call(
        functools.partial(_resblock_kernel, hs=hs, ws=ws),
        out_shape=jax.ShapeDtypeStruct((n, hs, ws, cb), jnp.bfloat16),
        grid_spec=pltpu.PrefetchScalarGridSpec(
            num_scalar_prefetch=0,
            grid=(n,),
            in_specs=[
                # channel block 0 of the (left0 || right) tensor == left branch
                pl.BlockSpec((1, hs, ws, cb), lambda i: (i, 0, 0, 0)),
                pl.BlockSpec((cb, cb), lambda i: (0, 0)),
                pl.BlockSpec((1, cb), lambda i: (0, 0)),
                pl.BlockSpec((9, cb, cb), lambda i: (0, 0, 0)),
                pl.BlockSpec((1, cb), lambda i: (0, 0)),
            ],
            out_specs=pl.BlockSpec((1, hs, ws, cb), lambda i: (i, 0, 0, 0)),
            scratch_shapes=[pltpu.VMEM((hs + 2, ws + 2, cb), jnp.bfloat16)],
        ),
        compiler_params=_compiler_params(("parallel",)),
        cost_estimate=pl.CostEstimate(flops=flops, transcendentals=0,
                                      bytes_accessed=bytes_accessed),
    )(x4d, w1, b1, w2, b2)


# ---------------------------------------------------------------------------
# Kernel 4: fused left2 (1x1) + out_conv (1x1 over torch.cat([left, right]))
# The concat is realized as two accumulated matmuls; no concat copy in HBM.
# ---------------------------------------------------------------------------
def _left2_out_kernel(l_ref, r_ref, wl2_ref, bl2_ref, wol_ref, wor_ref, bo_ref,
                      o_ref):
    t = _leaky(jnp.dot(l_ref[...], wl2_ref[...], preferred_element_type=jnp.float32)
               + bl2_ref[...])
    acc = jnp.dot(t.astype(jnp.bfloat16), wol_ref[...],
                  preferred_element_type=jnp.float32)
    acc = acc + jnp.dot(r_ref[...], wor_ref[...],
                        preferred_element_type=jnp.float32)
    o_ref[...] = _leaky(acc + bo_ref[...]).astype(o_ref.dtype)


def left2_out_conv(left2d, lr2d, wl2, bl2, wol, wor, bo, cb, cout_pad):
    m = left2d.shape[0]
    tm = _pick_tile(m)
    flops = 2 * m * cb * (cb + 2 * cout_pad)
    bytes_accessed = (2 * m * cb + cb * cb + 2 * cb * cout_pad) * 2 \
        + m * cout_pad * 4 + (cb + cout_pad) * 4
    return pl.pallas_call(
        _left2_out_kernel,
        out_shape=jax.ShapeDtypeStruct((m, cout_pad), jnp.float32),
        grid_spec=pltpu.PrefetchScalarGridSpec(
            num_scalar_prefetch=0,
            grid=(m // tm,),
            in_specs=[
                pl.BlockSpec((tm, cb), lambda i: (i, 0)),   # left branch
                pl.BlockSpec((tm, cb), lambda i: (i, 1)),   # right = channel block 1
                pl.BlockSpec((cb, cb), lambda i: (0, 0)),
                pl.BlockSpec((1, cb), lambda i: (0, 0)),
                pl.BlockSpec((cb, cout_pad), lambda i: (0, 0)),
                pl.BlockSpec((cb, cout_pad), lambda i: (0, 0)),
                pl.BlockSpec((1, cout_pad), lambda i: (0, 0)),
            ],
            out_specs=pl.BlockSpec((tm, cout_pad), lambda i: (i, 0)),
        ),
        compiler_params=_compiler_params(("parallel",)),
        cost_estimate=pl.CostEstimate(flops=flops, transcendentals=0,
                                      bytes_accessed=bytes_accessed),
    )(left2d, lr2d, wl2, bl2, wol, wor, bo)


# ---------------------------------------------------------------------------
# CSPDarkNetBlock forward (reduction=True wiring, NCHW in / NCHW out)
# ---------------------------------------------------------------------------
def csp_darknet_block(x_nchw, params):
    planes = params["out"]["w"].shape[0]
    half = params["right"]["w"].shape[0]
    cin = params["front"]["w"].shape[1]
    n = x_nchw.shape[0]
    cp = _pad128(planes)        # front-conv output channel container
    cb = _pad128(half)          # per-branch channel container
    cpo = _pad128(planes)       # block output channel container

    x = jnp.transpose(x_nchw, (0, 2, 3, 1))                  # NCHW -> NHWC

    # front_conv: 3x3 / stride 2 / pad 1
    w_f, b_f = _w3x3(params["front"], cin, cp)
    y1 = front_conv(x, w_f, b_f, cp)                         # (n, hs, ws, cp) bf16
    _, hs, ws, _ = y1.shape
    m = n * hs * ws

    # left_conv[0] and right_conv both read y1 -> one fused 1x1 matmul
    w_l0, b_l0 = _w1x1(params["left0"], cp, cb)
    w_r, b_r = _w1x1(params["right"], cp, cb)
    lr2d = matmul_bias_leaky(y1.reshape(m, cp),
                             jnp.concatenate([w_l0, w_r], axis=1),
                             jnp.concatenate([b_l0, b_r], axis=1))
    lr4d = lr2d.reshape(n, hs, ws, 2 * cb)

    # ResBlocks: c1 (1x1) + c2 (3x3) + residual add, fused per block
    left = lr4d                      # channel block 0 = left branch
    for blk in params["blocks"]:
        w1, b1 = _w1x1(blk["c1"], cb, cb)
        w2, b2 = _w3x3(blk["c2"], cb, cb)
        left = resblock(left, w1, b1, w2, b2, cb)

    # left_conv[2] (1x1) + out_conv (1x1 over cat([left, right], dim=channel))
    w_l2, b_l2 = _w1x1(params["left2"], cb, cb)
    w_o, b_o = _fold_bn(params["out"])
    w_o_mat = w_o[:, :, 0, 0].T                              # (2*half, planes)
    wol = jnp.zeros((cb, cpo), jnp.float32).at[:half, :planes].set(w_o_mat[:half])
    wor = jnp.zeros((cb, cpo), jnp.float32).at[:half, :planes].set(w_o_mat[half:])
    bo = jnp.zeros((1, cpo), jnp.float32).at[0, :planes].set(b_o)
    out2d = left2_out_conv(left.reshape(m, left.shape[-1]), lr2d,
                           w_l2, b_l2, wol.astype(jnp.bfloat16),
                           wor.astype(jnp.bfloat16), bo, cb, cpo)

    out = out2d.reshape(n, hs, ws, cpo)[:, :, :, :planes]
    return jnp.transpose(out, (0, 3, 1, 2))                  # NHWC -> NCHW


# ---------------------------------------------------------------------------
# Pure-JAX f32 reference (eval-mode BN) for a correctness check
# ---------------------------------------------------------------------------
def _conv_bn_act_ref(x, p, stride, padding):
    y = jax.lax.conv_general_dilated(
        x, p["w"], window_strides=(stride, stride),
        padding=((padding, padding), (padding, padding)),
        dimension_numbers=("NCHW", "OIHW", "NCHW"))
    inv_std = 1.0 / jnp.sqrt(p["var"] + _EPS)
    scale = (p["gamma"] * inv_std)[None, :, None, None]
    bias = (p["beta"] - p["mean"] * p["gamma"] * inv_std)[None, :, None, None]
    return _leaky(y * scale + bias)


def csp_darknet_block_ref(x, params):
    x = _conv_bn_act_ref(x, params["front"], 2, 1)
    left = _conv_bn_act_ref(x, params["left0"], 1, 0)
    for blk in params["blocks"]:
        r = _conv_bn_act_ref(left, blk["c1"], 1, 0)
        r = _conv_bn_act_ref(r, blk["c2"], 1, 1)
        left = left + r
    left = _conv_bn_act_ref(left, params["left2"], 1, 0)
    right = _conv_bn_act_ref(x, params["right"], 1, 0)
    out = jnp.concatenate([left, right], axis=1)
    return _conv_bn_act_ref(out, params["out"], 1, 0)


# ---------------------------------------------------------------------------
# Deterministic parameter init (shapes follow the module __init__)
# ---------------------------------------------------------------------------
def init_conv_bn(key, in_c, out_c, k):
    w = jax.random.normal(key, (out_c, in_c, k, k), jnp.float32) * 0.1
    gamma = 1.0 + 0.01 * jnp.arange(out_c, dtype=jnp.float32)
    beta = 0.001 * jnp.arange(out_c, dtype=jnp.float32)
    mean = jnp.zeros((out_c,), jnp.float32)
    var = jnp.ones((out_c,), jnp.float32)
    return dict(w=w, gamma=gamma, beta=beta, mean=mean, var=var)


if __name__ == "__main__":
    key = jax.random.PRNGKey(0)
    inplanes, planes, num_blocks = 4, 8, 1      # reduction=True
    half = planes // 2

    keys = jax.random.split(key, 8)
    params = {
        "front": init_conv_bn(keys[0], inplanes, planes, 3),
        "left0": init_conv_bn(keys[1], planes, half, 1),
        "blocks": [
            {
                "c1": init_conv_bn(keys[2], half, half, 1),  # squeeze=False
                "c2": init_conv_bn(keys[3], half, half, 3),
            }
        ],
        "left2": init_conv_bn(keys[4], half, half, 1),
        "right": init_conv_bn(keys[5], planes, half, 1),
        "out": init_conv_bn(keys[6], planes, planes, 1),
    }

    x = jax.random.normal(keys[7], (2, inplanes, 16, 16), jnp.float32)  # NCHW

    out = jax.jit(csp_darknet_block)(x, params)
    jax.block_until_ready(out)
    assert out.shape == (2, planes, 8, 8), out.shape

    ref = csp_darknet_block_ref(x, params)
    np.testing.assert_allclose(np.asarray(out), np.asarray(ref),
                               atol=5e-2, rtol=5e-2)
    print("KERNEL_OK")
</pallas_src>

<mosaic_0001>
module attributes {stable_mosaic.version = 11 : i64} {
  func.func @_front_conv_kernel(%arg0: i32, %arg1: memref<4x9x9x4xbf16, #tpu.memory_space<vmem>>, %arg2: memref<9x4x128xbf16, #tpu.memory_space<vmem>>, %arg3: memref<1x128xf32, #tpu.memory_space<vmem>>, %arg4: memref<1x8x8x128xbf16, #tpu.memory_space<vmem>>) attributes {dimension_semantics = [#tpu.dimension_semantics<parallel>], iteration_bounds = array<i64: 2>, scalar_prefetch = 0 : i64, scratch_operands = 0 : i64, tpu.core_type = #tpu.core_type<tc>, window_params = [{transform_indices = @transform_0, window_bounds = array<i64: 4, 9, 9, 4>}, {pipeline_mode = #tpu.pipeline_mode<synchronous>, transform_indices = @transform_1, window_bounds = array<i64: 9, 4, 128>}, {pipeline_mode = #tpu.pipeline_mode<synchronous>, transform_indices = @transform_2, window_bounds = array<i64: 1, 128>}, {transform_indices = @transform_3, window_bounds = array<i64: 1, 8, 8, 128>}]} {
    %cst = arith.constant 0.000000e+00 : f32
    %0 = vector.broadcast %cst : f32 to vector<64x128xf32>
    %c0 = arith.constant 0 : index
    %c0_0 = arith.constant 0 : index
    %c0_1 = arith.constant 0 : index
    %c0_2 = arith.constant 0 : index
    %1 = vector.load %arg1[%c0, %c0_0, %c0_1, %c0_2] : memref<4x9x9x4xbf16, #tpu.memory_space<vmem>>, vector<1x8x8x4xbf16>
    %2 = vector.shape_cast %1 : vector<1x8x8x4xbf16> to vector<8x8x4xbf16>
    %3 = vector.shape_cast %2 : vector<8x8x4xbf16> to vector<64x4xbf16>
    %c0_3 = arith.constant 0 : index
    %c0_4 = arith.constant 0 : index
    %c0_5 = arith.constant 0 : index
    %4 = vector.load %arg2[%c0_3, %c0_4, %c0_5] : memref<9x4x128xbf16, #tpu.memory_space<vmem>>, vector<1x4x128xbf16>
    %5 = vector.shape_cast %4 : vector<1x4x128xbf16> to vector<4x128xbf16>
    %cst_6 = arith.constant dense<0.000000e+00> : vector<64x128xf32>
    %6 = tpu.matmul %3, %5, %cst_6 {dimension_numbers = #tpu.dot_dimension_numbers<[1], [0], [0], [1], [0, 0, 1, 1], [], []>} : vector<64x4xbf16>, vector<4x128xbf16>, vector<64x128xf32> -> vector<64x128xf32>
    %7 = arith.addf %0, %6 : vector<64x128xf32>
    %c1 = arith.constant 1 : index
    %c0_7 = arith.constant 0 : index
    %c0_8 = arith.constant 0 : index
    %c0_9 = arith.constant 0 : index
    %8 = vector.load %arg1[%c1, %c0_7, %c0_8, %c0_9] : memref<4x9x9x4xbf16, #tpu.memory_space<vmem>>, vector<1x8x8x4xbf16>
    %9 = vector.shape_cast %8 : vector<1x8x8x4xbf16> to vector<8x8x4xbf16>
    %10 = vector.shape_cast %9 : vector<8x8x4xbf16> to vector<64x4xbf16>
    %c1_10 = arith.constant 1 : index
    %c0_11 = arith.constant 0 : index
    %c0_12 = arith.constant 0 : index
    %11 = vector.load %arg2[%c1_10, %c0_11, %c0_12] : memref<9x4x128xbf16, #tpu.memory_space<vmem>>, vector<1x4x128xbf16>
    %12 = vector.shape_cast %11 : vector<1x4x128xbf16> to vector<4x128xbf16>
    %cst_13 = arith.constant dense<0.000000e+00> : vector<64x128xf32>
    %13 = tpu.matmul %10, %12, %cst_13 {dimension_numbers = #tpu.dot_dimension_numbers<[1], [0], [0], [1], [0, 0, 1, 1], [], []>} : vector<64x4xbf16>, vector<4x128xbf16>, vector<64x128xf32> -> vector<64x128xf32>
    %14 = arith.addf %7, %13 : vector<64x128xf32>
    %c0_14 = arith.constant 0 : index
    %c0_15 = arith.constant 0 : index
    %c1_16 = arith.constant 1 : index
    %c0_17 = arith.constant 0 : index
    %15 = vector.load %arg1[%c0_14, %c0_15, %c1_16, %c0_17] : memref<4x9x9x4xbf16, #tpu.memory_space<vmem>>, vector<1x8x8x4xbf16>
    %16 = vector.shape_cast %15 : vector<1x8x8x4xbf16> to vector<8x8x4xbf16>
    %17 = vector.shape_cast %16 : vector<8x8x4xbf16> to vector<64x4xbf16>
    %c2 = arith.constant 2 : index
    %c0_18 = arith.constant 0 : index
    %c0_19 = arith.constant 0 : index
    %18 = vector.load %arg2[%c2, %c0_18, %c0_19] : memref<9x4x128xbf16, #tpu.memory_space<vmem>>, vector<1x4x128xbf16>
    %19 = vector.shape_cast %18 : vector<1x4x128xbf16> to vector<4x128xbf16>
    %cst_20 = arith.constant dense<0.000000e+00> : vector<64x128xf32>
    %20 = tpu.matmul %17, %19, %cst_20 {dimension_numbers = #tpu.dot_dimension_numbers<[1], [0], [0], [1], [0, 0, 1, 1], [], []>} : vector<64x4xbf16>, vector<4x128xbf16>, vector<64x128xf32> -> vector<64x128xf32>
    %21 = arith.addf %14, %20 : vector<64x128xf32>
    %c2_21 = arith.constant 2 : index
    %c0_22 = arith.constant 0 : index
    %c0_23 = arith.constant 0 : index
    %c0_24 = arith.constant 0 : index
    %22 = vector.load %arg1[%c2_21, %c0_22, %c0_23, %c0_24] : memref<4x9x9x4xbf16, #tpu.memory_space<vmem>>, vector<1x8x8x4xbf16>
    %23 = vector.shape_cast %22 : vector<1x8x8x4xbf16> to vector<8x8x4xbf16>
    %24 = vector.shape_cast %23 : vector<8x8x4xbf16> to vector<64x4xbf16>
    %c3 = arith.constant 3 : index
    %c0_25 = arith.constant 0 : index
    %c0_26 = arith.constant 0 : index
    %25 = vector.load %arg2[%c3, %c0_25, %c0_26] : memref<9x4x128xbf16, #tpu.memory_space<vmem>>, vector<1x4x128xbf16>
    %26 = vector.shape_cast %25 : vector<1x4x128xbf16> to vector<4x128xbf16>
    %cst_27 = arith.constant dense<0.000000e+00> : vector<64x128xf32>
    %27 = tpu.matmul %24, %26, %cst_27 {dimension_numbers = #tpu.dot_dimension_numbers<[1], [0], [0], [1], [0, 0, 1, 1], [], []>} : vector<64x4xbf16>, vector<4x128xbf16>, vector<64x128xf32> -> vector<64x128xf32>
    %28 = arith.addf %21, %27 : vector<64x128xf32>
    %c3_28 = arith.constant 3 : index
    %c0_29 = arith.constant 0 : index
    %c0_30 = arith.constant 0 : index
    %c0_31 = arith.constant 0 : index
    %29 = vector.load %arg1[%c3_28, %c0_29, %c0_30, %c0_31] : memref<4x9x9x4xbf16, #tpu.memory_space<vmem>>, vector<1x8x8x4xbf16>
    %30 = vector.shape_cast %29 : vector<1x8x8x4xbf16> to vector<8x8x4xbf16>
    %31 = vector.shape_cast %30 : vector<8x8x4xbf16> to vector<64x4xbf16>
    %c4 = arith.constant 4 : index
    %c0_32 = arith.constant 0 : index
    %c0_33 = arith.constant 0 : index
    %32 = vector.load %arg2[%c4, %c0_32, %c0_33] : memref<9x4x128xbf16, #tpu.memory_space<vmem>>, vector<1x4x128xbf16>
    %33 = vector.shape_cast %32 : vector<1x4x128xbf16> to vector<4x128xbf16>
    %cst_34 = arith.constant dense<0.000000e+00> : vector<64x128xf32>
    %34 = tpu.matmul %31, %33, %cst_34 {dimension_numbers = #tpu.dot_dimension_numbers<[1], [0], [0], [1], [0, 0, 1, 1], [], []>} : vector<64x4xbf16>, vector<4x128xbf16>, vector<64x128xf32> -> vector<64x128xf32>
    %35 = arith.addf %28, %34 : vector<64x128xf32>
    %c2_35 = arith.constant 2 : index
    %c0_36 = arith.constant 0 : index
    %c1_37 = arith.constant 1 : index
    %c0_38 = arith.constant 0 : index
    %36 = vector.load %arg1[%c2_35, %c0_36, %c1_37, %c0_38] : memref<4x9x9x4xbf16, #tpu.memory_space<vmem>>, vector<1x8x8x4xbf16>
    %37 = vector.shape_cast %36 : vector<1x8x8x4xbf16> to vector<8x8x4xbf16>
    %38 = vector.shape_cast %37 : vector<8x8x4xbf16> to vector<64x4xbf16>
    %c5 = arith.constant 5 : index
    %c0_39 = arith.constant 0 : index
    %c0_40 = arith.constant 0 : index
    %39 = vector.load %arg2[%c5, %c0_39, %c0_40] : memref<9x4x128xbf16, #tpu.memory_space<vmem>>, vector<1x4x128xbf16>
    %40 = vector.shape_cast %39 : vector<1x4x128xbf16> to vector<4x128xbf16>
    %cst_41 = arith.constant dense<0.000000e+00> : vector<64x128xf32>
    %41 = tpu.matmul %38, %40, %cst_41 {dimension_numbers = #tpu.dot_dimension_numbers<[1], [0], [0], [1], [0, 0, 1, 1], [], []>} : vector<64x4xbf16>, vector<4x128xbf16>, vector<64x128xf32> -> vector<64x128xf32>
    %42 = arith.addf %35, %41 : vector<64x128xf32>
    %c0_42 = arith.constant 0 : index
    %c1_43 = arith.constant 1 : index
    %c0_44 = arith.constant 0 : index
    %c0_45 = arith.constant 0 : index
    %43 = vector.load %arg1[%c0_42, %c1_43, %c0_44, %c0_45] : memref<4x9x9x4xbf16, #tpu.memory_space<vmem>>, vector<1x8x8x4xbf16>
    %44 = vector.shape_cast %43 : vector<1x8x8x4xbf16> to vector<8x8x4xbf16>
    %45 = vector.shape_cast %44 : vector<8x8x4xbf16> to vector<64x4xbf16>
    %c6 = arith.constant 6 : index
    %c0_46 = arith.constant 0 : index
    %c0_47 = arith.constant 0 : index
    %46 = vector.load %arg2[%c6, %c0_46, %c0_47] : memref<9x4x128xbf16, #tpu.memory_space<vmem>>, vector<1x4x128xbf16>
    %47 = vector.shape_cast %46 : vector<1x4x128xbf16> to vector<4x128xbf16>
    %cst_48 = arith.constant dense<0.000000e+00> : vector<64x128xf32>
    %48 = tpu.matmul %45, %47, %cst_48 {dimension_numbers = #tpu.dot_dimension_numbers<[1], [0], [0], [1], [0, 0, 1, 1], [], []>} : vector<64x4xbf16>, vector<4x128xbf16>, vector<64x128xf32> -> vector<64x128xf32>
    %49 = arith.addf %42, %48 : vector<64x128xf32>
    %c1_49 = arith.constant 1 : index
    %c1_50 = arith.constant 1 : index
    %c0_51 = arith.constant 0 : index
    %c0_52 = arith.constant 0 : index
    %50 = vector.load %arg1[%c1_49, %c1_50, %c0_51, %c0_52] : memref<4x9x9x4xbf16, #tpu.memory_space<vmem>>, vector<1x8x8x4xbf16>
    %51 = vector.shape_cast %50 : vector<1x8x8x4xbf16> to vector<8x8x4xbf16>
    %52 = vector.shape_cast %51 : vector<8x8x4xbf16> to vector<64x4xbf16>
    %c7 = arith.constant 7 : index
    %c0_53 = arith.constant 0 : index
    %c0_54 = arith.constant 0 : index
    %53 = vector.load %arg2[%c7, %c0_53, %c0_54] : memref<9x4x128xbf16, #tpu.memory_space<vmem>>, vector<1x4x128xbf16>
    %54 = vector.shape_cast %53 : vector<1x4x128xbf16> to vector<4x128xbf16>
    %cst_55 = arith.constant dense<0.000000e+00> : vector<64x128xf32>
    %55 = tpu.matmul %52, %54, %cst_55 {dimension_numbers = #tpu.dot_dimension_numbers<[1], [0], [0], [1], [0, 0, 1, 1], [], []>} : vector<64x4xbf16>, vector<4x128xbf16>, vector<64x128xf32> -> vector<64x128xf32>
    %56 = arith.addf %49, %55 : vector<64x128xf32>
    %c0_56 = arith.constant 0 : index
    %c1_57 = arith.constant 1 : index
    %c1_58 = arith.constant 1 : index
    %c0_59 = arith.constant 0 : index
    %57 = vector.load %arg1[%c0_56, %c1_57, %c1_58, %c0_59] : memref<4x9x9x4xbf16, #tpu.memory_space<vmem>>, vector<1x8x8x4xbf16>
    %58 = vector.shape_cast %57 : vector<1x8x8x4xbf16> to vector<8x8x4xbf16>
    %59 = vector.shape_cast %58 : vector<8x8x4xbf16> to vector<64x4xbf16>
    %c8 = arith.constant 8 : index
    %c0_60 = arith.constant 0 : index
    %c0_61 = arith.constant 0 : index
    %60 = vector.load %arg2[%c8, %c0_60, %c0_61] : memref<9x4x128xbf16, #tpu.memory_space<vmem>>, vector<1x4x128xbf16>
    %61 = vector.shape_cast %60 : vector<1x4x128xbf16> to vector<4x128xbf16>
    %cst_62 = arith.constant dense<0.000000e+00> : vector<64x128xf32>
    %62 = tpu.matmul %59, %61, %cst_62 {dimension_numbers = #tpu.dot_dimension_numbers<[1], [0], [0], [1], [0, 0, 1, 1], [], []>} : vector<64x4xbf16>, vector<4x128xbf16>, vector<64x128xf32> -> vector<64x128xf32>
    %63 = arith.addf %56, %62 : vector<64x128xf32>
    %c0_63 = arith.constant 0 : index
    %c0_64 = arith.constant 0 : index
    %64 = vector.load %arg3[%c0_63, %c0_64] : memref<1x128xf32, #tpu.memory_space<vmem>>, vector<1x128xf32>
    %65 = vector.broadcast %64 : vector<1x128xf32> to vector<64x128xf32>
    %66 = arith.addf %63, %65 : vector<64x128xf32>
    %cst_65 = arith.constant 0.000000e+00 : f32
    %67 = vector.broadcast %cst_65 : f32 to vector<64x128xf32>
    %68 = arith.cmpf oge, %66, %67 : vector<64x128xf32>
    %cst_66 = arith.constant 1.000000e-01 : f32
    %69 = vector.broadcast %cst_66 : f32 to vector<64x128xf32>
    %70 = arith.mulf %69, %66 : vector<64x128xf32>
    %71 = arith.select %68, %66, %70 : vector<64x128xi1>, vector<64x128xf32>
    %72 = vector.shape_cast %71 : vector<64x128xf32> to vector<8x8x128xf32>
    %73 = arith.truncf %72 : vector<8x8x128xf32> to vector<8x8x128xbf16>
    %c0_67 = arith.constant 0 : index
    %c0_68 = arith.constant 0 : index
    %c0_69 = arith.constant 0 : index
    %c0_70 = arith.constant 0 : index
    %74 = vector.load %arg4[%c0_67, %c0_68, %c0_69, %c0_70] : memref<1x8x8x128xbf16, #tpu.memory_space<vmem>>, vector<1x8x8x128xbf16>
    %75 = vector.shape_cast %74 : vector<1x8x8x128xbf16> to vector<8x8x128xbf16>
    %76 = vector.shape_cast %73 : vector<8x8x128xbf16> to vector<1x8x8x128xbf16>
    tpu.vector_store %arg4[%c0_67, %c0_68, %c0_69, %c0_70], %76 {strides = array<i32>} : memref<1x8x8x128xbf16, #tpu.memory_space<vmem>>, vector<1x8x8x128xbf16>,
    return
  }
  func.func @transform_0(%arg0: i32) -> (i32, i32, i32, i32) {
    %c0_i32 = arith.constant 0 : i32
    %c0_i32_0 = arith.constant 0 : i32
    %c0_i32_1 = arith.constant 0 : i32
    %c0_i32_2 = arith.constant 0 : i32
    return %arg0, %c0_i32, %c0_i32_0, %c0_i32_1 : i32, i32, i32, i32
  }
  func.func @transform_1(%arg0: i32) -> (i32, i32, i32) {
    %c0_i32 = arith.constant 0 : i32
    %c0_i32_0 = arith.constant 0 : i32
    %c0_i32_1 = arith.constant 0 : i32
    %c0_i32_2 = arith.constant 0 : i32
    return %c0_i32, %c0_i32_0, %c0_i32_1 : i32, i32, i32
  }
  func.func @transform_2(%arg0: i32) -> (i32, i32) {
    %c0_i32 = arith.constant 0 : i32
    %c0_i32_0 = arith.constant 0 : i32
    %c0_i32_1 = arith.constant 0 : i32
    return %c0_i32, %c0_i32_0 : i32, i32
  }
  func.func @transform_3(%arg0: i32) -> (i32, i32, i32, i32) {
    %c0_i32 = arith.constant 0 : i32
    %c0_i32_0 = arith.constant 0 : i32
    %c0_i32_1 = arith.constant 0 : i32
    %c0_i32_2 = arith.constant 0 : i32
    return %arg0, %c0_i32, %c0_i32_0, %c0_i32_1 : i32, i32, i32, i32
  }
}

module attributes {stable_mosaic.version = 11 : i64} {
  func.func @_matmul_bias_leaky_kernel(%arg0: i32, %arg1: i32, %arg2: i32, %arg3: memref<128x128xbf16, #tpu.memory_space<vmem>>, %arg4: memref<128x256xbf16, #tpu.memory_space<vmem>>, %arg5: memref<1x256xf32, #tpu.memory_space<vmem>>, %arg6: memref<128x256xbf16, #tpu.memory_space<vmem>>, %arg7: memref<128x256xf32, #tpu.memory_space<vmem>>) attributes {dimension_semantics = [#tpu.dimension_semantics<parallel>, #tpu.dimension_semantics<parallel>, #tpu.dimension_semantics<arbitrary>], iteration_bounds = array<i64: 1, 1, 1>, scalar_prefetch = 0 : i64, scratch_operands = 1 : i64, tpu.core_type = #tpu.core_type<tc>, window_params = [{transform_indices = @transform_0, window_bounds = array<i64: 128, 128>}, {transform_indices = @transform_1, window_bounds = array<i64: 128, 256>}, {transform_indices = @transform_2, window_bounds = array<i64: 1, 256>}, {transform_indices = @transform_3, window_bounds = array<i64: 128, 256>}]} {
    %c0_i32 = arith.constant 0 : i32
    %0 = arith.cmpi eq, %arg2, %c0_i32 : i32
    %1 = arith.extui %0 : i1 to i32
    %c0_i32_0 = arith.constant 0 : i32
    %2 = arith.cmpi ne, %1, %c0_i32_0 : i32
    scf.if %2 {
      %cst_10 = arith.constant 0.000000e+00 : f32
      %12 = vector.broadcast %cst_10 : f32 to vector<128x256xf32>
      %c0_11 = arith.constant 0 : index
      %c0_12 = arith.constant 0 : index
      %13 = vector.load %arg7[%c0_11, %c0_12] : memref<128x256xf32, #tpu.memory_space<vmem>>, vector<128x256xf32>
      tpu.vector_store %arg7[%c0_11, %c0_12], %12 {strides = array<i32>} : memref<128x256xf32, #tpu.memory_space<vmem>>, vector<128x256xf32>,
    } else {
    }
    %c0 = arith.constant 0 : index
    %c0_1 = arith.constant 0 : index
    %3 = vector.load %arg7[%c0, %c0_1] : memref<128x256xf32, #tpu.memory_space<vmem>>, vector<128x256xf32>
    %c0_2 = arith.constant 0 : index
    %c0_3 = arith.constant 0 : index
    %4 = vector.load %arg3[%c0_2, %c0_3] : memref<128x128xbf16, #tpu.memory_space<vmem>>, vector<128x128xbf16>
    %c0_4 = arith.constant 0 : index
    %c0_5 = arith.constant 0 : index
    %5 = vector.load %arg4[%c0_4, %c0_5] : memref<128x256xbf16, #tpu.memory_space<vmem>>, vector<128x256xbf16>
    %cst = arith.constant dense<0.000000e+00> : vector<128x256xf32>
    %6 = tpu.matmul %4, %5, %cst {dimension_numbers = #tpu.dot_dimension_numbers<[1], [0], [0], [1], [0, 0, 1, 1], [], []>} : vector<128x128xbf16>, vector<128x256xbf16>, vector<128x256xf32> -> vector<128x256xf32>
    %7 = arith.addf %3, %6 : vector<128x256xf32>
    %c0_6 = arith.constant 0 : index
    %c0_7 = arith.constant 0 : index
    %8 = vector.load %arg7[%c0_6, %c0_7] : memref<128x256xf32, #tpu.memory_space<vmem>>, vector<128x256xf32>
    tpu.vector_store %arg7[%c0_6, %c0_7], %7 {strides = array<i32>} : memref<128x256xf32, #tpu.memory_space<vmem>>, vector<128x256xf32>,
    %c0_i32_8 = arith.constant 0 : i32
    %9 = arith.cmpi eq, %arg2, %c0_i32_8 : i32
    %10 = arith.extui %9 : i1 to i32
    %c0_i32_9 = arith.constant 0 : i32
    %11 = arith.cmpi ne, %10, %c0_i32_9 : i32
    scf.if %11 {
      %c0_10 = arith.constant 0 : index
      %c0_11 = arith.constant 0 : index
      %12 = vector.load %arg7[%c0_10, %c0_11] : memref<128x256xf32, #tpu.memory_space<vmem>>, vector<128x256xf32>
      %c0_12 = arith.constant 0 : index
      %c0_13 = arith.constant 0 : index
      %13 = vector.load %arg5[%c0_12, %c0_13] : memref<1x256xf32, #tpu.memory_space<vmem>>, vector<1x256xf32>
      %14 = vector.broadcast %13 : vector<1x256xf32> to vector<128x256xf32>
      %15 = arith.addf %12, %14 : vector<128x256xf32>
      %cst_14 = arith.constant 0.000000e+00 : f32
      %16 = vector.broadcast %cst_14 : f32 to vector<128x256xf32>
      %17 = arith.cmpf oge, %15, %16 : vector<128x256xf32>
      %cst_15 = arith.constant 1.000000e-01 : f32
      %18 = vector.broadcast %cst_15 : f32 to vector<128x256xf32>
      %19 = arith.mulf %18, %15 : vector<128x256xf32>
      %20 = arith.select %17, %15, %19 : vector<128x256xi1>, vector<128x256xf32>
      %21 = arith.truncf %20 : vector<128x256xf32> to vector<128x256xbf16>
      %c0_16 = arith.constant 0 : index
      %c0_17 = arith.constant 0 : index
      %22 = vector.load %arg6[%c0_16, %c0_17] : memref<128x256xbf16, #tpu.memory_space<vmem>>, vector<128x256xbf16>
      tpu.vector_store %arg6[%c0_16, %c0_17], %21 {strides = array<i32>} : memref<128x256xbf16, #tpu.memory_space<vmem>>, vector<128x256xbf16>,
    } else {
    }
    return
  }
  func.func @transform_0(%arg0: i32, %arg1: i32, %arg2: i32) -> (i32, i32) {
    %c0_i32 = arith.constant 0 : i32
    return %arg0, %arg2 : i32, i32
  }
  func.func @transform_1(%arg0: i32, %arg1: i32, %arg2: i32) -> (i32, i32) {
    %c0_i32 = arith.constant 0 : i32
    return %arg2, %arg1 : i32, i32
  }
  func.func @transform_2(%arg0: i32, %arg1: i32, %arg2: i32) -> (i32, i32) {
    %c0_i32 = arith.constant 0 : i32
    %c0_i32_0 = arith.constant 0 : i32
    return %c0_i32, %arg1 : i32, i32
  }
  func.func @transform_3(%arg0: i32, %arg1: i32, %arg2: i32) -> (i32, i32) {
    %c0_i32 = arith.constant 0 : i32
    return %arg0, %arg1 : i32, i32
  }
}

module attributes {stable_mosaic.version = 11 : i64} {
  func.func @_resblock_kernel(%arg0: i32, %arg1: memref<1x8x8x128xbf16, #tpu.memory_space<vmem>>, %arg2: memref<128x128xbf16, #tpu.memory_space<vmem>>, %arg3: memref<1x128xf32, #tpu.memory_space<vmem>>, %arg4: memref<9x128x128xbf16, #tpu.memory_space<vmem>>, %arg5: memref<1x128xf32, #tpu.memory_space<vmem>>, %arg6: memref<1x8x8x128xbf16, #tpu.memory_space<vmem>>, %arg7: memref<10x10x128xbf16, #tpu.memory_space<vmem>>) attributes {dimension_semantics = [#tpu.dimension_semantics<parallel>], iteration_bounds = array<i64: 2>, scalar_prefetch = 0 : i64, scratch_operands = 1 : i64, tpu.core_type = #tpu.core_type<tc>, window_params = [{transform_indices = @transform_0, window_bounds = array<i64: 1, 8, 8, 128>}, {pipeline_mode = #tpu.pipeline_mode<synchronous>, transform_indices = @transform_1, window_bounds = array<i64: 128, 128>}, {pipeline_mode = #tpu.pipeline_mode<synchronous>, transform_indices = @transform_2, window_bounds = array<i64: 1, 128>}, {pipeline_mode = #tpu.pipeline_mode<synchronous>, transform_indices = @transform_3, window_bounds = array<i64: 9, 128, 128>}, {pipeline_mode = #tpu.pipeline_mode<synchronous>, transform_indices = @transform_4, window_bounds = array<i64: 1, 128>}, {transform_indices = @transform_5, window_bounds = array<i64: 1, 8, 8, 128>}]} {
    %c0 = arith.constant 0 : index
    %c0_0 = arith.constant 0 : index
    %c0_1 = arith.constant 0 : index
    %c0_2 = arith.constant 0 : index
    %0 = vector.load %arg1[%c0, %c0_0, %c0_1, %c0_2] : memref<1x8x8x128xbf16, #tpu.memory_space<vmem>>, vector<1x8x8x128xbf16>
    %1 = vector.shape_cast %0 : vector<1x8x8x128xbf16> to vector<8x8x128xbf16>
    %2 = vector.shape_cast %1 : vector<8x8x128xbf16> to vector<64x128xbf16>
    %c0_3 = arith.constant 0 : index
    %c0_4 = arith.constant 0 : index
    %3 = vector.load %arg2[%c0_3, %c0_4] : memref<128x128xbf16, #tpu.memory_space<vmem>>, vector<128x128xbf16>
    %cst = arith.constant dense<0.000000e+00> : vector<64x128xf32>
    %4 = tpu.matmul %2, %3, %cst {dimension_numbers = #tpu.dot_dimension_numbers<[1], [0], [0], [1], [0, 0, 1, 1], [], []>} : vector<64x128xbf16>, vector<128x128xbf16>, vector<64x128xf32> -> vector<64x128xf32>
    %c0_5 = arith.constant 0 : index
    %c0_6 = arith.constant 0 : index
    %5 = vector.load %arg3[%c0_5, %c0_6] : memref<1x128xf32, #tpu.memory_space<vmem>>, vector<1x128xf32>
    %6 = vector.broadcast %5 : vector<1x128xf32> to vector<64x128xf32>
    %7 = arith.addf %4, %6 : vector<64x128xf32>
    %cst_7 = arith.constant 0.000000e+00 : f32
    %8 = vector.broadcast %cst_7 : f32 to vector<64x128xf32>
    %9 = arith.cmpf oge, %7, %8 : vector<64x128xf32>
    %cst_8 = arith.constant 1.000000e-01 : f32
    %10 = vector.broadcast %cst_8 : f32 to vector<64x128xf32>
    %11 = arith.mulf %10, %7 : vector<64x128xf32>
    %12 = arith.select %9, %7, %11 : vector<64x128xi1>, vector<64x128xf32>
    %cst_9 = arith.constant 0.000000e+00 : bf16
    %13 = vector.broadcast %cst_9 : bf16 to vector<10x10x128xbf16>
    %c0_10 = arith.constant 0 : index
    %c0_11 = arith.constant 0 : index
    %c0_12 = arith.constant 0 : index
    %14 = vector.load %arg7[%c0_10, %c0_11, %c0_12] : memref<10x10x128xbf16, #tpu.memory_space<vmem>>, vector<10x10x128xbf16>
    tpu.vector_store %arg7[%c0_10, %c0_11, %c0_12], %13 {strides = array<i32>} : memref<10x10x128xbf16, #tpu.memory_space<vmem>>, vector<10x10x128xbf16>,
    %15 = vector.shape_cast %12 : vector<64x128xf32> to vector<8x8x128xf32>
    %16 = arith.truncf %15 : vector<8x8x128xf32> to vector<8x8x128xbf16>
    %c1 = arith.constant 1 : index
    %c1_13 = arith.constant 1 : index
    %c0_14 = arith.constant 0 : index
    %17 = vector.load %arg7[%c1, %c1_13, %c0_14] : memref<10x10x128xbf16, #tpu.memory_space<vmem>>, vector<8x8x128xbf16>
    tpu.vector_store %arg7[%c1, %c1_13, %c0_14], %16 {strides = array<i32>} : memref<10x10x128xbf16, #tpu.memory_space<vmem>>, vector<8x8x128xbf16>,
    %cst_15 = arith.constant 0.000000e+00 : f32
    %18 = vector.broadcast %cst_15 : f32 to vector<64x128xf32>
    %c0_16 = arith.constant 0 : index
    %c0_17 = arith.constant 0 : index
    %c0_18 = arith.constant 0 : index
    %19 = vector.load %arg7[%c0_16, %c0_17, %c0_18] : memref<10x10x128xbf16, #tpu.memory_space<vmem>>, vector<8x8x128xbf16>
    %20 = vector.shape_cast %19 : vector<8x8x128xbf16> to vector<64x128xbf16>
    %c0_19 = arith.constant 0 : index
    %c0_20 = arith.constant 0 : index
    %c0_21 = arith.constant 0 : index
    %21 = vector.load %arg4[%c0_19, %c0_20, %c0_21] : memref<9x128x128xbf16, #tpu.memory_space<vmem>>, vector<1x128x128xbf16>
    %22 = vector.shape_cast %21 : vector<1x128x128xbf16> to vector<128x128xbf16>
    %cst_22 = arith.constant dense<0.000000e+00> : vector<64x128xf32>
    %23 = tpu.matmul %20, %22, %cst_22 {dimension_numbers = #tpu.dot_dimension_numbers<[1], [0], [0], [1], [0, 0, 1, 1], [], []>} : vector<64x128xbf16>, vector<128x128xbf16>, vector<64x128xf32> -> vector<64x128xf32>
    %24 = arith.addf %18, %23 : vector<64x128xf32>
    %c0_23 = arith.constant 0 : index
    %c1_24 = arith.constant 1 : index
    %c0_25 = arith.constant 0 : index
    %25 = vector.load %arg7[%c0_23, %c1_24, %c0_25] : memref<10x10x128xbf16, #tpu.memory_space<vmem>>, vector<8x8x128xbf16>
    %26 = vector.shape_cast %25 : vector<8x8x128xbf16> to vector<64x128xbf16>
    %c1_26 = arith.constant 1 : index
    %c0_27 = arith.constant 0 : index
    %c0_28 = arith.constant 0 : index
    %27 = vector.load %arg4[%c1_26, %c0_27, %c0_28] : memref<9x128x128xbf16, #tpu.memory_space<vmem>>, vector<1x128x128xbf16>
    %28 = vector.shape_cast %27 : vector<1x128x128xbf16> to vector<128x128xbf16>
    %cst_29 = arith.constant dense<0.000000e+00> : vector<64x128xf32>
    %29 = tpu.matmul %26, %28, %cst_29 {dimension_numbers = #tpu.dot_dimension_numbers<[1], [0], [0], [1], [0, 0, 1, 1], [], []>} : vector<64x128xbf16>, vector<128x128xbf16>, vector<64x128xf32> -> vector<64x128xf32>
    %30 = arith.addf %24, %29 : vector<64x128xf32>
    %c0_30 = arith.constant 0 : index
    %c2 = arith.constant 2 : index
    %c0_31 = arith.constant 0 : index
    %31 = vector.load %arg7[%c0_30, %c2, %c0_31] : memref<10x10x128xbf16, #tpu.memory_space<vmem>>, vector<8x8x128xbf16>
    %32 = vector.shape_cast %31 : vector<8x8x128xbf16> to vector<64x128xbf16>
    %c2_32 = arith.constant 2 : index
    %c0_33 = arith.constant 0 : index
    %c0_34 = arith.constant 0 : index
    %33 = vector.load %arg4[%c2_32, %c0_33, %c0_34] : memref<9x128x128xbf16, #tpu.memory_space<vmem>>, vector<1x128x128xbf16>
    %34 = vector.shape_cast %33 : vector<1x128x128xbf16> to vector<128x128xbf16>
    %cst_35 = arith.constant dense<0.000000e+00> : vector<64x128xf32>
    %35 = tpu.matmul %32, %34, %cst_35 {dimension_numbers = #tpu.dot_dimension_numbers<[1], [0], [0], [1], [0, 0, 1, 1], [], []>} : vector<64x128xbf16>, vector<128x128xbf16>, vector<64x128xf32> -> vector<64x128xf32>
    %36 = arith.addf %30, %35 : vector<64x128xf32>
    %c1_36 = arith.constant 1 : index
    %c0_37 = arith.constant 0 : index
    %c0_38 = arith.constant 0 : index
    %37 = vector.load %arg7[%c1_36, %c0_37, %c0_38] : memref<10x10x128xbf16, #tpu.memory_space<vmem>>, vector<8x8x128xbf16>
    %38 = vector.shape_cast %37 : vector<8x8x128xbf16> to vector<64x128xbf16>
    %c3 = arith.constant 3 : index
    %c0_39 = arith.constant 0 : index
    %c0_40 = arith.constant 0 : index
    %39 = vector.load %arg4[%c3, %c0_39, %c0_40] : memref<9x128x128xbf16, #tpu.memory_space<vmem>>, vector<1x128x128xbf16>
    %40 = vector.shape_cast %39 : vector<1x128x128xbf16> to vector<128x128xbf16>
    %cst_41 = arith.constant dense<0.000000e+00> : vector<64x128xf32>
    %41 = tpu.matmul %38, %40, %cst_41 {dimension_numbers = #tpu.dot_dimension_numbers<[1], [0], [0], [1], [0, 0, 1, 1], [], []>} : vector<64x128xbf16>, vector<128x128xbf16>, vector<64x128xf32> -> vector<64x128xf32>
    %42 = arith.addf %36, %41 : vector<64x128xf32>
    %c1_42 = arith.constant 1 : index
    %c1_43 = arith.constant 1 : index
    %c0_44 = arith.constant 0 : index
    %43 = vector.load %arg7[%c1_42, %c1_43, %c0_44] : memref<10x10x128xbf16, #tpu.memory_space<vmem>>, vector<8x8x128xbf16>
    %44 = vector.shape_cast %43 : vector<8x8x128xbf16> to vector<64x128xbf16>
    %c4 = arith.constant 4 : index
    %c0_45 = arith.constant 0 : index
    %c0_46 = arith.constant 0 : index
    %45 = vector.load %arg4[%c4, %c0_45, %c0_46] : memref<9x128x128xbf16, #tpu.memory_space<vmem>>, vector<1x128x128xbf16>
    %46 = vector.shape_cast %45 : vector<1x128x128xbf16> to vector<128x128xbf16>
    %cst_47 = arith.constant dense<0.000000e+00> : vector<64x128xf32>
    %47 = tpu.matmul %44, %46, %cst_47 {dimension_numbers = #tpu.dot_dimension_numbers<[1], [0], [0], [1], [0, 0, 1, 1], [], []>} : vector<64x128xbf16>, vector<128x128xbf16>, vector<64x128xf32> -> vector<64x128xf32>
    %48 = arith.addf %42, %47 : vector<64x128xf32>
    %c1_48 = arith.constant 1 : index
    %c2_49 = arith.constant 2 : index
    %c0_50 = arith.constant 0 : index
    %49 = vector.load %arg7[%c1_48, %c2_49, %c0_50] : memref<10x10x128xbf16, #tpu.memory_space<vmem>>, vector<8x8x128xbf16>
    %50 = vector.shape_cast %49 : vector<8x8x128xbf16> to vector<64x128xbf16>
    %c5 = arith.constant 5 : index
    %c0_51 = arith.constant 0 : index
    %c0_52 = arith.constant 0 : index
    %51 = vector.load %arg4[%c5, %c0_51, %c0_52] : memref<9x128x128xbf16, #tpu.memory_space<vmem>>, vector<1x128x128xbf16>
    %52 = vector.shape_cast %51 : vector<1x128x128xbf16> to vector<128x128xbf16>
    %cst_53 = arith.constant dense<0.000000e+00> : vector<64x128xf32>
    %53 = tpu.matmul %50, %52, %cst_53 {dimension_numbers = #tpu.dot_dimension_numbers<[1], [0], [0], [1], [0, 0, 1, 1], [], []>} : vector<64x128xbf16>, vector<128x128xbf16>, vector<64x128xf32> -> vector<64x128xf32>
    %54 = arith.addf %48, %53 : vector<64x128xf32>
    %c2_54 = arith.constant 2 : index
    %c0_55 = arith.constant 0 : index
    %c0_56 = arith.constant 0 : index
    %55 = vector.load %arg7[%c2_54, %c0_55, %c0_56] : memref<10x10x128xbf16, #tpu.memory_space<vmem>>, vector<8x8x128xbf16>
    %56 = vector.shape_cast %55 : vector<8x8x128xbf16> to vector<64x128xbf16>
    %c6 = arith.constant 6 : index
    %c0_57 = arith.constant 0 : index
    %c0_58 = arith.constant 0 : index
    %57 = vector.load %arg4[%c6, %c0_57, %c0_58] : memref<9x128x128xbf16, #tpu.memory_space<vmem>>, vector<1x128x128xbf16>
    %58 = vector.shape_cast %57 : vector<1x128x128xbf16> to vector<128x128xbf16>
    %cst_59 = arith.constant dense<0.000000e+00> : vector<64x128xf32>
    %59 = tpu.matmul %56, %58, %cst_59 {dimension_numbers = #tpu.dot_dimension_numbers<[1], [0], [0], [1], [0, 0, 1, 1], [], []>} : vector<64x128xbf16>, vector<128x128xbf16>, vector<64x128xf32> -> vector<64x128xf32>
    %60 = arith.addf %54, %59 : vector<64x128xf32>
    %c2_60 = arith.constant 2 : index
    %c1_61 = arith.constant 1 : index
    %c0_62 = arith.constant 0 : index
    %61 = vector.load %arg7[%c2_60, %c1_61, %c0_62] : memref<10x10x128xbf16, #tpu.memory_space<vmem>>, vector<8x8x128xbf16>
    %62 = vector.shape_cast %61 : vector<8x8x128xbf16> to vector<64x128xbf16>
    %c7 = arith.constant 7 : index
    %c0_63 = arith.constant 0 : index
    %c0_64 = arith.constant 0 : index
    %63 = vector.load %arg4[%c7, %c0_63, %c0_64] : memref<9x128x128xbf16, #tpu.memory_space<vmem>>, vector<1x128x128xbf16>
    %64 = vector.shape_cast %63 : vector<1x128x128xbf16> to vector<128x128xbf16>
    %cst_65 = arith.constant dense<0.000000e+00> : vector<64x128xf32>
    %65 = tpu.matmul %62, %64, %cst_65 {dimension_numbers = #tpu.dot_dimension_numbers<[1], [0], [0], [1], [0, 0, 1, 1], [], []>} : vector<64x128xbf16>, vector<128x128xbf16>, vector<64x128xf32> -> vector<64x128xf32>
    %66 = arith.addf %60, %65 : vector<64x128xf32>
    %c2_66 = arith.constant 2 : index
    %c2_67 = arith.constant 2 : index
    %c0_68 = arith.constant 0 : index
    %67 = vector.load %arg7[%c2_66, %c2_67, %c0_68] : memref<10x10x128xbf16, #tpu.memory_space<vmem>>, vector<8x8x128xbf16>
    %68 = vector.shape_cast %67 : vector<8x8x128xbf16> to vector<64x128xbf16>
    %c8 = arith.constant 8 : index
    %c0_69 = arith.constant 0 : index
    %c0_70 = arith.constant 0 : index
    %69 = vector.load %arg4[%c8, %c0_69, %c0_70] : memref<9x128x128xbf16, #tpu.memory_space<vmem>>, vector<1x128x128xbf16>
    %70 = vector.shape_cast %69 : vector<1x128x128xbf16> to vector<128x128xbf16>
    %cst_71 = arith.constant dense<0.000000e+00> : vector<64x128xf32>
    %71 = tpu.matmul %68, %70, %cst_71 {dimension_numbers = #tpu.dot_dimension_numbers<[1], [0], [0], [1], [0, 0, 1, 1], [], []>} : vector<64x128xbf16>, vector<128x128xbf16>, vector<64x128xf32> -> vector<64x128xf32>
    %72 = arith.addf %66, %71 : vector<64x128xf32>
    %c0_72 = arith.constant 0 : index
    %c0_73 = arith.constant 0 : index
    %73 = vector.load %arg5[%c0_72, %c0_73] : memref<1x128xf32, #tpu.memory_space<vmem>>, vector<1x128xf32>
    %74 = vector.broadcast %73 : vector<1x128xf32> to vector<64x128xf32>
    %75 = arith.addf %72, %74 : vector<64x128xf32>
    %cst_74 = arith.constant 0.000000e+00 : f32
    %76 = vector.broadcast %cst_74 : f32 to vector<64x128xf32>
    %77 = arith.cmpf oge, %75, %76 : vector<64x128xf32>
    %cst_75 = arith.constant 1.000000e-01 : f32
    %78 = vector.broadcast %cst_75 : f32 to vector<64x128xf32>
    %79 = arith.mulf %78, %75 : vector<64x128xf32>
    %80 = arith.select %77, %75, %79 : vector<64x128xi1>, vector<64x128xf32>
    %81 = arith.extf %2 : vector<64x128xbf16> to vector<64x128xf32>
    %82 = arith.addf %80, %81 : vector<64x128xf32>
    %83 = vector.shape_cast %82 : vector<64x128xf32> to vector<8x8x128xf32>
    %84 = arith.truncf %83 : vector<8x8x128xf32> to vector<8x8x128xbf16>
    %c0_76 = arith.constant 0 : index
    %c0_77 = arith.constant 0 : index
    %c0_78 = arith.constant 0 : index
    %c0_79 = arith.constant 0 : index
    %85 = vector.load %arg6[%c0_76, %c0_77, %c0_78, %c0_79] : memref<1x8x8x128xbf16, #tpu.memory_space<vmem>>, vector<1x8x8x128xbf16>
    %86 = vector.shape_cast %85 : vector<1x8x8x128xbf16> to vector<8x8x128xbf16>
    %87 = vector.shape_cast %84 : vector<8x8x128xbf16> to vector<1x8x8x128xbf16>
    tpu.vector_store %arg6[%c0_76, %c0_77, %c0_78, %c0_79], %87 {strides = array<i32>} : memref<1x8x8x128xbf16, #tpu.memory_space<vmem>>, vector<1x8x8x128xbf16>,
    return
  }
  func.func @transform_0(%arg0: i32) -> (i32, i32, i32, i32) {
    %c0_i32 = arith.constant 0 : i32
    %c0_i32_0 = arith.constant 0 : i32
    %c0_i32_1 = arith.constant 0 : i32
    %c0_i32_2 = arith.constant 0 : i32
    return %arg0, %c0_i32, %c0_i32_0, %c0_i32_1 : i32, i32, i32, i32
  }
  func.func @transform_1(%arg0: i32) -> (i32, i32) {
    %c0_i32 = arith.constant 0 : i32
    %c0_i32_0 = arith.constant 0 : i32
    %c0_i32_1 = arith.constant 0 : i32
    return %c0_i32, %c0_i32_0 : i32, i32
  }
  func.func @transform_2(%arg0: i32) -> (i32, i32) {
    %c0_i32 = arith.constant 0 : i32
    %c0_i32_0 = arith.constant 0 : i32
    %c0_i32_1 = arith.constant 0 : i32
    return %c0_i32, %c0_i32_0 : i32, i32
  }
  func.func @transform_3(%arg0: i32) -> (i32, i32, i32) {
    %c0_i32 = arith.constant 0 : i32
    %c0_i32_0 = arith.constant 0 : i32
    %c0_i32_1 = arith.constant 0 : i32
    %c0_i32_2 = arith.constant 0 : i32
    return %c0_i32, %c0_i32_0, %c0_i32_1 : i32, i32, i32
  }
  func.func @transform_4(%arg0: i32) -> (i32, i32) {
    %c0_i32 = arith.constant 0 : i32
    %c0_i32_0 = arith.constant 0 : i32
    %c0_i32_1 = arith.constant 0 : i32
    return %c0_i32, %c0_i32_0 : i32, i32
  }
  func.func @transform_5(%arg0: i32) -> (i32, i32, i32, i32) {
    %c0_i32 = arith.constant 0 : i32
    %c0_i32_0 = arith.constant 0 : i32
    %c0_i32_1 = arith.constant 0 : i32
    %c0_i32_2 = arith.constant 0 : i32
    return %arg0, %c0_i32, %c0_i32_0, %c0_i32_1 : i32, i32, i32, i32
  }
}

module attributes {stable_mosaic.version = 11 : i64} {
  func.func @_left2_out_kernel(%arg0: i32, %arg1: memref<128x128xbf16, #tpu.memory_space<vmem>>, %arg2: memref<128x128xbf16, #tpu.memory_space<vmem>>, %arg3: memref<128x128xbf16, #tpu.memory_space<vmem>>, %arg4: memref<1x128xf32, #tpu.memory_space<vmem>>, %arg5: memref<128x128xbf16, #tpu.memory_space<vmem>>, %arg6: memref<128x128xbf16, #tpu.memory_space<vmem>>, %arg7: memref<1x128xf32, #tpu.memory_space<vmem>>, %arg8: memref<128x128xf32, #tpu.memory_space<vmem>>) attributes {dimension_semantics = [#tpu.dimension_semantics<parallel>], iteration_bounds = array<i64: 1>, scalar_prefetch = 0 : i64, scratch_operands = 0 : i64, tpu.core_type = #tpu.core_type<tc>, window_params = [{transform_indices = @transform_0, window_bounds = array<i64: 128, 128>}, {transform_indices = @transform_1, window_bounds = array<i64: 128, 128>}, {pipeline_mode = #tpu.pipeline_mode<synchronous>, transform_indices = @transform_2, window_bounds = array<i64: 128, 128>}, {pipeline_mode = #tpu.pipeline_mode<synchronous>, transform_indices = @transform_3, window_bounds = array<i64: 1, 128>}, {pipeline_mode = #tpu.pipeline_mode<synchronous>, transform_indices = @transform_4, window_bounds = array<i64: 128, 128>}, {pipeline_mode = #tpu.pipeline_mode<synchronous>, transform_indices = @transform_5, window_bounds = array<i64: 128, 128>}, {pipeline_mode = #tpu.pipeline_mode<synchronous>, transform_indices = @transform_6, window_bounds = array<i64: 1, 128>}, {transform_indices = @transform_7, window_bounds = array<i64: 128, 128>}]} {
    %c0 = arith.constant 0 : index
    %c0_0 = arith.constant 0 : index
    %0 = vector.load %arg1[%c0, %c0_0] : memref<128x128xbf16, #tpu.memory_space<vmem>>, vector<128x128xbf16>
    %c0_1 = arith.constant 0 : index
    %c0_2 = arith.constant 0 : index
    %1 = vector.load %arg3[%c0_1, %c0_2] : memref<128x128xbf16, #tpu.memory_space<vmem>>, vector<128x128xbf16>
    %cst = arith.constant dense<0.000000e+00> : vector<128x128xf32>
    %2 = tpu.matmul %0, %1, %cst {dimension_numbers = #tpu.dot_dimension_numbers<[1], [0], [0], [1], [0, 0, 1, 1], [], []>} : vector<128x128xbf16>, vector<128x128xbf16>, vector<128x128xf32> -> vector<128x128xf32>
    %c0_3 = arith.constant 0 : index
    %c0_4 = arith.constant 0 : index
    %3 = vector.load %arg4[%c0_3, %c0_4] : memref<1x128xf32, #tpu.memory_space<vmem>>, vector<1x128xf32>
    %4 = vector.broadcast %3 : vector<1x128xf32> to vector<128x128xf32>
    %5 = arith.addf %2, %4 : vector<128x128xf32>
    %cst_5 = arith.constant 0.000000e+00 : f32
    %6 = vector.broadcast %cst_5 : f32 to vector<128x128xf32>
    %7 = arith.cmpf oge, %5, %6 : vector<128x128xf32>
    %cst_6 = arith.constant 1.000000e-01 : f32
    %8 = vector.broadcast %cst_6 : f32 to vector<128x128xf32>
    %9 = arith.mulf %8, %5 : vector<128x128xf32>
    %10 = arith.select %7, %5, %9 : vector<128x128xi1>, vector<128x128xf32>
    %11 = arith.truncf %10 : vector<128x128xf32> to vector<128x128xbf16>
    %c0_7 = arith.constant 0 : index
    %c0_8 = arith.constant 0 : index
    %12 = vector.load %arg5[%c0_7, %c0_8] : memref<128x128xbf16, #tpu.memory_space<vmem>>, vector<128x128xbf16>
    %cst_9 = arith.constant dense<0.000000e+00> : vector<128x128xf32>
    %13 = tpu.matmul %11, %12, %cst_9 {dimension_numbers = #tpu.dot_dimension_numbers<[1], [0], [0], [1], [0, 0, 1, 1], [], []>} : vector<128x128xbf16>, vector<128x128xbf16>, vector<128x128xf32> -> vector<128x128xf32>
    %c0_10 = arith.constant 0 : index
    %c0_11 = arith.constant 0 : index
    %14 = vector.load %arg2[%c0_10, %c0_11] : memref<128x128xbf16, #tpu.memory_space<vmem>>, vector<128x128xbf16>
    %c0_12 = arith.constant 0 : index
    %c0_13 = arith.constant 0 : index
    %15 = vector.load %arg6[%c0_12, %c0_13] : memref<128x128xbf16, #tpu.memory_space<vmem>>, vector<128x128xbf16>
    %cst_14 = arith.constant dense<0.000000e+00> : vector<128x128xf32>
    %16 = tpu.matmul %14, %15, %cst_14 {dimension_numbers = #tpu.dot_dimension_numbers<[1], [0], [0], [1], [0, 0, 1, 1], [], []>} : vector<128x128xbf16>, vector<128x128xbf16>, vector<128x128xf32> -> vector<128x128xf32>
    %17 = arith.addf %13, %16 : vector<128x128xf32>
    %c0_15 = arith.constant 0 : index
    %c0_16 = arith.constant 0 : index
    %18 = vector.load %arg7[%c0_15, %c0_16] : memref<1x128xf32, #tpu.memory_space<vmem>>, vector<1x128xf32>
    %19 = vector.broadcast %18 : vector<1x128xf32> to vector<128x128xf32>
    %20 = arith.addf %17, %19 : vector<128x128xf32>
    %cst_17 = arith.constant 0.000000e+00 : f32
    %21 = vector.broadcast %cst_17 : f32 to vector<128x128xf32>
    %22 = arith.cmpf oge, %20, %21 : vector<128x128xf32>
    %cst_18 = arith.constant 1.000000e-01 : f32
    %23 = vector.broadcast %cst_18 : f32 to vector<128x128xf32>
    %24 = arith.mulf %23, %20 : vector<128x128xf32>
    %25 = arith.select %22, %20, %24 : vector<128x128xi1>, vector<128x128xf32>
    %c0_19 = arith.constant 0 : index
    %c0_20 = arith.constant 0 : index
    %26 = vector.load %arg8[%c0_19, %c0_20] : memref<128x128xf32, #tpu.memory_space<vmem>>, vector<128x128xf32>
    tpu.vector_store %arg8[%c0_19, %c0_20], %25 {strides = array<i32>} : memref<128x128xf32, #tpu.memory_space<vmem>>, vector<128x128xf32>,
    return
  }
  func.func @transform_0(%arg0: i32) -> (i32, i32) {
    %c0_i32 = arith.constant 0 : i32
    %c0_i32_0 = arith.constant 0 : i32
    return %arg0, %c0_i32 : i32, i32
  }
  func.func @transform_1(%arg0: i32) -> (i32, i32) {
    %c1_i32 = arith.constant 1 : i32
    %c0_i32 = arith.constant 0 : i32
    return %arg0, %c1_i32 : i32, i32
  }
  func.func @transform_2(%arg0: i32) -> (i32, i32) {
    %c0_i32 = arith.constant 0 : i32
    %c0_i32_0 = arith.constant 0 : i32
    %c0_i32_1 = arith.constant 0 : i32
    return %c0_i32, %c0_i32_0 : i32, i32
  }
  func.func @transform_3(%arg0: i32) -> (i32, i32) {
    %c0_i32 = arith.constant 0 : i32
    %c0_i32_0 = arith.constant 0 : i32
    %c0_i32_1 = arith.constant 0 : i32
    return %c0_i32, %c0_i32_0 : i32, i32
  }
  func.func @transform_4(%arg0: i32) -> (i32, i32) {
    %c0_i32 = arith.constant 0 : i32
    %c0_i32_0 = arith.constant 0 : i32
    %c0_i32_1 = arith.constant 0 : i32
    return %c0_i32, %c0_i32_0 : i32, i32
  }
  func.func @transform_5(%arg0: i32) -> (i32, i32) {
    %c0_i32 = arith.constant 0 : i32
    %c0_i32_0 = arith.constant 0 : i32
    %c0_i32_1 = arith.constant 0 : i32
    return %c0_i32, %c0_i32_0 : i32, i32
  }
  func.func @transform_6(%arg0: i32) -> (i32, i32) {
    %c0_i32 = arith.constant 0 : i32
    %c0_i32_0 = arith.constant 0 : i32
    %c0_i32_1 = arith.constant 0 : i32
    return %c0_i32, %c0_i32_0 : i32, i32
  }
  func.func @transform_7(%arg0: i32) -> (i32, i32) {
    %c0_i32 = arith.constant 0 : i32
    %c0_i32_0 = arith.constant 0 : i32
    return %arg0, %c0_i32 : i32, i32
  }
}

</mosaic_0001>

<bundles_post_ra>
// kernel: csp_darknet_block.5
= control target key start
LH: loop header
LB: loop body
LE: loop exit
PB: predicated region body
PF: predicated region fallthrough
CT: control target
= control target key end

     0   :  { %s972_s1 = inlined_call_operand.vmem [shape: bf16[128,256], index: 1, kind: input, shape index: {}]   ;;  %s973_s0 = inlined_call_operand.vmem [shape: bf16[128,128], index: 0, kind: input, shape index: {}]   ;;  %s974_s2 = inlined_call_operand.vmem [shape: f32[1,256], index: 2, kind: input, shape index: {}]   ;;  %s975_s3 = inlined_call_operand.vmem [shape: bf16[128,256], index: 3, kind: output, shape index: {}]  }
   0x1   :  { %v699_v0 = vld [vmem:[%s972_s1 + $0x70] sm:$0xf]  ;;  %v728_v1 = vld [vmem:[%s972_s1 + $0x74] sm:$0xf0]  ;;  %v727_v2 = vld [vmem:[%s972_s1 + $0x74] sm:$0xf] }
   0x2   :  { %v700_v3 = vor.u32 %v728_v1, %v699_v0  ;;  %v701_v4 = vld [vmem:[%s972_s1 + $0x78] sm:$0xf0]  ;;  %v691_v5 = vld [vmem:[%s972_s1 + $0x60] sm:$0xf]  ;;  %v726_v6 = vld [vmem:[%s972_s1 + $0x64] sm:$0xf0] }
   0x3   :  { %v704_v7 = vor.u32 %v727_v2, %v701_v4  ;;  %v725_v8 = vld [vmem:[%s972_s1 + $0x64] sm:$0xf]  ;;  %v693_v9 = vld [vmem:[%s972_s1 + $0x68] sm:$0xf0]  ;;  %v692_v10 = vor.u32 %v726_v6, %v691_v5  ;;  %v683_v12 = vld [vmem:[%s972_s1 + $0x50] sm:$0xf] }
   0x4   :  { %242 = vmatpush.bf16.msra.mxu0 %v700_v3  ;;  %729 = vmatpush.bf16.msra.mxu2 %v700_v3  ;;  %v696_v11 = vor.u32 %v725_v8, %v693_v9  ;;  %v724_v13 = vld [vmem:[%s972_s1 + $0x54] sm:$0xf0]  ;;  %v723_v14 = vld [vmem:[%s972_s1 + $0x54] sm:$0xf]  ;;  %v685_v15 = vld [vmem:[%s972_s1 + $0x58] sm:$0xf0] }
   0x5   :  { %291 = vmatpush.bf16.msra.mxu1 %v704_v7  ;;  %737 = vmatpush.bf16.msra.mxu3 %v704_v7  ;;  %v684_v16 = vor.u32 %v724_v13, %v683_v12  ;;  %v688_v17 = vor.u32 %v723_v14, %v685_v15  ;;  %v675_v18 = vld [vmem:[%s972_s1 + $0x40] sm:$0xf]  ;;  %v722_v19 = vld [vmem:[%s972_s1 + $0x44] sm:$0xf0]  ;;  %v721_v20 = vld [vmem:[%s972_s1 + $0x44] sm:$0xf] }
   0x6   :  { %v677_v21 = vld [vmem:[%s972_s1 + $0x48] sm:$0xf0]  ;;  %v676_v22 = vor.u32 %v722_v19, %v675_v18  ;;  %v667_v24 = vld [vmem:[%s972_s1 + $0x30] sm:$0xf]  ;;  %v720_v25 = vld [vmem:[%s972_s1 + $0x34] sm:$0xf0] }
   0x7   :  { %v680_v23 = vor.u32 %v721_v20, %v677_v21  ;;  %v719_v26 = vld [vmem:[%s972_s1 + $0x34] sm:$0xf]  ;;  %v669_v27 = vld [vmem:[%s972_s1 + $0x38] sm:$0xf0]  ;;  %v668_v28 = vor.u32 %v720_v25, %v667_v24  ;;  %v659_v30 = vld [vmem:[%s972_s1 + $0x20] sm:$0xf] }
   0x8   :  { %243 = vmatpush.bf16.msra.mxu0 %v692_v10  ;;  %730 = vmatpush.bf16.msra.mxu2 %v692_v10  ;;  %v672_v29 = vor.u32 %v719_v26, %v669_v27  ;;  %v718_v31 = vld [vmem:[%s972_s1 + $0x24] sm:$0xf0]  ;;  %v717_v32 = vld [vmem:[%s972_s1 + $0x24] sm:$0xf]  ;;  %v661_v33 = vld [vmem:[%s972_s1 + $0x28] sm:$0xf0] }
   0x9   :  { %292 = vmatpush.bf16.msra.mxu1 %v696_v11  ;;  %738 = vmatpush.bf16.msra.mxu3 %v696_v11  ;;  %v660_v34 = vor.u32 %v718_v31, %v659_v30  ;;  %v664_v35 = vor.u32 %v717_v32, %v661_v33  ;;  %v651_v36 = vld [vmem:[%s972_s1 + $0x10] sm:$0xf]  ;;  %v716_v37 = vld [vmem:[%s972_s1 + $0x14] sm:$0xf0]  ;;  %v715_v38 = vld [vmem:[%s972_s1 + $0x14] sm:$0xf] }
   0xa   :  { %v653_v39 = vld [vmem:[%s972_s1 + $0x18] sm:$0xf0]  ;;  %v652_v40 = vor.u32 %v716_v37, %v651_v36  ;;  %v643_v42 = vld [vmem:[%s972_s1] sm:$0xf]  ;;  %v714_v43 = vld [vmem:[%s972_s1 + $0x4] sm:$0xf0] }
   0xb   :  { %v656_v41 = vor.u32 %v715_v38, %v653_v39  ;;  %v713_v44 = vld [vmem:[%s972_s1 + $0x4] sm:$0xf]  ;;  %v645_v45 = vld [vmem:[%s972_s1 + $0x8] sm:$0xf0]  ;;  %v644_v46 = vor.u32 %v714_v43, %v643_v42  ;;  %v707_v52 = vld [vmem:[%s973_s0 + $0x10] sm:$0xff] }
   0xc   :  { %244 = vmatpush.bf16.msra.mxu0 %v684_v16  ;;  %731 = vmatpush.bf16.msra.mxu2 %v684_v16  ;;  %v648_v47 = vor.u32 %v713_v44, %v645_v45  ;;  %v705_v48 = vld [vmem:[%s973_s0] sm:$0xff]  ;;  %v706_v50 = vld [vmem:[%s973_s0 + $0x8] sm:$0xff]  ;;  %v711_v53 = vld [vmem:[%s973_s0 + $0x30] sm:$0xff] }
   0xd   :  { %293 = vmatpush.bf16.msra.mxu1 %v688_v17  ;;  %739 = vmatpush.bf16.msra.mxu3 %v688_v17  ;;  %v709_v49 = vld [vmem:[%s973_s0 + $0x20] sm:$0xff]  ;;  %v710_v51 = vld [vmem:[%s973_s0 + $0x28] sm:$0xff]  ;;  %v708_v54 = vld [vmem:[%s973_s0 + $0x18] sm:$0xff] }
   0xe   :  { %v712_v55 = vld [vmem:[%s973_s0 + $0x38] sm:$0xff]  ;;  %v439_v56 = vld [vmem:[%s974_s2] sm:$0x3] }
   0xf   :  { %v888_v57 = vperm.slane %v439_v56, 0  ;;  %v890_v58 = vperm.slane %v439_v56, 1 }
  0x10   :  { %245 = vmatpush.bf16.msra.mxu0 %v676_v22  ;;  %732 = vmatpush.bf16.msra.mxu2 %v676_v22 }
  0x11   :  { %294 = vmatpush.bf16.msra.mxu1 %v680_v23  ;;  %740 = vmatpush.bf16.msra.mxu3 %v680_v23 }
  0x14   :  { %246 = vmatpush.bf16.msra.mxu0 %v668_v28  ;;  %733 = vmatpush.bf16.msra.mxu2 %v668_v28 }
  0x15   :  { %295 = vmatpush.bf16.msra.mxu1 %v672_v29  ;;  %741 = vmatpush.bf16.msra.mxu3 %v672_v29 }
  0x18   :  { %247 = vmatpush.bf16.msra.mxu0 %v660_v34  ;;  %734 = vmatpush.bf16.msra.mxu2 %v660_v34 }
  0x19   :  { %296 = vmatpush.bf16.msra.mxu1 %v664_v35  ;;  %742 = vmatpush.bf16.msra.mxu3 %v664_v35 }
  0x1c   :  { %248 = vmatpush.bf16.msra.mxu0 %v652_v40  ;;  %735 = vmatpush.bf16.msra.mxu2 %v652_v40 }
  0x1d   :  { %297 = vmatpush.bf16.msra.mxu1 %v656_v41  ;;  %743 = vmatpush.bf16.msra.mxu3 %v656_v41 }
  0x20   :  { %249 = vmatpush.bf16.msra.mxu0 %v644_v46  ;;  %736 = vmatpush.bf16.msra.mxu2 %v644_v46 }
  0x21   :  { %298 = vmatpush.bf16.msra.mxu1 %v648_v47  ;;  %744 = vmatpush.bf16.msra.mxu3 %v648_v47 }
  0x23   :  { %250 = vmatmul.bf16.vlgmr.msra.gmra.mxu0 %v705_v48  ;;  %270 = vmatmul.bf16.vlgmr.msra.gmra.mxu2 %v709_v49 }
  0x24   :  { %299 = vmatmul.bf16.vlgmr.msra.gmra.mxu1 %v705_v48  ;;  %319 = vmatmul.bf16.vlgmr.msra.gmra.mxu3 %v709_v49 }
  0x33   :  { %255 = vmatmul.bf16.gmra.mxu0 %v706_v50  ;;  %275 = vmatmul.bf16.gmra.mxu2 %v710_v51 }
  0x34   :  { %304 = vmatmul.bf16.gmra.mxu1 %v706_v50  ;;  %324 = vmatmul.bf16.gmra.mxu3 %v710_v51 }
  0x43   :  { %260 = vmatmul.bf16.gmra.mxu0 %v707_v52  ;;  %280 = vmatmul.bf16.gmra.mxu2 %v711_v53 }
  0x44   :  { %309 = vmatmul.bf16.gmra.mxu1 %v707_v52  ;;  %329 = vmatmul.bf16.gmra.mxu3 %v711_v53 }
  0x53   :  { %265 = vmatmul.bf16.gmra.mxu0 %v708_v54  ;;  %285 = vmatmul.bf16.gmra.mxu2 %v712_v55 }
  0x54   :  { %314 = vmatmul.bf16.gmra.mxu1 %v708_v54  ;;  %334 = vmatmul.bf16.gmra.mxu3 %v712_v55 }
  0xa0   :  { %v251_v59 = vpop.f32.mrf.mxu0 }
  0xa1   :  { %v445_v60 = vadd.f32 %v888_v57, %v251_v59  ;;  %v300_v61 = vpop.f32.mrf.mxu1 }
  0xa2   :  { %v446_v62 = vadd.f32 %v890_v58, %v300_v61 }
  0xa3   :  { %vm477_vm0 = vcmp.ge.f32.partialorder %v445_v60, 0.0  ;;  %v509_v63 = vmul.f32 0.1, %v445_v60 }
  0xa4   :  { %vm478_vm1 = vcmp.ge.f32.partialorder %v446_v62, 0.0  ;;  %v510_v0 = vmul.f32 0.1, %v446_v62 }
  0xa5   :  { %v541_v1 = vsel %vm477_vm0, %v445_v60, %v509_v63 }
  0xa6   :  { %v542_v2 = vsel %vm478_vm1, %v446_v62, %v510_v0  ;;  %v271_v3 = vpop.f32.mrf.mxu2 }
  0xa7   :  { %v573_v4 = vpack.c.bf16 %v542_v2, %v541_v1  ;;  %v461_v5 = vadd.f32 %v888_v57, %v271_v3  ;;  %v320_v6 = vpop.f32.mrf.mxu3 }
  0xa8   :  { %v462_v7 = vadd.f32 %v890_v58, %v320_v6  ;;  %v253_v8 = vpop.f32.mrf.mxu0 }
  0xa9   :  { %589 = vst [vmem:[%s975_s3] sm:$0xff] %v573_v4  ;;  %vm493_vm2 = vcmp.ge.f32.partialorder %v461_v5, 0.0  ;;  %v525_v9 = vmul.f32 0.1, %v461_v5  ;;  %v447_v10 = vadd.f32 %v888_v57, %v253_v8  ;;  %v302_v11 = vpop.f32.mrf.mxu1 }
  0xaa   :  { %vm494_vm3 = vcmp.ge.f32.partialorder %v462_v7, 0.0  ;;  %v526_v12 = vmul.f32 0.1, %v462_v7  ;;  %v448_v13 = vadd.f32 %v890_v58, %v302_v11 }
  0xab   :  { %v557_v14 = vsel %vm493_vm2, %v461_v5, %v525_v9  ;;  %vm479_vm4 = vcmp.ge.f32.partialorder %v447_v10, 0.0  ;;  %v511_v15 = vmul.f32 0.1, %v447_v10 }
  0xac   :  { %v558_v16 = vsel %vm494_vm3, %v462_v7, %v526_v12  ;;  %vm480_vm5 = vcmp.ge.f32.partialorder %v448_v13, 0.0  ;;  %v512_v17 = vmul.f32 0.1, %v448_v13 }
  0xad   :  { %v581_v18 = vpack.c.bf16 %v558_v16, %v557_v14  ;;  %v543_v19 = vsel %vm479_vm4, %v447_v10, %v511_v15 }
  0xae   :  { %v544_v20 = vsel %vm480_vm5, %v448_v13, %v512_v17  ;;  %v273_v21 = vpop.f32.mrf.mxu2 }
  0xaf   :  { %597 = vst [vmem:[%s975_s3 + $0x40] sm:$0xff] %v581_v18  ;;  %v574_v22 = vpack.c.bf16 %v544_v20, %v543_v19  ;;  %v463_v23 = vadd.f32 %v888_v57, %v273_v21  ;;  %v322_v24 = vpop.f32.mrf.mxu3 }
  0xb0   :  { %v464_v25 = vadd.f32 %v890_v58, %v322_v24  ;;  %v256_v26 = vpop.f32.mrf.mxu0 }
  0xb1   :  { %590 = vst [vmem:[%s975_s3 + $0x8] sm:$0xff] %v574_v22  ;;  %vm495_vm6 = vcmp.ge.f32.partialorder %v463_v23, 0.0  ;;  %v527_v27 = vmul.f32 0.1, %v463_v23  ;;  %v449_v28 = vadd.f32 %v888_v57, %v256_v26  ;;  %v305_v29 = vpop.f32.mrf.mxu1 }
  0xb2   :  { %vm496_vm7 = vcmp.ge.f32.partialorder %v464_v25, 0.0  ;;  %v528_v30 = vmul.f32 0.1, %v464_v25  ;;  %v450_v31 = vadd.f32 %v890_v58, %v305_v29 }
  0xb3   :  { %v559_v32 = vsel %vm495_vm6, %v463_v23, %v527_v27  ;;  %vm481_vm8 = vcmp.ge.f32.partialorder %v449_v28, 0.0  ;;  %v513_v33 = vmul.f32 0.1, %v449_v28 }
  0xb4   :  { %v560_v34 = vsel %vm496_vm7, %v464_v25, %v528_v30  ;;  %vm482_vm9 = vcmp.ge.f32.partialorder %v450_v31, 0.0  ;;  %v514_v35 = vmul.f32 0.1, %v450_v31 }
  0xb5   :  { %v582_v36 = vpack.c.bf16 %v560_v34, %v559_v32  ;;  %v545_v37 = vsel %vm481_vm8, %v449_v28, %v513_v33 }
  0xb6   :  { %v546_v38 = vsel %vm482_vm9, %v450_v31, %v514_v35  ;;  %v276_v39 = vpop.f32.mrf.mxu2 }
  0xb7   :  { %598 = vst [vmem:[%s975_s3 + $0x48] sm:$0xff] %v582_v36  ;;  %v575_v40 = vpack.c.bf16 %v546_v38, %v545_v37  ;;  %v465_v41 = vadd.f32 %v888_v57, %v276_v39  ;;  %v325_v42 = vpop.f32.mrf.mxu3 }
  0xb8   :  { %v466_v43 = vadd.f32 %v890_v58, %v325_v42  ;;  %v258_v44 = vpop.f32.mrf.mxu0 }
  0xb9   :  { %591 = vst [vmem:[%s975_s3 + $0x10] sm:$0xff] %v575_v40  ;;  %vm497_vm10 = vcmp.ge.f32.partialorder %v465_v41, 0.0  ;;  %v529_v45 = vmul.f32 0.1, %v465_v41  ;;  %v451_v46 = vadd.f32 %v888_v57, %v258_v44  ;;  %v307_v47 = vpop.f32.mrf.mxu1 }
  0xba   :  { %vm498_vm11 = vcmp.ge.f32.partialorder %v466_v43, 0.0  ;;  %v530_v48 = vmul.f32 0.1, %v466_v43  ;;  %v452_v49 = vadd.f32 %v890_v58, %v307_v47 }
  0xbb   :  { %v561_v50 = vsel %vm497_vm10, %v465_v41, %v529_v45  ;;  %vm483_vm12 = vcmp.ge.f32.partialorder %v451_v46, 0.0  ;;  %v515_v51 = vmul.f32 0.1, %v451_v46 }
  0xbc   :  { %v562_v52 = vsel %vm498_vm11, %v466_v43, %v530_v48  ;;  %vm484_vm13 = vcmp.ge.f32.partialorder %v452_v49, 0.0  ;;  %v516_v53 = vmul.f32 0.1, %v452_v49 }
  0xbd   :  { %v583_v54 = vpack.c.bf16 %v562_v52, %v561_v50  ;;  %v547_v55 = vsel %vm483_vm12, %v451_v46, %v515_v51 }
  0xbe   :  { %v548_v56 = vsel %vm484_vm13, %v452_v49, %v516_v53  ;;  %v278_v59 = vpop.f32.mrf.mxu2 }
  0xbf   :  { %599 = vst [vmem:[%s975_s3 + $0x50] sm:$0xff] %v583_v54  ;;  %v576_v60 = vpack.c.bf16 %v548_v56, %v547_v55  ;;  %v467_v61 = vadd.f32 %v888_v57, %v278_v59  ;;  %v327_v62 = vpop.f32.mrf.mxu3 }
  0xc0   :  { %v468_v63 = vadd.f32 %v890_v58, %v327_v62  ;;  %v261_v0 = vpop.f32.mrf.mxu0 }
  0xc1   :  { %592 = vst [vmem:[%s975_s3 + $0x18] sm:$0xff] %v576_v60  ;;  %vm499_vm14 = vcmp.ge.f32.partialorder %v467_v61, 0.0  ;;  %v531_v1 = vmul.f32 0.1, %v467_v61  ;;  %v453_v2 = vadd.f32 %v888_v57, %v261_v0  ;;  %v310_v3 = vpop.f32.mrf.mxu1 }
  0xc2   :  { %vm500_vm15 = vcmp.ge.f32.partialorder %v468_v63, 0.0  ;;  %v532_v4 = vmul.f32 0.1, %v468_v63  ;;  %v454_v5 = vadd.f32 %v890_v58, %v310_v3 }
  0xc3   :  { %v563_v6 = vsel %vm499_vm14, %v467_v61, %v531_v1  ;;  %vm485_vm0 = vcmp.ge.f32.partialorder %v453_v2, 0.0  ;;  %v517_v7 = vmul.f32 0.1, %v453_v2 }
  0xc4   :  { %v564_v8 = vsel %vm500_vm15, %v468_v63, %v532_v4  ;;  %vm486_vm1 = vcmp.ge.f32.partialorder %v454_v5, 0.0  ;;  %v518_v9 = vmul.f32 0.1, %v454_v5 }
  0xc5   :  { %v584_v10 = vpack.c.bf16 %v564_v8, %v563_v6  ;;  %v549_v11 = vsel %vm485_vm0, %v453_v2, %v517_v7 }
  0xc6   :  { %v550_v12 = vsel %vm486_vm1, %v454_v5, %v518_v9  ;;  %v281_v13 = vpop.f32.mrf.mxu2 }
  0xc7   :  { %600 = vst [vmem:[%s975_s3 + $0x58] sm:$0xff] %v584_v10  ;;  %v577_v14 = vpack.c.bf16 %v550_v12, %v549_v11  ;;  %v469_v15 = vadd.f32 %v888_v57, %v281_v13  ;;  %v330_v16 = vpop.f32.mrf.mxu3 }
  0xc8   :  { %v470_v17 = vadd.f32 %v890_v58, %v330_v16  ;;  %v263_v18 = vpop.f32.mrf.mxu0 }
  0xc9   :  { %593 = vst [vmem:[%s975_s3 + $0x20] sm:$0xff] %v577_v14  ;;  %vm501_vm2 = vcmp.ge.f32.partialorder %v469_v15, 0.0  ;;  %v533_v19 = vmul.f32 0.1, %v469_v15  ;;  %v455_v20 = vadd.f32 %v888_v57, %v263_v18  ;;  %v312_v21 = vpop.f32.mrf.mxu1 }
  0xca   :  { %vm502_vm3 = vcmp.ge.f32.partialorder %v470_v17, 0.0  ;;  %v534_v22 = vmul.f32 0.1, %v470_v17  ;;  %v456_v23 = vadd.f32 %v890_v58, %v312_v21 }
  0xcb   :  { %v565_v24 = vsel %vm501_vm2, %v469_v15, %v533_v19  ;;  %vm487_vm4 = vcmp.ge.f32.partialorder %v455_v20, 0.0  ;;  %v519_v25 = vmul.f32 0.1, %v455_v20 }
  0xcc   :  { %v566_v26 = vsel %vm502_vm3, %v470_v17, %v534_v22  ;;  %vm488_vm5 = vcmp.ge.f32.partialorder %v456_v23, 0.0  ;;  %v520_v27 = vmul.f32 0.1, %v456_v23 }
  0xcd   :  { %v585_v28 = vpack.c.bf16 %v566_v26, %v565_v24  ;;  %v551_v29 = vsel %vm487_vm4, %v455_v20, %v519_v25 }
  0xce   :  { %v552_v30 = vsel %vm488_vm5, %v456_v23, %v520_v27  ;;  %v283_v31 = vpop.f32.mrf.mxu2 }
  0xcf   :  { %601 = vst [vmem:[%s975_s3 + $0x60] sm:$0xff] %v585_v28  ;;  %v578_v32 = vpack.c.bf16 %v552_v30, %v551_v29  ;;  %v471_v33 = vadd.f32 %v888_v57, %v283_v31  ;;  %v332_v34 = vpop.f32.mrf.mxu3 }
  0xd0   :  { %v472_v35 = vadd.f32 %v890_v58, %v332_v34  ;;  %v266_v36 = vpop.f32.mrf.mxu0 }
  0xd1   :  { %594 = vst [vmem:[%s975_s3 + $0x28] sm:$0xff] %v578_v32  ;;  %vm503_vm6 = vcmp.ge.f32.partialorder %v471_v33, 0.0  ;;  %v535_v37 = vmul.f32 0.1, %v471_v33  ;;  %v457_v38 = vadd.f32 %v888_v57, %v266_v36  ;;  %v315_v39 = vpop.f32.mrf.mxu1 }
  0xd2   :  { %vm504_vm7 = vcmp.ge.f32.partialorder %v472_v35, 0.0  ;;  %v536_v40 = vmul.f32 0.1, %v472_v35  ;;  %v458_v41 = vadd.f32 %v890_v58, %v315_v39 }
  0xd3   :  { %v567_v42 = vsel %vm503_vm6, %v471_v33, %v535_v37  ;;  %vm489_vm8 = vcmp.ge.f32.partialorder %v457_v38, 0.0  ;;  %v521_v43 = vmul.f32 0.1, %v457_v38 }
  0xd4   :  { %v568_v44 = vsel %vm504_vm7, %v472_v35, %v536_v40  ;;  %vm490_vm9 = vcmp.ge.f32.partialorder %v458_v41, 0.0  ;;  %v522_v45 = vmul.f32 0.1, %v458_v41 }
  0xd5   :  { %v586_v46 = vpack.c.bf16 %v568_v44, %v567_v42  ;;  %v553_v47 = vsel %vm489_vm8, %v457_v38, %v521_v43 }
  0xd6   :  { %v554_v48 = vsel %vm490_vm9, %v458_v41, %v522_v45  ;;  %v286_v49 = vpop.f32.mrf.mxu2 }
  0xd7   :  { %602 = vst [vmem:[%s975_s3 + $0x68] sm:$0xff] %v586_v46  ;;  %v579_v50 = vpack.c.bf16 %v554_v48, %v553_v47  ;;  %v473_v51 = vadd.f32 %v888_v57, %v286_v49  ;;  %v335_v52 = vpop.f32.mrf.mxu3 }
  0xd8   :  { %v474_v53 = vadd.f32 %v890_v58, %v335_v52  ;;  %v268_v54 = vpop.f32.mrf.mxu0 }
  0xd9   :  { %595 = vst [vmem:[%s975_s3 + $0x30] sm:$0xff] %v579_v50  ;;  %vm505_vm10 = vcmp.ge.f32.partialorder %v473_v51, 0.0  ;;  %v537_v55 = vmul.f32 0.1, %v473_v51  ;;  %v459_v56 = vadd.f32 %v888_v57, %v268_v54  ;;  %v317_v59 = vpop.f32.mrf.mxu1 }
  0xda   :  { %vm506_vm11 = vcmp.ge.f32.partialorder %v474_v53, 0.0  ;;  %v538_v60 = vmul.f32 0.1, %v474_v53  ;;  %v460_v61 = vadd.f32 %v890_v58, %v317_v59 }
  0xdb   :  { %v569_v62 = vsel %vm505_vm10, %v473_v51, %v537_v55  ;;  %vm491_vm12 = vcmp.ge.f32.partialorder %v459_v56, 0.0  ;;  %v523_v63 = vmul.f32 0.1, %v459_v56 }
  0xdc   :  { %v570_v0 = vsel %vm506_vm11, %v474_v53, %v538_v60  ;;  %vm492_vm13 = vcmp.ge.f32.partialorder %v460_v61, 0.0  ;;  %v524_v1 = vmul.f32 0.1, %v460_v61 }
  0xdd   :  { %v587_v2 = vpack.c.bf16 %v570_v0, %v569_v62  ;;  %v555_v3 = vsel %vm491_vm12, %v459_v56, %v523_v63 }
  0xde   :  { %v556_v4 = vsel %vm492_vm13, %v460_v61, %v524_v1  ;;  %v288_v5 = vpop.f32.mrf.mxu2 }
  0xdf   :  { %603 = vst [vmem:[%s975_s3 + $0x70] sm:$0xff] %v587_v2  ;;  %v580_v6 = vpack.c.bf16 %v556_v4, %v555_v3  ;;  %v475_v7 = vadd.f32 %v888_v57, %v288_v5  ;;  %v337_v8 = vpop.f32.mrf.mxu3 }
  0xe0   :  { %v476_v9 = vadd.f32 %v890_v58, %v337_v8 }
  0xe1   :  { %596 = vst [vmem:[%s975_s3 + $0x38] sm:$0xff] %v580_v6  ;;  %vm507_vm14 = vcmp.ge.f32.partialorder %v475_v7, 0.0  ;;  %v539_v10 = vmul.f32 0.1, %v475_v7 }
  0xe2   :  { %vm508_vm15 = vcmp.ge.f32.partialorder %v476_v9, 0.0  ;;  %v540_v11 = vmul.f32 0.1, %v476_v9 }
  0xe3   :  { %v571_v12 = vsel %vm507_vm14, %v475_v7, %v539_v10 }
  0xe4   :  { %v572_v13 = vsel %vm508_vm15, %v476_v9, %v540_v11 }
  0xe5   :  { %v588_v14 = vpack.c.bf16 %v572_v13, %v571_v12 }
  0xe7   :  { %604 = vst [vmem:[%s975_s3 + $0x78] sm:$0xff] %v588_v14 }

// kernel: csp_darknet_block.4
= control target key start
LH: loop header
LB: loop body
LE: loop exit
PB: predicated region body
PF: predicated region fallthrough
CT: control target
= control target key end

     0   :  { %s1663_s12 = smov 0   ;;  %s1968_s0 = inlined_call_operand.vmem [shape: bf16[8,9,9,4], index: 0, kind: input, shape index: {}]   ;;  %s1969_s1 = inlined_call_operand.vmem [shape: bf16[9,4,128], index: 1, kind: input, shape index: {}]   ;;  %s1970_s2 = inlined_call_operand.vmem [shape: f32[1,128], index: 2, kind: input, shape index: {}]   ;;  %s1971_s3 = inlined_call_operand.vmem [shape: bf16[2,8,8,128], index: 3, kind: output, shape index: {}]  }
   0x1 LB: > { %s1669_s13 = sadd.s32 4294967295, %s1641_s12   ;;  %p1355_p0 = scmp.ge.s32.totalorder %s1641_s12, 1  ;;  %s1641_s12 = sphi %s1663_s12, %s13_s12  }
   0x2   : > { %p139_p1 = scmp.lt.s32.totalorder %s1641_s12, 3 }
   0x4   : > { %p140_p2 = pnand %p1355_p0, %p139_p1 }
   0x5   : > { %s1356_s16 = sshll.u32 (!%p140_p2), %s1669_s13, 2  ;;  %p171_p4 = scmp.lt.s32.totalorder (!%p140_p2), %s1669_s13, 1 }
   0x6   : > { %143 = sbr.rel (%p140_p2) target bundleno = 302 (0x12e), region = 32  ;;  %p165_p3 = scmp.lt.s32.totalorder (!%p140_p2), %s1356_s16, 7 }
   0xb   : > { %v1368_v0 = vld [vmem:[%s1969_s1 + $0x2] sm:$0x3]  ;;  %vm230_vm0 = vcmask 1041408   ;;  %v1409_v2 = vld [vmem:[%s1969_s1 + $0x4] sm:$0x3]  ;;  %s1975_s16 = smov (!%p165_p3, %s1356_s16), 7 }
   0xc   : > { %v232_v1 = vsel %vm230_vm0, %v1368_v0, 0  ;;  %v1422_v3 = vld [vmem:[%s1969_s1 + $0x6] sm:$0x3]  ;;  %v485_v4 = vsel %vm230_vm0, %v1409_v2, 0  ;;  %v185_v6 = vld [vmem:[%s1969_s1] sm:$0x3] }
   0xd   : > { %1622 = vmatpush.bf16.msra.mxu1 %v232_v1  ;;  %1623 = vmatpush.bf16.msra.mxu2 %v232_v1  ;;  %v568_v5 = vsel %vm230_vm0, %v1422_v3, 0  ;;  %v1451_v7 = vld [vmem:[%s1969_s1 + $0x8] sm:$0x3]  ;;  %v296_v8 = vsel %vm230_vm0, %v185_v6, 0  ;;  %s1625_s25 = smul.u32 72, %s1975_s16  ;;  %vm217_vm1 = vcmask 31744  }
   0xe   : > { %1624 = vmatpush.bf16.msra.mxu3 %v232_v1  ;;  %241 = vmatpush.bf16.msra.mxu0 %v232_v1  ;;  %v651_v9 = vsel %vm230_vm0, %v1451_v7, 0  ;;  %v1501_v10 = vld [vmem:[%s1969_s1 + $0xc] sm:$0x3]  ;;  %v1530_v11 = vld [vmem:[%s1969_s1 + $0xe] sm:$0x3]  ;;  %s1977_s13 = smov (!%p171_p4, %s1669_s13), 1 }
   0xf   : > { %s1700_s30 = scalar_lea.vmem %s1968_s0, %s1625_s25  ;;  %v1488_v12 = vld [vmem:[%s1969_s1 + $0xa] sm:$0x3]  ;;  %v1567_v13 = vld [vmem:[%s1969_s1 + $0x10] sm:$0x3]  ;;  %v928_v25 = vsel %vm230_vm0, %v1501_v10, 0  ;;  %v1011_v26 = vsel %vm230_vm0, %v1530_v11, 0 }
  0x10   : > { %v1375_v14 = vld [vmem:[%s1700_s30 + $0x58] sm:$0xf]  ;;  %v1580_v15 = vld [vmem:[%s1700_s30 + $0x5c] sm:$0xf0]  ;;  %v1379_v16 = vld [vmem:[%s1700_s30 + $0x68] sm:$0xf] }
  0x11   : > { %494 = vmatpush.bf16.msrb.mxu2 %v485_v4  ;;  %305 = vmatpush.bf16.msrb.mxu1 %v296_v8  ;;  %v1376_v17 = vor.u32 %v1580_v15, %v1375_v14  ;;  %v1581_v18 = vld [vmem:[%s1700_s30 + $0x6c] sm:$0xf0]  ;;  %v1383_v19 = vld [vmem:[%s1700_s30 + $0x78] sm:$0xf]  ;;  %v1582_v20 = vld [vmem:[%s1700_s30 + $0x7c] sm:$0xf0] }
  0x12   : > { %577 = vmatpush.bf16.msrb.mxu3 %v568_v5  ;;  %660 = vmatpush.bf16.msrb.mxu0 %v651_v9  ;;  %v1380_v21 = vor.u32 %v1581_v18, %v1379_v16  ;;  %v1384_v22 = vor.u32 %v1582_v20, %v1383_v19  ;;  %v1371_v23 = vld [vmem:[%s1700_s30 + $0x48] sm:$0xf]  ;;  %v1579_v24 = vld [vmem:[%s1700_s30 + $0x4c] sm:$0xf0]  ;;  %v327_v28 = vld [vmem:[%s1700_s30] sm:$0xf] }
  0x13   : > { %1386 = vmatmul.msk.bf16.vlgmr.msra.gmra.mxu1 %vm217_vm1, %v1376_v17  ;;  %v1372_v27 = vor.u32 %v1579_v24, %v1371_v23  ;;  %v328_v29 = vld [vmem:[%s1700_s30 + $0x4] sm:$0x1]  ;;  %v845_v30 = vsel %vm230_vm0, %v1488_v12, 0  ;;  %v1205_v31 = vsel %vm230_vm0, %v1567_v13, 0  ;;  %v329_v32 = vld [vmem:[%s1700_s30 + $0x8] sm:$0xf] }
  0x14   : > { %1387 = vmatmul.msk.bf16.vlgmr.msra.gmra.mxu2 %vm217_vm1, %v1380_v21  ;;  %1388 = vmatmul.msk.bf16.vlgmr.msra.gmra.mxu3 %vm217_vm1, %v1384_v22  ;;  %v330_v33 = vld [vmem:[%s1700_s30 + $0xc] sm:$0x1]  ;;  %v347_v34 = vshrl.u32 %v327_v28, 16  ;;  %v350_v35 = vshll.u32 %v327_v28, 16  ;;  %v356_v36 = vshll.u32 %v328_v29, 16  ;;  %v361_v37 = vshrl.u32 %v329_v32, 16 }
  0x15   : > { %1385 = vmatmul.msk.bf16.vlgmr.msra.gmra.mxu0 %vm217_vm1, %v1372_v27  ;;  %v364_v38 = vshll.u32 %v329_v32, 16  ;;  %v370_v39 = vshll.u32 %v330_v33, 16  ;;  %937 = vmatpush.bf16.msra.mxu2 %v928_v25  ;;  %vm343_vm2 = vsmask.f32 3328  ;;  %vm344_vm3 = vsmask.f32 7440 }
  0x16   : > { %v349_v40 = vrot.slane %v347_v34, 4  ;;  %v352_v41 = vrot.slane %v350_v35, 5  ;;  %1020 = vmatpush.bf16.msra.mxu3 %v1011_v26  ;;  %854 = vmatpush.bf16.msra.mxu1 %v845_v30  ;;  %v363_v42 = vrot.slane %v361_v37, 4  ;;  %v358_v45 = vrot.slane %v356_v36, 5  ;;  %v331_v46 = vld [vmem:[%s1700_s30 + $0x10] sm:$0xf]  ;;  %vm1732_vm4 = vmor %vm343_vm2, %vm344_vm3 }
  0x17   : > { %v366_v43 = vrot.slane %v364_v38, 5  ;;  %1214 = vmatpush.bf16.msra.mxu0 %v1205_v31  ;;  %v372_v49 = vrot.slane %v370_v39, 5  ;;  %v333_v50 = vld [vmem:[%s1700_s30 + $0x18] sm:$0xf]  ;;  %v1391_v51 = vld [vmem:[%s1700_s30] sm:$0xf] }
  0x18   : > { %v353_v44 = vor.u32 %v352_v41, %v349_v40  ;;  %v375_v53 = vshrl.u32 %v331_v46, 16  ;;  %v378_v54 = vshll.u32 %v331_v46, 16  ;;  %v1575_v55 = vld [vmem:[%s1700_s30 + $0x4] sm:$0xf0]  ;;  %v389_v57 = vshrl.u32 %v333_v50, 16  ;;  %s1574_s14 = sshll.u32 %s1977_s13, 5 }
  0x19   : > { %v367_v48 = vor.u32 %v366_v43, %v363_v42  ;;  %v392_v58 = vshll.u32 %v333_v50, 16  ;;  %v1425_v60 = vld [vmem:[%s1700_s30 + $0x90] sm:$0xf]  ;;  %v1583_v61 = vld [vmem:[%s1700_s30 + $0x94] sm:$0xf0]  ;;  %v1392_v9 = vor.u32 %v1575_v55, %v1391_v51  ;;  %s1940_s17 = scalar_lea.vmem %s1971_s3, %s1574_s14 }
  0x1a   : > { %v354_v52 = vrot.slane %v353_v44, 4  ;;  %v377_v62 = vrot.slane %v375_v53, 4  ;;  %v380_v63 = vrot.slane %v378_v54, 5  ;;  %v1454_v2 = vld [vmem:[%s1700_s30 + $0xd8] sm:$0xf]  ;;  %v391_v4 = vrot.slane %v389_v57, 4 }
  0x1b   : > { %v368_v56 = vrot.slane %v367_v48, 4  ;;  %v1587_v3 = vld [vmem:[%s1700_s30 + $0xdc] sm:$0xf0]  ;;  %v394_v5 = vrot.slane %v392_v58, 5  ;;  %v332_v7 = vld [vmem:[%s1700_s30 + $0x14] sm:$0x1]  ;;  %v1426_v11 = vor.u32 %v1583_v61, %v1425_v60 }
  0x1c   : > { %v359_v59 = vsel %vm1732_vm4, %v354_v52, %v358_v45  ;;  %v334_v8 = vld [vmem:[%s1700_s30 + $0x1c] sm:$0x1]  ;;  %v1455_v12 = vor.u32 %v1587_v3, %v1454_v2  ;;  %v381_v13 = vor.u32 %v380_v63, %v377_v62  ;;  %v384_v14 = vshll.u32 %v332_v7, 16  ;;  %v335_v21 = vld [vmem:[%s1700_s30 + $0x20] sm:$0xf] }
  0x1d   : > { %v373_v0 = vsel %vm1732_vm4, %v368_v56, %v372_v49  ;;  %v460_v1 = vunpack.c.l.b16 %v359_v59  ;;  %v395_v15 = vor.u32 %v394_v5, %v391_v4  ;;  %v398_v16 = vshll.u32 %v334_v8, 16  ;;  %v337_v22 = vld [vmem:[%s1700_s30 + $0x28] sm:$0xf]  ;;  %v1395_v29 = vld [vmem:[%s1700_s30 + $0x10] sm:$0xf] }
  0x1e   : > { %v461_v6 = vunpack.c.l.b16 %v373_v0  ;;  %v382_v17 = vrot.slane %v381_v13, 4  ;;  %v386_v18 = vrot.slane %v384_v14, 5  ;;  %v403_v23 = vshrl.u32 %v335_v21, 16  ;;  %v1576_v30 = vld [vmem:[%s1700_s30 + $0x14] sm:$0xf0] }
  0x1f   : > { %v396_v19 = vrot.slane %v395_v15, 4  ;;  %v400_v20 = vrot.slane %v398_v16, 5  ;;  %v406_v24 = vshll.u32 %v335_v21, 16  ;;  %v417_v27 = vshrl.u32 %v337_v22, 16  ;;  %v1429_v33 = vld [vmem:[%s1700_s30 + $0xa0] sm:$0xf] }
  0x20   : > { %v468_v10 = vpack.c.b16 %v461_v6, %v460_v1  ;;  %v387_v25 = vsel %vm1732_vm4, %v382_v17, %v386_v18  ;;  %v420_v28 = vshll.u32 %v337_v22, 16  ;;  %v1584_v34 = vld [vmem:[%s1700_s30 + $0xa4] sm:$0xf0]  ;;  %v1588_v36 = vld [vmem:[%s1700_s30 + $0xec] sm:$0xf0]  ;;  %v405_v37 = vrot.slane %v403_v23, 4 }
  0x21   : > { %v401_v26 = vsel %vm1732_vm4, %v396_v19, %v400_v20  ;;  %v462_v31 = vunpack.c.l.b16 %v387_v25  ;;  %v1458_v35 = vld [vmem:[%s1700_s30 + $0xe8] sm:$0xf]  ;;  %v408_v38 = vrot.slane %v406_v24, 5  ;;  %v419_v39 = vrot.slane %v417_v27, 4  ;;  %v336_v41 = vld [vmem:[%s1700_s30 + $0x24] sm:$0x1] }
  0x22   : > { %v463_v32 = vunpack.c.l.b16 %v401_v26  ;;  %v422_v40 = vrot.slane %v420_v28, 5  ;;  %v338_v42 = vld [vmem:[%s1700_s30 + $0x2c] sm:$0x1]  ;;  %v1396_v43 = vor.u32 %v1576_v30, %v1395_v29  ;;  %v1430_v45 = vor.u32 %v1584_v34, %v1429_v33  ;;  %v339_v52 = vld [vmem:[%s1700_s30 + $0x30] sm:$0xf] }
  0x23   : > { %1405 = vmatmul.msk.bf16.vlgmr.msrb.gmra.mxu1 %vm217_vm1, %v1392_v9  ;;  %v1459_v46 = vor.u32 %v1588_v36, %v1458_v35  ;;  %v409_v48 = vor.u32 %v408_v38, %v405_v37  ;;  %v412_v49 = vshll.u32 %v336_v41, 16  ;;  %v426_v51 = vshll.u32 %v338_v42, 16  ;;  %v341_v53 = vld [vmem:[%s1700_s30 + $0x38] sm:$0xf]  ;;  %v340_v4 = vld [vmem:[%s1700_s30 + $0x34] sm:$0x1] }
  0x24   : > { %1410 = vmatmul.msk.bf16.vlgmr.msrb.gmra.mxu2 %vm217_vm1, %v468_v10  ;;  %1439 = vmatmul.msk.bf16.vlgmr.msrb.gmra.mxu3 %vm217_vm1, %v1426_v11  ;;  %v469_v44 = vpack.c.b16 %v463_v32, %v462_v31  ;;  %v423_v50 = vor.u32 %v422_v40, %v419_v39  ;;  %v431_v58 = vshrl.u32 %v339_v52, 16  ;;  %v434_v59 = vshll.u32 %v339_v52, 16  ;;  %v342_v5 = vld [vmem:[%s1700_s30 + $0x3c] sm:$0x1]  ;;  %v1399_v6 = vld [vmem:[%s1700_s30 + $0x20] sm:$0xf] }
  0x25   : > { %1468 = vmatmul.msk.bf16.vlgmr.msrb.gmra.mxu0 %vm217_vm1, %v1455_v12  ;;  %v410_v54 = vrot.slane %v409_v48, 4  ;;  %v414_v55 = vrot.slane %v412_v49, 5  ;;  %v428_v57 = vrot.slane %v426_v51, 5  ;;  %v445_v60 = vshrl.u32 %v341_v53, 16  ;;  %v1577_v7 = vld [vmem:[%s1700_s30 + $0x24] sm:$0xf0] }
  0x26   : > { %v424_v56 = vrot.slane %v423_v50, 4  ;;  %v448_v61 = vshll.u32 %v341_v53, 16  ;;  %v433_v0 = vrot.slane %v431_v58, 4  ;;  %v436_v1 = vrot.slane %v434_v59, 5  ;;  %v1433_v10 = vld [vmem:[%s1700_s30 + $0xb0] sm:$0xf] }
  0x27   : > { %v415_v62 = vsel %vm1732_vm4, %v410_v54, %v414_v55  ;;  %v447_v2 = vrot.slane %v445_v60, 4  ;;  %v1585_v11 = vld [vmem:[%s1700_s30 + $0xb4] sm:$0xf0]  ;;  %v1589_v13 = vld [vmem:[%s1700_s30 + $0xfc] sm:$0xf0]  ;;  %v440_v15 = vshll.u32 %v340_v4, 16  ;;  %v1400_v18 = vor.u32 %v1577_v7, %v1399_v6 }
  0x28   : > { %v429_v63 = vsel %vm1732_vm4, %v424_v56, %v428_v57  ;;  %v450_v3 = vrot.slane %v448_v61, 5  ;;  %v464_v8 = vunpack.c.l.b16 %v415_v62  ;;  %v1462_v12 = vld [vmem:[%s1700_s30 + $0xf8] sm:$0xf]  ;;  %v437_v14 = vor.u32 %v436_v1, %v433_v0  ;;  %v1472_v26 = vld [vmem:[%s1700_s30 + $0x90] sm:$0xf] }
  0x29   : > { %v465_v9 = vunpack.c.l.b16 %v429_v63  ;;  %v454_v17 = vshll.u32 %v342_v5, 16  ;;  %v1434_v20 = vor.u32 %v1585_v11, %v1433_v10  ;;  %v1463_v21 = vor.u32 %v1589_v13, %v1462_v12  ;;  %v1474_v27 = vld [vmem:[%s1700_s30 + $0x98] sm:$0xf]  ;;  %v1551_v28 = vld [vmem:[%s1700_s30 + $0x8] sm:$0xf] }
  0x2a   : > { %v451_v16 = vor.u32 %v450_v3, %v447_v2  ;;  %v438_v22 = vrot.slane %v437_v14, 4  ;;  %v442_v23 = vrot.slane %v440_v15, 5  ;;  %v1553_v29 = vld [vmem:[%s1700_s30 + $0x10] sm:$0xf]  ;;  %v707_v32 = vshrl.u32 %v1472_v26, 16 }
  0x2b   : > { %v470_v19 = vpack.c.b16 %v465_v9, %v464_v8  ;;  %v456_v25 = vrot.slane %v454_v17, 5  ;;  %v710_v33 = vshll.u32 %v1472_v26, 16  ;;  %v721_v34 = vshrl.u32 %v1474_v27, 16  ;;  %v1403_v40 = vld [vmem:[%s1700_s30 + $0x30] sm:$0xf] }
  0x2c   : > { %v452_v24 = vrot.slane %v451_v16, 4  ;;  %v443_v30 = vsel %vm1732_vm4, %v438_v22, %v442_v23  ;;  %v724_v35 = vshll.u32 %v1474_v27, 16  ;;  %v1067_v36 = vshrl.u32 %v1551_v28, 16  ;;  %v1578_v41 = vld [vmem:[%s1700_s30 + $0x34] sm:$0xf0] }
  0x2d   : > { %v1070_v37 = vshll.u32 %v1551_v28, 16  ;;  %v1081_v38 = vshrl.u32 %v1553_v29, 16  ;;  %v1084_v39 = vshll.u32 %v1553_v29, 16  ;;  %v466_v42 = vunpack.c.l.b16 %v443_v30  ;;  %v1475_v52 = vld [vmem:[%s1700_s30 + $0x9c] sm:$0x1] }
  0x2e   : > { %v457_v31 = vsel %vm1732_vm4, %v452_v24, %v456_v25  ;;  %v709_v48 = vrot.slane %v707_v32, 4  ;;  %v712_v49 = vrot.slane %v710_v33, 5  ;;  %v723_v50 = vrot.slane %v721_v34, 4  ;;  %v1552_v57 = vld [vmem:[%s1700_s30 + $0xc] sm:$0x1] }
  0x2f   : > { %v726_v51 = vrot.slane %v724_v35, 5  ;;  %v1069_v53 = vrot.slane %v1067_v36, 4  ;;  %v1072_v54 = vrot.slane %v1070_v37, 5  ;;  %v1083_v55 = vrot.slane %v1081_v38, 4  ;;  %v1554_v58 = vld [vmem:[%s1700_s30 + $0x14] sm:$0x1] }
  0x30   : > { %v1086_v56 = vrot.slane %v1084_v39, 5  ;;  %v1404_v59 = vor.u32 %v1578_v41, %v1403_v40  ;;  %v1466_v62 = vld [vmem:[%s1700_s30 + $0x108] sm:$0xf]  ;;  %v1590_v63 = vld [vmem:[%s1700_s30 + $0x10c] sm:$0xf0]  ;;  %v713_v0 = vor.u32 %v712_v49, %v709_v48  ;;  %v730_v3 = vshll.u32 %v1475_v52, 16 }
  0x31   : > { %v727_v2 = vor.u32 %v726_v51, %v723_v50  ;;  %v1073_v4 = vor.u32 %v1072_v54, %v1069_v53  ;;  %v1076_v5 = vshll.u32 %v1552_v57, 16  ;;  %v1090_v7 = vshll.u32 %v1554_v58, 16  ;;  %v1476_v9 = vld [vmem:[%s1700_s30 + $0xa0] sm:$0xf]  ;;  %v1478_v10 = vld [vmem:[%s1700_s30 + $0xa8] sm:$0xf] }
  0x32   : > { %v1087_v6 = vor.u32 %v1086_v56, %v1083_v55  ;;  %v1467_v8 = vor.u32 %v1590_v63, %v1466_v62  ;;  %v714_v11 = vrot.slane %v713_v0, 4  ;;  %v732_v14 = vrot.slane %v730_v3, 5  ;;  %v1555_v23 = vld [vmem:[%s1700_s30 + $0x18] sm:$0xf]  ;;  %v1557_v24 = vld [vmem:[%s1700_s30 + $0x20] sm:$0xf] }
  0x33   : > { %1406 = vmatmul.msk.bf16.gmra.mxu1 %vm217_vm1, %v1396_v43  ;;  %v467_v43 = vunpack.c.l.b16 %v457_v31  ;;  %v728_v13 = vrot.slane %v727_v2, 4  ;;  %v1074_v15 = vrot.slane %v1073_v4, 4  ;;  %v1078_v16 = vrot.slane %v1076_v5, 5  ;;  %v1477_v29 = vld [vmem:[%s1700_s30 + $0xa4] sm:$0x1] }
  0x34   : > { %1411 = vmatmul.msk.bf16.gmra.mxu2 %vm217_vm1, %v469_v44  ;;  %1440 = vmatmul.msk.bf16.gmra.mxu3 %vm217_vm1, %v1430_v45  ;;  %v1437_v44 = vld [vmem:[%s1700_s30 + $0xc0] sm:$0xf]  ;;  %v1586_v45 = vld [vmem:[%s1700_s30 + $0xc4] sm:$0xf0]  ;;  %v1088_v17 = vrot.slane %v1087_v6, 4  ;;  %v752_v22 = vshll.u32 %v1478_v10, 16 }
  0x35   : > { %1469 = vmatmul.msk.bf16.gmra.mxu0 %vm217_vm1, %v1459_v46  ;;  %v1473_v46 = vld [vmem:[%s1700_s30 + $0x94] sm:$0x1]  ;;  %v471_v60 = vpack.c.b16 %v467_v43, %v466_v42  ;;  %v1438_v61 = vor.u32 %v1586_v45, %v1437_v44  ;;  %v733_v26 = vsel %vm1732_vm4, %v728_v13, %v732_v14  ;;  %v1079_v27 = vsel %vm1732_vm4, %v1074_v15, %v1078_v16  ;;  %v1479_v34 = vld [vmem:[%s1700_s30 + $0xac] sm:$0x1]  ;;  %v1504_v41 = vld [vmem:[%s1700_s30 + $0x8] sm:$0xf] }
  0x36   : > { %v716_v1 = vshll.u32 %v1473_v46, 16  ;;  %v754_v33 = vrot.slane %v752_v22, 5  ;;  %v1095_v35 = vshrl.u32 %v1555_v23, 16  ;;  %v1098_v36 = vshll.u32 %v1555_v23, 16  ;;  %v1591_v42 = vld [vmem:[%s1700_s30 + $0xc] sm:$0xf0] }
  0x37   : > { %v1109_v37 = vshrl.u32 %v1557_v24, 16  ;;  %v1112_v38 = vshll.u32 %v1557_v24, 16  ;;  %v821_v40 = vunpack.c.l.b16 %v733_v26  ;;  %v1180_v43 = vunpack.c.l.b16 %v1079_v27  ;;  %v1533_v45 = vld [vmem:[%s1700_s30 + $0x50] sm:$0xf]  ;;  %v1595_v46 = vld [vmem:[%s1700_s30 + $0x54] sm:$0xf0] }
  0x38   : > { %v718_v12 = vrot.slane %v716_v1, 5  ;;  %v744_v49 = vshll.u32 %v1477_v29, 16  ;;  %v758_v51 = vshll.u32 %v1479_v34, 16  ;;  %v1097_v52 = vrot.slane %v1095_v35, 4  ;;  %v1556_v57 = vld [vmem:[%s1700_s30 + $0x1c] sm:$0x1] }
  0x39   : > { %v1100_v53 = vrot.slane %v1098_v36, 5  ;;  %v1111_v54 = vrot.slane %v1109_v37, 4  ;;  %v1114_v55 = vrot.slane %v1112_v38, 5  ;;  %v1558_v58 = vld [vmem:[%s1700_s30 + $0x24] sm:$0x1]  ;;  %v1104_v3 = vshll.u32 %v1556_v57, 16 }
  0x3a   : > { %v719_v25 = vsel %vm1732_vm4, %v714_v11, %v718_v12  ;;  %v746_v63 = vrot.slane %v744_v49, 5  ;;  %v760_v1 = vrot.slane %v758_v51, 5  ;;  %v1118_v5 = vshll.u32 %v1558_v58, 16  ;;  %v1480_v6 = vld [vmem:[%s1700_s30 + $0xb0] sm:$0xf] }
  0x3b   : > { %v820_v39 = vunpack.c.l.b16 %v719_v25  ;;  %v1101_v2 = vor.u32 %v1100_v53, %v1097_v52  ;;  %v1115_v4 = vor.u32 %v1114_v55, %v1111_v54  ;;  %v1106_v12 = vrot.slane %v1104_v3, 5  ;;  %v1561_v15 = vld [vmem:[%s1700_s30 + $0x30] sm:$0xf]  ;;  %v1592_v29 = vld [vmem:[%s1700_s30 + $0x1c] sm:$0xf0] }
  0x3c   : > { %v1120_v14 = vrot.slane %v1118_v5, 5  ;;  %v763_v16 = vshrl.u32 %v1480_v6, 16  ;;  %v1137_v22 = vshrl.u32 %v1561_v15, 16  ;;  %v1140_v23 = vshll.u32 %v1561_v15, 16  ;;  %v1481_v35 = vld [vmem:[%s1700_s30 + $0xb4] sm:$0x1] }
  0x3d   : > { %v828_v56 = vpack.c.b16 %v821_v40, %v820_v39  ;;  %v1102_v11 = vrot.slane %v1101_v2, 4  ;;  %v1116_v13 = vrot.slane %v1115_v4, 4  ;;  %v1483_v36 = vld [vmem:[%s1700_s30 + $0xbc] sm:$0x1]  ;;  %v1596_v39 = vld [vmem:[%s1700_s30 + $0x64] sm:$0xf0] }
  0x3e   : > { %v772_v49 = vshll.u32 %v1481_v35, 16  ;;  %v786_v51 = vshll.u32 %v1483_v36, 16  ;;  %v1484_v3 = vld [vmem:[%s1700_s30 + $0xc0] sm:$0xf]  ;;  %v1486_v4 = vld [vmem:[%s1700_s30 + $0xc8] sm:$0xf] }
  0x3f   : > { %v1107_v26 = vsel %vm1732_vm4, %v1102_v11, %v1106_v12  ;;  %v1121_v27 = vsel %vm1732_vm4, %v1116_v13, %v1120_v14  ;;  %v805_v11 = vshrl.u32 %v1486_v4, 16  ;;  %v808_v12 = vshll.u32 %v1486_v4, 16  ;;  %v1545_v4 = vld [vmem:[%s1700_s30 + $0x80] sm:$0xf] }
  0x40   : > { %v1182_v40 = vunpack.c.l.b16 %v1107_v26 }
  0x43   : > { %1407 = vmatmul.msk.bf16.gmra.mxu1 %vm217_vm1, %v1400_v18  ;;  %v1092_v18 = vrot.slane %v1090_v7, 5  ;;  %v1482_v7 = vld [vmem:[%s1700_s30 + $0xb8] sm:$0xf] }
  0x44   : > { %1412 = vmatmul.msk.bf16.gmra.mxu2 %vm217_vm1, %v470_v19  ;;  %1441 = vmatmul.msk.bf16.gmra.mxu3 %vm217_vm1, %v1434_v20  ;;  %v735_v19 = vshrl.u32 %v1476_v9, 16  ;;  %v738_v20 = vshll.u32 %v1476_v9, 16 }
  0x45   : > { %1470 = vmatmul.msk.bf16.gmra.mxu0 %vm217_vm1, %v1463_v21  ;;  %v749_v21 = vshrl.u32 %v1478_v10, 16  ;;  %v1093_v28 = vsel %vm1732_vm4, %v1088_v17, %v1092_v18  ;;  %v1559_v10 = vld [vmem:[%s1700_s30 + $0x28] sm:$0xf]  ;;  %v766_v17 = vshll.u32 %v1480_v6, 16  ;;  %v777_v18 = vshrl.u32 %v1482_v7, 16 }
  0x46   : > { %v737_v30 = vrot.slane %v735_v19, 4  ;;  %v740_v31 = vrot.slane %v738_v20, 5  ;;  %v1181_v44 = vunpack.c.l.b16 %v1093_v28  ;;  %v780_v19 = vshll.u32 %v1482_v7, 16  ;;  %v1508_v28 = vld [vmem:[%s1700_s30 + $0x18] sm:$0xf] }
  0x47   : > { %v751_v32 = vrot.slane %v749_v21, 4  ;;  %v1123_v20 = vshrl.u32 %v1559_v10, 16  ;;  %v1126_v21 = vshll.u32 %v1559_v10, 16  ;;  %v1509_v52 = vor.u32 %v1592_v29, %v1508_v28  ;;  %v1563_v7 = vld [vmem:[%s1700_s30 + $0x38] sm:$0xf] }
  0x48   : > { %v741_v48 = vor.u32 %v740_v31, %v737_v30  ;;  %v1537_v30 = vld [vmem:[%s1700_s30 + $0x60] sm:$0xf]  ;;  %v765_v31 = vrot.slane %v763_v16, 4  ;;  %v782_v34 = vrot.slane %v780_v19, 5  ;;  %v794_v10 = vshll.u32 %v1484_v3, 16 }
  0x49   : > { %v755_v50 = vor.u32 %v754_v33, %v751_v32  ;;  %v768_v32 = vrot.slane %v766_v17, 5  ;;  %v779_v33 = vrot.slane %v777_v18, 4  ;;  %v1125_v37 = vrot.slane %v1123_v20, 4 }
  0x4a   : > { %v742_v62 = vrot.slane %v741_v48, 4  ;;  %v1128_v38 = vrot.slane %v1126_v21, 5  ;;  %v1538_v53 = vor.u32 %v1596_v39, %v1537_v30  ;;  %v1151_v15 = vshrl.u32 %v1563_v7, 16  ;;  %v1512_v21 = vld [vmem:[%s1700_s30 + $0x28] sm:$0xf] }
  0x4b   : > { %v756_v0 = vrot.slane %v755_v50, 4  ;;  %v769_v48 = vor.u32 %v768_v32, %v765_v31  ;;  %v783_v50 = vor.u32 %v782_v34, %v779_v33  ;;  %v1154_v16 = vshll.u32 %v1563_v7, 16  ;;  %v1485_v31 = vld [vmem:[%s1700_s30 + $0xc4] sm:$0x1]  ;;  %v1487_v32 = vld [vmem:[%s1700_s30 + $0xcc] sm:$0x1] }
  0x4c   : > { %v1129_v54 = vor.u32 %v1128_v38, %v1125_v37  ;;  %v796_v26 = vrot.slane %v794_v10, 5  ;;  %v810_v28 = vrot.slane %v808_v12, 5  ;;  %v1153_v33 = vrot.slane %v1151_v15, 4 }
  0x4d   : > { %v761_v9 = vsel %vm1732_vm4, %v756_v0, %v760_v1  ;;  %v1156_v34 = vrot.slane %v1154_v16, 5 }
  0x4e   : > { %v823_v25 = vunpack.c.l.b16 %v761_v9  ;;  %v791_v9 = vshrl.u32 %v1484_v3, 16  ;;  %v1594_v3 = vld [vmem:[%s1700_s30 + $0x3c] sm:$0xf0] }
  0x53   : > { %1408 = vmatmul.msk.bf16.gmra.mxu1 %vm217_vm1, %v1404_v59  ;;  %v1505_v59 = vor.u32 %v1591_v42, %v1504_v41  ;;  %v1183_v41 = vunpack.c.l.b16 %v1121_v27  ;;  %v1560_v42 = vld [vmem:[%s1700_s30 + $0x2c] sm:$0x1]  ;;  %v807_v27 = vrot.slane %v805_v11, 4 }
  0x54   : > { %1413 = vmatmul.msk.bf16.gmra.mxu2 %vm217_vm1, %v471_v60  ;;  %1442 = vmatmul.msk.bf16.gmra.mxu3 %vm217_vm1, %v1438_v61  ;;  %v1534_v60 = vor.u32 %v1595_v46, %v1533_v45  ;;  %v1188_v61 = vpack.c.b16 %v1181_v44, %v1180_v43  ;;  %v1139_v43 = vrot.slane %v1137_v22, 4  ;;  %v1142_v44 = vrot.slane %v1140_v23, 5  ;;  %v1562_v46 = vld [vmem:[%s1700_s30 + $0x34] sm:$0x1]  ;;  %v1593_v22 = vld [vmem:[%s1700_s30 + $0x2c] sm:$0xf0] }
  0x55   : > { %1471 = vmatmul.msk.bf16.gmra.mxu0 %vm217_vm1, %v1467_v8  ;;  %v747_v8 = vsel %vm1732_vm4, %v742_v62, %v746_v63  ;;  %v1132_v55 = vshll.u32 %v1560_v42, 16  ;;  %v1146_v58 = vshll.u32 %v1562_v46, 16  ;;  %v788_v62 = vrot.slane %v786_v51, 5  ;;  %v1541_v23 = vld [vmem:[%s1700_s30 + $0x70] sm:$0xf] }
  0x56   : > { %v822_v24 = vunpack.c.l.b16 %v747_v8  ;;  %v1143_v57 = vor.u32 %v1142_v44, %v1139_v43  ;;  %v1130_v63 = vrot.slane %v1129_v54, 4  ;;  %v1565_v8 = vld [vmem:[%s1700_s30 + $0x40] sm:$0xf]  ;;  %v1513_v38 = vor.u32 %v1593_v22, %v1512_v21 }
  0x57   : > { %v1134_v0 = vrot.slane %v1132_v55, 5  ;;  %v1148_v2 = vrot.slane %v1146_v58, 5  ;;  %v1165_v17 = vshrl.u32 %v1565_v8, 16  ;;  %v1168_v18 = vshll.u32 %v1565_v8, 16 }
  0x58   : > { %v829_v45 = vpack.c.b16 %v823_v25, %v822_v24  ;;  %v1144_v1 = vrot.slane %v1143_v57, 4  ;;  %v1597_v24 = vld [vmem:[%s1700_s30 + $0x74] sm:$0xf0]  ;;  %v793_v25 = vrot.slane %v791_v9, 4  ;;  %v800_v43 = vshll.u32 %v1485_v31, 16 }
  0x59   : > { %v1135_v13 = vsel %vm1732_vm4, %v1130_v63, %v1134_v0  ;;  %v1167_v35 = vrot.slane %v1165_v17, 4  ;;  %v1170_v36 = vrot.slane %v1168_v18, 5  ;;  %v1542_v39 = vor.u32 %v1597_v24, %v1541_v23 }
  0x5a   : > { %v1149_v14 = vsel %vm1732_vm4, %v1144_v1, %v1148_v2  ;;  %v1184_v29 = vunpack.c.l.b16 %v1135_v13  ;;  %v797_v42 = vor.u32 %v796_v26, %v793_v25  ;;  %v811_v44 = vor.u32 %v810_v28, %v807_v27  ;;  %v1516_v2 = vld [vmem:[%s1700_s30 + $0x38] sm:$0xf] }
  0x5b   : > { %v1185_v30 = vunpack.c.l.b16 %v1149_v14  ;;  %v1517_v10 = vor.u32 %v1594_v3, %v1516_v2 }
  0x5c   : > { %v812_v54 = vrot.slane %v811_v44, 4 }
  0x5d   : > { %v1190_v46 = vpack.c.b16 %v1185_v30, %v1184_v29 }
  0x63   : > { %1489 = vmatmul.msk.bf16.vlgmr.msra.gmra.mxu1 %vm217_vm1, %v828_v56  ;;  %v1189_v56 = vpack.c.b16 %v1183_v41, %v1182_v40  ;;  %v1564_v40 = vld [vmem:[%s1700_s30 + $0x3c] sm:$0x1]  ;;  %v1566_v41 = vld [vmem:[%s1700_s30 + $0x44] sm:$0x1] }
  0x64   : > { %1518 = vmatmul.msk.bf16.vlgmr.msra.gmra.mxu2 %vm217_vm1, %v1505_v59  ;;  %1547 = vmatmul.msk.bf16.vlgmr.msra.gmra.mxu3 %vm217_vm1, %v1534_v60  ;;  %v770_v59 = vrot.slane %v769_v48, 4  ;;  %v774_v60 = vrot.slane %v772_v49, 5  ;;  %v1157_v48 = vor.u32 %v1156_v34, %v1153_v33  ;;  %v1160_v49 = vshll.u32 %v1564_v40, 16 }
  0x65   : > { %1568 = vmatmul.msk.bf16.vlgmr.msra.gmra.mxu0 %vm217_vm1, %v1188_v61  ;;  %v784_v61 = vrot.slane %v783_v50, 4  ;;  %v1171_v50 = vor.u32 %v1170_v36, %v1167_v35  ;;  %v1174_v51 = vshll.u32 %v1566_v41, 16 }
  0x66   : > { %v775_v5 = vsel %vm1732_vm4, %v770_v59, %v774_v60  ;;  %v1162_v57 = vrot.slane %v1160_v49, 5 }
  0x67   : > { %v789_v6 = vsel %vm1732_vm4, %v784_v61, %v788_v62  ;;  %v824_v19 = vunpack.c.l.b16 %v775_v5  ;;  %v1172_v58 = vrot.slane %v1171_v50, 4  ;;  %v1176_v59 = vrot.slane %v1174_v51, 5  ;;  %v1598_v5 = vld [vmem:[%s1700_s30 + $0x84] sm:$0xf0] }
  0x68   : > { %v825_v20 = vunpack.c.l.b16 %v789_v6  ;;  %v1546_v11 = vor.u32 %v1598_v5, %v1545_v4 }
  0x69   : > { %v1177_v63 = vsel %vm1732_vm4, %v1172_v58, %v1176_v59 }
  0x6a   : > { %v830_v37 = vpack.c.b16 %v825_v20, %v824_v19  ;;  %v1187_v7 = vunpack.c.l.b16 %v1177_v63 }
  0x73   : > { %1490 = vmatmul.msk.bf16.gmra.mxu1 %vm217_vm1, %v829_v45  ;;  %v814_v45 = vshll.u32 %v1487_v32, 16 }
  0x74   : > { %1519 = vmatmul.msk.bf16.gmra.mxu2 %vm217_vm1, %v1509_v52  ;;  %1548 = vmatmul.msk.bf16.gmra.mxu3 %vm217_vm1, %v1538_v53  ;;  %v798_v52 = vrot.slane %v797_v42, 4  ;;  %v802_v53 = vrot.slane %v800_v43, 5 }
  0x75   : > { %1569 = vmatmul.msk.bf16.gmra.mxu0 %vm217_vm1, %v1189_v56  ;;  %v816_v55 = vrot.slane %v814_v45, 5  ;;  %v1158_v56 = vrot.slane %v1157_v48, 4 }
  0x76   : > { %v803_v60 = vsel %vm1732_vm4, %v798_v52, %v802_v53 }
  0x77   : > { %v817_v61 = vsel %vm1732_vm4, %v812_v54, %v816_v55  ;;  %v1163_v62 = vsel %vm1732_vm4, %v1158_v56, %v1162_v57  ;;  %v826_v0 = vunpack.c.l.b16 %v803_v60 }
  0x78   : > { %v827_v1 = vunpack.c.l.b16 %v817_v61  ;;  %v1186_v6 = vunpack.c.l.b16 %v1163_v62 }
  0x7a   : > { %v831_v8 = vpack.c.b16 %v827_v1, %v826_v0  ;;  %v1191_v12 = vpack.c.b16 %v1187_v7, %v1186_v6 }
  0x83   : > { %1491 = vmatmul.msk.bf16.gmra.mxu1 %vm217_vm1, %v830_v37 }
  0x84   : > { %1520 = vmatmul.msk.bf16.gmra.mxu2 %vm217_vm1, %v1513_v38  ;;  %1549 = vmatmul.msk.bf16.gmra.mxu3 %vm217_vm1, %v1542_v39 }
  0x85   : > { %1570 = vmatmul.msk.bf16.gmra.mxu0 %vm217_vm1, %v1190_v46 }
  0x90   : > { %v248_v9 = vpop.f32.mrf.mxu1 }
  0x92   : > { %v243_v13 = vpop.f32.mrf.mxu0 }
  0x93   : > { %1492 = vmatmul.msk.bf16.gmra.mxu1 %vm217_vm1, %v831_v8 }
  0x94   : > { %1521 = vmatmul.msk.bf16.gmra.mxu2 %vm217_vm1, %v1517_v10  ;;  %1550 = vmatmul.msk.bf16.gmra.mxu3 %vm217_vm1, %v1546_v11 }
  0x95   : > { %1571 = vmatmul.msk.bf16.gmra.mxu0 %vm217_vm1, %v1191_v12 }
  0x97   : > { %v253_v47 = vpop.f32.mrf.mxu2  ;;  %v258_v14 = vpop.f32.mrf.mxu3 }
  0x98   : > { %v1899_v15 = vpop.f32.mrf.mxu1 }
  0x9a   : > { %v245_v16 = vpop.f32.mrf.mxu0 }
  0x9f   : > { %v1901_v17 = vpop.f32.mrf.mxu2  ;;  %v1903_v18 = vpop.f32.mrf.mxu3 }
  0xa0   : > { %v307_v19 = vpop.f32.mrf.mxu1 }
  0xa1   : > { %v308_v20 = vadd.f32 %v307_v19, %v243_v13 }
  0xa2   : > { %v662_v21 = vpop.f32.mrf.mxu0 }
  0xa7   : > { %v496_v22 = vpop.f32.mrf.mxu2  ;;  %v579_v23 = vpop.f32.mrf.mxu3 }
  0xa8   : > { %v516_v24 = vadd.f32 %v496_v22, %v308_v20  ;;  %v309_v25 = vpop.f32.mrf.mxu1 }
  0xa9   : > { %v310_v5 = vadd.f32 %v309_v25, %v245_v16 }
  0xaa   : > { %v599_v26 = vadd.f32 %v579_v23, %v516_v24  ;;  %v664_v27 = vpop.f32.mrf.mxu0 }
  0xac   : > { %v682_v28 = vadd.f32 %v662_v21, %v599_v26  ;;  %v1930_v21 = vld [vmem:[%s1970_s2] ss:$0 sm:$0xff] }
  0xaf   : > { %v498_v29 = vpop.f32.mrf.mxu2  ;;  %v581_v30 = vpop.f32.mrf.mxu3 }
  0xb0   : > { %v312_v31 = vpop.f32.mrf.mxu1  ;;  %v517_v7 = vadd.f32 %v498_v29, %v310_v5 }
  0xb1   : > { %v313_v32 = vadd.f32 %v312_v31, %v248_v9 }
  0xb2   : > { %v667_v33 = vpop.f32.mrf.mxu0  ;;  %v600_v11 = vadd.f32 %v581_v30, %v517_v7 }
  0xb4   : > { %v683_v19 = vadd.f32 %v664_v27, %v600_v11 }
  0xb7   : > { %v501_v34 = vpop.f32.mrf.mxu2  ;;  %v584_v35 = vpop.f32.mrf.mxu3 }
  0xb8   : > { %v518_v36 = vadd.f32 %v501_v34, %v313_v32  ;;  %v314_v37 = vpop.f32.mrf.mxu1 }
  0xb9   : > { %v315_v26 = vadd.f32 %v314_v37, %v1899_v15 }
  0xba   : > { %v601_v38 = vadd.f32 %v584_v35, %v518_v36  ;;  %v1905_v39 = vpop.f32.mrf.mxu0 }
  0xbc   : > { %v684_v40 = vadd.f32 %v667_v33, %v601_v38 }
  0xbf   : > { %v503_v41 = vpop.f32.mrf.mxu2  ;;  %v586_v42 = vpop.f32.mrf.mxu3 }
  0xc0   : > { %v317_v43 = vpop.f32.mrf.mxu1  ;;  %v519_v27 = vadd.f32 %v503_v41, %v315_v26 }
  0xc1   : > { %v318_v44 = vadd.f32 %v317_v43, %v253_v47 }
  0xc2   : > { %v672_v45 = vpop.f32.mrf.mxu0  ;;  %v602_v38 = vadd.f32 %v586_v42, %v519_v27 }
  0xc7   : > { %v506_v46 = vpop.f32.mrf.mxu2  ;;  %v589_v48 = vpop.f32.mrf.mxu3 }
  0xc8   : > { %v520_v49 = vadd.f32 %v506_v46, %v318_v44  ;;  %v1907_v50 = vpop.f32.mrf.mxu1 }
  0xca   : > { %v603_v51 = vadd.f32 %v589_v48, %v520_v49  ;;  %v1909_v52 = vpop.f32.mrf.mxu0  ;;  %v685_v48 = vadd.f32 %v1905_v39, %v602_v38 }
  0xcc   : > { %v1911_v53 = vadd.f32 %v672_v45, %v603_v51 }
  0xcf   : > { %v1913_v54 = vpop.f32.mrf.mxu2  ;;  %v1915_v55 = vpop.f32.mrf.mxu3 }
  0xd0   : > { %v322_v56 = vpop.f32.mrf.mxu1 }
  0xd1   : > { %v323_v57 = vadd.f32 %v322_v56, %v258_v14 }
  0xd2   : > { %v677_v58 = vpop.f32.mrf.mxu0 }
  0xd7   : > { %v511_v59 = vpop.f32.mrf.mxu2  ;;  %v594_v60 = vpop.f32.mrf.mxu3 }
  0xd8   : > { %v522_v61 = vadd.f32 %v511_v59, %v323_v57  ;;  %v1917_v62 = vpop.f32.mrf.mxu1  ;;  %v320_v59 = vadd.f32 %v1907_v50, %v1901_v17 }
  0xda   : > { %v605_v63 = vadd.f32 %v594_v60, %v522_v61  ;;  %v1919_v0 = vpop.f32.mrf.mxu0 }
  0xdc   : > { %v1921_v1 = vadd.f32 %v677_v58, %v605_v63  ;;  %v521_v63 = vadd.f32 %v1913_v54, %v320_v59 }
  0xdf   : > { %v1923_v2 = vpop.f32.mrf.mxu2  ;;  %v1925_v3 = vpop.f32.mrf.mxu3 }
  0xe0   : > { %v856_v4 = vpop.f32.mrf.mxu1 }
  0xe1   : > { %v876_v8 = vadd.f32 %v856_v4, %v682_v28 }
  0xe2   : > { %v1216_v6 = vpop.f32.mrf.mxu0 }
  0xe7   : > { %v939_v9 = vpop.f32.mrf.mxu2  ;;  %v1022_v10 = vpop.f32.mrf.mxu3 }
  0xe8   : > { %v959_v12 = vadd.f32 %v939_v9, %v876_v8  ;;  %v858_v13 = vpop.f32.mrf.mxu1 }
  0xe9   : > { %v877_v16 = vadd.f32 %v858_v13, %v683_v19 }
  0xea   : > { %v1042_v47 = vadd.f32 %v1022_v10, %v959_v12  ;;  %v1218_v14 = vpop.f32.mrf.mxu0  ;;  %v604_v10 = vadd.f32 %v1915_v55, %v521_v63  ;;  %v325_v55 = vadd.f32 %v1917_v62, %v1903_v18 }
  0xec   : > { %v1236_v20 = vadd.f32 %v1216_v6, %v1042_v47 }
  0xee   : > { %v1248_v28 = vadd.f32 %v1930_v21, %v1236_v20 }
  0xef   : > { %v941_v22 = vpop.f32.mrf.mxu2  ;;  %v1024_v23 = vpop.f32.mrf.mxu3 }
  0xf0   : > { %v960_v24 = vadd.f32 %v941_v22, %v877_v16  ;;  %v861_v25 = vpop.f32.mrf.mxu1  ;;  %v1264_v32 = vmul.f32 0.1, %v1248_v28  ;;  %vm1256_vm5 = vcmp.ge.f32.partialorder %v1248_v28, 0.0 }
  0xf1   : > { %v878_v34 = vadd.f32 %v861_v25, %v684_v40 }
  0xf2   : > { %v1043_v29 = vadd.f32 %v1024_v23, %v960_v24  ;;  %v1221_v30 = vpop.f32.mrf.mxu0  ;;  %v1272_v37 = vsel %vm1256_vm5, %v1248_v28, %v1264_v32  ;;  %v523_v28 = vadd.f32 %v1923_v2, %v325_v55 }
  0xf4   : > { %v1237_v31 = vadd.f32 %v1218_v14, %v1043_v29  ;;  %v687_v14 = vadd.f32 %v1909_v52, %v604_v10 }
  0xf6   : > { %v1249_v33 = vadd.f32 %v1930_v21, %v1237_v31 }
  0xf7   : > { %v944_v35 = vpop.f32.mrf.mxu2  ;;  %v1027_v36 = vpop.f32.mrf.mxu3 }
  0xf8   : > { %vm1257_vm6 = vcmp.ge.f32.partialorder %v1249_v33, 0.0  ;;  %v1265_v43 = vmul.f32 0.1, %v1249_v33  ;;  %v961_v44 = vadd.f32 %v944_v35, %v878_v34  ;;  %v863_v15 = vpop.f32.mrf.mxu1 }
  0xf9   : > { %v879_v42 = vadd.f32 %v863_v15, %v685_v48 }
  0xfa   : > { %v1273_v41 = vsel %vm1257_vm6, %v1249_v33, %v1265_v43  ;;  %v1044_v45 = vadd.f32 %v1027_v36, %v961_v44  ;;  %v1223_v46 = vpop.f32.mrf.mxu0  ;;  %v606_v33 = vadd.f32 %v1925_v3, %v523_v28 }
  0xfb   : > { %v1602_v40 = vpack.c.bf16 %v1273_v41, %v1272_v37 }
  0xfc   : > { %v1238_v49 = vadd.f32 %v1221_v30, %v1044_v45  ;;  %v689_v44 = vadd.f32 %v1919_v0, %v606_v33 }
  0xfd   : > { %1603 = vst [vmem:[%s1940_s17] sm:$0xff] %v1602_v40  }
  0xfe   : > { %v1250_v60 = vadd.f32 %v1930_v21, %v1238_v49 }
  0xff   : > { %v946_v51 = vpop.f32.mrf.mxu2  ;;  %v1029_v56 = vpop.f32.mrf.mxu3 }
 0x100   : > { %v962_v57 = vadd.f32 %v946_v51, %v879_v42  ;;  %v866_v58 = vpop.f32.mrf.mxu1  ;;  %v1266_v6 = vmul.f32 0.1, %v1250_v60  ;;  %vm1258_vm7 = vcmp.ge.f32.partialorder %v1250_v60, 0.0 }
 0x101   : > { %v880_v7 = vadd.f32 %v866_v58, %v1911_v53 }
 0x102   : > { %v1045_v61 = vadd.f32 %v1029_v56, %v962_v57  ;;  %v1226_v5 = vpop.f32.mrf.mxu0  ;;  %v1274_v12 = vsel %vm1258_vm7, %v1250_v60, %v1266_v6 }
 0x104   : > { %v1239_v4 = vadd.f32 %v1223_v46, %v1045_v61 }
 0x106   : > { %v1251_v39 = vadd.f32 %v1930_v21, %v1239_v4 }
 0x107   : > { %v949_v8 = vpop.f32.mrf.mxu2  ;;  %v1032_v9 = vpop.f32.mrf.mxu3 }
 0x108   : > { %vm1259_vm8 = vcmp.ge.f32.partialorder %v1251_v39, 0.0  ;;  %v1267_v17 = vmul.f32 0.1, %v1251_v39  ;;  %v963_v50 = vadd.f32 %v949_v8, %v880_v7  ;;  %v868_v11 = vpop.f32.mrf.mxu1 }
 0x109   : > { %v881_v20 = vadd.f32 %v868_v11, %v687_v14 }
 0x10a   : > { %v1275_v13 = vsel %vm1259_vm8, %v1251_v39, %v1267_v17  ;;  %v1046_v54 = vadd.f32 %v1032_v9, %v963_v50  ;;  %v1228_v16 = vpop.f32.mrf.mxu0 }
 0x10b   : > { %v1607_v47 = vpack.c.bf16 %v1275_v13, %v1274_v12 }
 0x10c   : > { %v1240_v19 = vadd.f32 %v1226_v5, %v1046_v54 }
 0x10d   : > { %1619 = vst [vmem:[%s1940_s17 + $0x8] sm:$0xff] %v1607_v47  }
 0x10e   : > { %v1252_v25 = vadd.f32 %v1930_v21, %v1240_v19 }
 0x10f   : > { %v951_v53 = vpop.f32.mrf.mxu2  ;;  %v1034_v22 = vpop.f32.mrf.mxu3 }
 0x110   : > { %v964_v23 = vadd.f32 %v951_v53, %v881_v20  ;;  %v871_v24 = vpop.f32.mrf.mxu1  ;;  %v1268_v30 = vmul.f32 0.1, %v1252_v25  ;;  %vm1260_vm9 = vcmp.ge.f32.partialorder %v1252_v25, 0.0 }
 0x111   : > { %v882_v27 = vadd.f32 %v871_v24, %v1921_v1 }
 0x112   : > { %v1047_v26 = vadd.f32 %v1034_v22, %v964_v23  ;;  %v1231_v62 = vpop.f32.mrf.mxu0  ;;  %v1276_v35 = vsel %vm1260_vm9, %v1252_v25, %v1268_v30 }
 0x114   : > { %v1241_v29 = vadd.f32 %v1228_v16, %v1047_v26 }
 0x116   : > { %v1253_v52 = vadd.f32 %v1930_v21, %v1241_v29 }
 0x117   : > { %v954_v31 = vpop.f32.mrf.mxu2  ;;  %v1037_v32 = vpop.f32.mrf.mxu3 }
 0x118   : > { %vm1261_vm10 = vcmp.ge.f32.partialorder %v1253_v52, 0.0  ;;  %v1269_v34 = vmul.f32 0.1, %v1253_v52  ;;  %v965_v18 = vadd.f32 %v954_v31, %v882_v27  ;;  %v873_v43 = vpop.f32.mrf.mxu1 }
 0x119   : > { %v883_v37 = vadd.f32 %v873_v43, %v689_v44 }
 0x11a   : > { %v1277_v36 = vsel %vm1261_vm10, %v1253_v52, %v1269_v34  ;;  %v1048_v38 = vadd.f32 %v1037_v32, %v965_v18  ;;  %v1233_v40 = vpop.f32.mrf.mxu0 }
 0x11b   : > { %v1612_v2 = vpack.c.bf16 %v1277_v36, %v1276_v35 }
 0x11c   : > { %v1242_v15 = vadd.f32 %v1231_v62, %v1048_v38 }
 0x11d   : > { %1620 = vst [vmem:[%s1940_s17 + $0x10] sm:$0xff] %v1612_v2  }
 0x11e   : > { %v1254_v3 = vadd.f32 %v1930_v21, %v1242_v15 }
 0x11f   : > { %v956_v1 = vpop.f32.mrf.mxu2  ;;  %v1039_v45 = vpop.f32.mrf.mxu3 }
 0x120   : > { %v966_v41 = vadd.f32 %v956_v1, %v883_v37  ;;  %v1270_v49 = vmul.f32 0.1, %v1254_v3  ;;  %vm1262_vm11 = vcmp.ge.f32.partialorder %v1254_v3, 0.0 }
 0x122   : > { %v1049_v46 = vadd.f32 %v1039_v45, %v966_v41  ;;  %v1278_v56 = vsel %vm1262_vm11, %v1254_v3, %v1270_v49 }
 0x124   : > { %v1243_v48 = vadd.f32 %v1233_v40, %v1049_v46 }
 0x126   : > { %v1255_v42 = vadd.f32 %v1930_v21, %v1243_v48 }
 0x128   : > { %vm1263_vm12 = vcmp.ge.f32.partialorder %v1255_v42, 0.0  ;;  %v1271_v51 = vmul.f32 0.1, %v1255_v42 }
 0x12a   : > { %v1279_v0 = vsel %vm1263_vm12, %v1255_v42, %v1271_v51 }
 0x12b   : > { %v1617_v57 = vpack.c.bf16 %v1279_v0, %v1278_v56 }
 0x12d   : > { %1621 = vst [vmem:[%s1940_s17 + $0x18] sm:$0xff] %v1617_v57  }
 0x12e PF: > { %s13_s12 = sadd.s32 1, %s1641_s12  }
 0x12f   : > { %p10_p5 = scmp.ge.s32.totalorder %s13_s12, 4  }
 0x131   :  { %12 = sbr.rel (!%p10_p5) target bundleno = 1 (0x1), region = 75 }

// kernel: csp_darknet_block.7
= control target key start
LH: loop header
LB: loop body
LE: loop exit
PB: predicated region body
PF: predicated region fallthrough
CT: control target
= control target key end

     0   :  { %s1265_s0 = inlined_call_operand.vmem [shape: bf16[128,128], index: 0, kind: input, shape index: {}]   ;;  %s1266_s1 = inlined_call_operand.vmem [shape: bf16[128,256], index: 1, kind: input, shape index: {}]   ;;  %s1267_s2 = inlined_call_operand.vmem [shape: bf16[128,128], index: 2, kind: input, shape index: {}]   ;;  %s1268_s3 = inlined_call_operand.vmem [shape: f32[1,128], index: 3, kind: input, shape index: {}]   ;;  %s1269_s4 = inlined_call_operand.vmem [shape: bf16[128,128], index: 4, kind: input, shape index: {}]   ;;  %s1270_s5 = inlined_call_operand.vmem [shape: bf16[128,128], index: 5, kind: input, shape index: {}]   ;;  %s1271_s6 = inlined_call_operand.vmem [shape: f32[1,128], index: 6, kind: input, shape index: {}]   ;;  %s1272_s7 = inlined_call_operand.vmem [shape: f32[128,128], index: 7, kind: output, shape index: {}]  }
   0x1   :  { %v940_v0 = vld [vmem:[%s1267_s2 + $0x38] sm:$0xff]  ;;  %v939_v1 = vld [vmem:[%s1267_s2 + $0x30] sm:$0xff]  ;;  %v938_v2 = vld [vmem:[%s1267_s2 + $0x28] sm:$0xff] }
   0x2   :  { %262 = vmatpush.bf16.msra.mxu0 %v940_v0  ;;  %965 = vmatpush.bf16.msra.mxu3 %v940_v0  ;;  %v937_v3 = vld [vmem:[%s1267_s2 + $0x20] sm:$0xff]  ;;  %v936_v4 = vld [vmem:[%s1267_s2 + $0x18] sm:$0xff]  ;;  %v935_v5 = vld [vmem:[%s1267_s2 + $0x10] sm:$0xff] }
   0x3   :  { %v934_v6 = vld [vmem:[%s1267_s2 + $0x8] sm:$0xff]  ;;  %v933_v7 = vld [vmem:[%s1267_s2] sm:$0xff]  ;;  %v931_v9 = vld [vmem:[%s1265_s0 + $0x30] sm:$0xff] }
   0x4   :  { %v925_v8 = vld [vmem:[%s1265_s0] sm:$0xff]  ;;  %v926_v10 = vld [vmem:[%s1265_s0 + $0x8] sm:$0xff]  ;;  %v932_v11 = vld [vmem:[%s1265_s0 + $0x38] sm:$0xff] }
   0x5   :  { %v927_v12 = vld [vmem:[%s1265_s0 + $0x10] sm:$0xff]  ;;  %v928_v13 = vld [vmem:[%s1265_s0 + $0x18] sm:$0xff]  ;;  %v962_v18 = vld [vmem:[%s1270_s5 + $0x28] sm:$0xff] }
   0x6   :  { %263 = vmatpush.bf16.msra.mxu0 %v939_v1  ;;  %966 = vmatpush.bf16.msra.mxu3 %v939_v1  ;;  %v964_v14 = vld [vmem:[%s1270_s5 + $0x38] sm:$0xff]  ;;  %v963_v16 = vld [vmem:[%s1270_s5 + $0x30] sm:$0xff]  ;;  %v946_v19 = vld [vmem:[%s1269_s4 + $0x28] sm:$0xff] }
   0x7   :  { %v948_v15 = vld [vmem:[%s1269_s4 + $0x38] sm:$0xff]  ;;  %511 = vmatpush.bf16.msra.mxu1 %v964_v14  ;;  %v947_v17 = vld [vmem:[%s1269_s4 + $0x30] sm:$0xff]  ;;  %v961_v20 = vld [vmem:[%s1270_s5 + $0x20] sm:$0xff] }
   0x8   :  { %608 = vmatpush.bf16.msra.mxu2 %v948_v15  ;;  %v945_v21 = vld [vmem:[%s1269_s4 + $0x20] sm:$0xff]  ;;  %v960_v23 = vld [vmem:[%s1270_s5 + $0x18] sm:$0xff]  ;;  %v959_v24 = vld [vmem:[%s1270_s5 + $0x10] sm:$0xff] }
   0x9   :  { %v929_v22 = vld [vmem:[%s1265_s0 + $0x20] sm:$0xff]  ;;  %v958_v25 = vld [vmem:[%s1270_s5 + $0x8] sm:$0xff]  ;;  %v944_v29 = vld [vmem:[%s1269_s4 + $0x18] sm:$0xff] }
   0xa   :  { %264 = vmatpush.bf16.msra.mxu0 %v938_v2  ;;  %967 = vmatpush.bf16.msra.mxu3 %v938_v2  ;;  %v930_v26 = vld [vmem:[%s1265_s0 + $0x28] sm:$0xff]  ;;  %v761_v27 = vld [vmem:[%s1266_s1 + $0x64] sm:$0xf]  ;;  %v943_v31 = vld [vmem:[%s1269_s4 + $0x10] sm:$0xff] }
   0xb   :  { %512 = vmatpush.bf16.msra.mxu1 %v963_v16  ;;  %v762_v28 = vld [vmem:[%s1266_s1 + $0x6c] sm:$0xf]  ;;  %58 = vst [vmem:[#allocation2 + $0x30] sm:$0xf] %v761_v27  ;;  %v957_v30 = vld [vmem:[%s1270_s5] sm:$0xff] }
   0xc   :  { %609 = vmatpush.bf16.msra.mxu2 %v947_v17  ;;  %60 = vst [vmem:[#allocation2 + $0x34] sm:$0xf] %v762_v28  ;;  %v749_v32 = vld [vmem:[%s1266_s1 + $0x4] sm:$0xf]  ;;  %v750_v33 = vld [vmem:[%s1266_s1 + $0xc] sm:$0xf] }
   0xd   :  { %34 = vst [vmem:[#allocation2] sm:$0xf] %v749_v32  ;;  %v942_v35 = vld [vmem:[%s1269_s4 + $0x8] sm:$0xff]  ;;  %v941_v36 = vld [vmem:[%s1269_s4] sm:$0xff]  ;;  %v763_v37 = vld [vmem:[%s1266_s1 + $0x74] sm:$0xf] }
   0xe   :  { %265 = vmatpush.bf16.msra.mxu0 %v937_v3  ;;  %968 = vmatpush.bf16.msra.mxu3 %v937_v3  ;;  %36 = vst [vmem:[#allocation2 + $0x4] sm:$0xf] %v750_v33  ;;  %v764_v38 = vld [vmem:[%s1266_s1 + $0x7c] sm:$0xf]  ;;  %v751_v40 = vld [vmem:[%s1266_s1 + $0x14] sm:$0xf] }
   0xf   :  { %513 = vmatpush.bf16.msra.mxu1 %v962_v18  ;;  %62 = vst [vmem:[#allocation2 + $0x38] sm:$0xf] %v763_v37  ;;  %v752_v41 = vld [vmem:[%s1266_s1 + $0x1c] sm:$0xf]  ;;  %v1154_v45 = vld [vmem:[%s1268_s3] ss:$0 sm:$0xff] }
  0x10   :  { %610 = vmatpush.bf16.msra.mxu2 %v946_v19  ;;  %64 = vst [vmem:[#allocation2 + $0x3c] sm:$0xf] %v764_v38  ;;  %v753_v46 = vld [vmem:[%s1266_s1 + $0x24] sm:$0xf]  ;;  %v754_v47 = vld [vmem:[%s1266_s1 + $0x2c] sm:$0xf] }
  0x11   :  { %38 = vst [vmem:[#allocation2 + $0x8] sm:$0xf] %v751_v40  ;;  %v755_v3 = vld [vmem:[%s1266_s1 + $0x34] sm:$0xf]  ;;  %v760_v37 = vld [vmem:[%s1266_s1 + $0x5c] sm:$0xf] }
  0x12   :  { %266 = vmatpush.bf16.msra.mxu0 %v936_v4  ;;  %969 = vmatpush.bf16.msra.mxu3 %v936_v4  ;;  %40 = vst [vmem:[#allocation2 + $0xc] sm:$0xf] %v752_v41  ;;  %v756_v4 = vld [vmem:[%s1266_s1 + $0x3c] sm:$0xf] }
  0x13   :  { %514 = vmatpush.bf16.msra.mxu1 %v961_v20  ;;  %v955_v34 = vld [vmem:[#allocation2 + $0x30] sm:$0xff]  ;;  %42 = vst [vmem:[#allocation2 + $0x10] sm:$0xf] %v753_v46 }
  0x14   :  { %611 = vmatpush.bf16.msra.mxu2 %v945_v21  ;;  %44 = vst [vmem:[#allocation2 + $0x14] sm:$0xf] %v754_v47 }
  0x15   :  { %v949_v39 = vld [vmem:[#allocation2] sm:$0xff]  ;;  %46 = vst [vmem:[#allocation2 + $0x18] sm:$0xf] %v755_v3 }
  0x16   :  { %267 = vmatpush.bf16.msra.mxu0 %v935_v5  ;;  %970 = vmatpush.bf16.msra.mxu3 %v935_v5  ;;  %48 = vst [vmem:[#allocation2 + $0x1c] sm:$0xf] %v756_v4 }
  0x17   :  { %515 = vmatpush.bf16.msra.mxu1 %v960_v23  ;;  %v956_v42 = vld [vmem:[#allocation2 + $0x38] sm:$0xff]  ;;  %56 = vst [vmem:[#allocation2 + $0x2c] sm:$0xf] %v760_v37 }
  0x18   :  { %612 = vmatpush.bf16.msra.mxu2 %v944_v29 }
  0x19   :  { %v950_v43 = vld [vmem:[#allocation2 + $0x8] sm:$0xff] }
  0x1a   :  { %268 = vmatpush.bf16.msra.mxu0 %v934_v6  ;;  %971 = vmatpush.bf16.msra.mxu3 %v934_v6 }
  0x1b   :  { %516 = vmatpush.bf16.msra.mxu1 %v959_v24  ;;  %v951_v58 = vld [vmem:[#allocation2 + $0x10] sm:$0xff] }
  0x1c   :  { %613 = vmatpush.bf16.msra.mxu2 %v943_v31 }
  0x1e   :  { %269 = vmatpush.bf16.msra.mxu0 %v933_v7  ;;  %972 = vmatpush.bf16.msra.mxu3 %v933_v7 }
  0x1f   :  { %517 = vmatpush.bf16.msra.mxu1 %v958_v25 }
  0x20   :  { %614 = vmatpush.bf16.msra.mxu2 %v942_v35 }
  0x21   :  { %270 = vmatmul.bf16.vlgmr.msra.gmra.mxu0 %v925_v8  ;;  %300 = vmatmul.bf16.vlgmr.msra.gmra.mxu3 %v931_v9 }
  0x22   :  { %973 = vmatpush.bf16.msrb.mxu3 %v964_v14 }
  0x23   :  { %518 = vmatpush.bf16.msra.mxu1 %v957_v30 }
  0x24   :  { %615 = vmatpush.bf16.msra.mxu2 %v941_v36 }
  0x26   :  { %974 = vmatpush.bf16.msrb.mxu3 %v963_v16  ;;  %519 = vmatmul.bf16.vlgmr.msra.gmra.mxu1 %v949_v39 }
  0x2a   :  { %975 = vmatpush.bf16.msrb.mxu3 %v962_v18 }
  0x2e   :  { %976 = vmatpush.bf16.msrb.mxu3 %v961_v20 }
  0x31   :  { %275 = vmatmul.bf16.gmra.mxu0 %v926_v10  ;;  %305 = vmatmul.bf16.gmra.mxu3 %v932_v11 }
  0x32   :  { %977 = vmatpush.bf16.msrb.mxu3 %v960_v23 }
  0x36   :  { %978 = vmatpush.bf16.msrb.mxu3 %v959_v24  ;;  %524 = vmatmul.bf16.gmra.mxu1 %v950_v43  ;;  %v757_v24 = vld [vmem:[%s1266_s1 + $0x44] sm:$0xf] }
  0x37   :  { %50 = vst [vmem:[#allocation2 + $0x20] sm:$0xf] %v757_v24 }
  0x3a   :  { %979 = vmatpush.bf16.msrb.mxu3 %v958_v25  ;;  %v758_v25 = vld [vmem:[%s1266_s1 + $0x4c] sm:$0xf] }
  0x3b   :  { %52 = vst [vmem:[#allocation2 + $0x24] sm:$0xf] %v758_v25 }
  0x3e   :  { %980 = vmatpush.bf16.msrb.mxu3 %v957_v30 }
  0x41   :  { %280 = vmatmul.bf16.gmra.mxu0 %v927_v12  ;;  %549 = vmatmul.bf16.vlgmr.msrb.gmra.mxu3 %v955_v34 }
  0x42   :  { %981 = vmatpush.bf16.msra.mxu3 %v948_v15  ;;  %v952_v15 = vld [vmem:[#allocation2 + $0x18] sm:$0xff]  ;;  %v953_v33 = vld [vmem:[#allocation2 + $0x20] sm:$0xff] }
  0x46   :  { %982 = vmatpush.bf16.msra.mxu3 %v947_v17  ;;  %529 = vmatmul.bf16.gmra.mxu1 %v951_v58 }
  0x4a   :  { %983 = vmatpush.bf16.msra.mxu3 %v946_v19 }
  0x4e   :  { %984 = vmatpush.bf16.msra.mxu3 %v945_v21 }
  0x51   :  { %285 = vmatmul.bf16.gmra.mxu0 %v928_v13  ;;  %554 = vmatmul.bf16.gmra.mxu3 %v956_v42 }
  0x52   :  { %985 = vmatpush.bf16.msra.mxu3 %v944_v29 }
  0x56   :  { %986 = vmatpush.bf16.msra.mxu3 %v943_v31  ;;  %534 = vmatmul.bf16.gmra.mxu1 %v952_v15 }
  0x5a   :  { %987 = vmatpush.bf16.msra.mxu3 %v942_v35 }
  0x5e   :  { %988 = vmatpush.bf16.msra.mxu3 %v941_v36  ;;  %v759_v36 = vld [vmem:[%s1266_s1 + $0x54] sm:$0xf] }
  0x5f   :  { %54 = vst [vmem:[#allocation2 + $0x28] sm:$0xf] %v759_v36 }
  0x61   :  { %290 = vmatmul.bf16.gmra.mxu0 %v929_v22 }
  0x66   :  { %539 = vmatmul.bf16.gmra.mxu1 %v953_v33  ;;  %v954_v46 = vld [vmem:[#allocation2 + $0x28] sm:$0xff] }
  0x71   :  { %295 = vmatmul.bf16.gmra.mxu0 %v930_v26 }
  0x76   :  { %544 = vmatmul.bf16.gmra.mxu1 %v954_v46 }
  0x9e   :  { %v271_v44 = vpop.f32.mrf.mxu0 }
  0x9f   :  { %v272_v48 = vadd.f32 %v1154_v45, %v271_v44 }
  0xa1   :  { %v327_v51 = vmul.f32 0.1, %v272_v48  ;;  %vm311_vm0 = vcmp.ge.f32.partialorder %v272_v48, 0.0 }
  0xa3   :  { %v343_v55 = vsel %vm311_vm0, %v272_v48, %v327_v51  ;;  %v520_v4 = vpop.f32.mrf.mxu1 }
  0xa4   :  { %v301_v49 = vpop.f32.mrf.mxu3 }
  0xa5   :  { %v302_v53 = vadd.f32 %v1154_v45, %v301_v49 }
  0xa6   :  { %v273_v50 = vpop.f32.mrf.mxu0 }
  0xa7   :  { %v274_v52 = vadd.f32 %v1154_v45, %v273_v50  ;;  %v339_v57 = vmul.f32 0.1, %v302_v53  ;;  %vm323_vm2 = vcmp.ge.f32.partialorder %v302_v53, 0.0 }
  0xa9   :  { %v328_v54 = vmul.f32 0.1, %v274_v52  ;;  %vm312_vm1 = vcmp.ge.f32.partialorder %v274_v52, 0.0  ;;  %v355_v63 = vsel %vm323_vm2, %v302_v53, %v339_v57 }
  0xab   :  { %v344_v56 = vsel %vm312_vm1, %v274_v52, %v328_v54 }
  0xac   :  { %v359_v59 = vpack.c.bf16 %v344_v56, %v343_v55  ;;  %v303_v60 = vpop.f32.mrf.mxu3 }
  0xad   :  { %v304_v61 = vadd.f32 %v1154_v45, %v303_v60 }
  0xae   :  { %v276_v62 = vpop.f32.mrf.mxu0  ;;  %616 = vmatmul.bf16.vlgmr.msra.gmra.mxu2 %v359_v59 }
  0xaf   :  { %vm324_vm3 = vcmp.ge.f32.partialorder %v304_v61, 0.0  ;;  %v340_v0 = vmul.f32 0.1, %v304_v61  ;;  %v277_v5 = vadd.f32 %v1154_v45, %v276_v62 }
  0xb1   :  { %v356_v1 = vsel %vm324_vm3, %v304_v61, %v340_v0  ;;  %v329_v8 = vmul.f32 0.1, %v277_v5  ;;  %vm313_vm4 = vcmp.ge.f32.partialorder %v277_v5, 0.0 }
  0xb2   :  { %v365_v2 = vpack.c.bf16 %v356_v1, %v355_v63 }
  0xb3   :  { %v345_v12 = vsel %vm313_vm4, %v277_v5, %v329_v8 }
  0xb4   :  { %v306_v6 = vpop.f32.mrf.mxu3  ;;  %646 = vmatmul.bf16.vlgmr.msra.gmra.mxu3 %v365_v2 }
  0xb5   :  { %v307_v10 = vadd.f32 %v1154_v45, %v306_v6  ;;  %v522_v6 = vpop.f32.mrf.mxu1 }
  0xb6   :  { %v278_v7 = vpop.f32.mrf.mxu0 }
  0xb7   :  { %v279_v9 = vadd.f32 %v1154_v45, %v278_v7  ;;  %v341_v14 = vmul.f32 0.1, %v307_v10  ;;  %vm325_vm6 = vcmp.ge.f32.partialorder %v307_v10, 0.0 }
  0xb9   :  { %v330_v11 = vmul.f32 0.1, %v279_v9  ;;  %vm314_vm5 = vcmp.ge.f32.partialorder %v279_v9, 0.0  ;;  %v357_v21 = vsel %vm325_vm6, %v307_v10, %v341_v14 }
  0xbb   :  { %v346_v13 = vsel %vm314_vm5, %v279_v9, %v330_v11  ;;  %v1199_v9 = vld [vmem:[%s1271_s6] ss:$0 sm:$0xff] }
  0xbc   :  { %v360_v16 = vpack.c.bf16 %v346_v13, %v345_v12  ;;  %v308_v17 = vpop.f32.mrf.mxu3 }
  0xbd   :  { %v309_v18 = vadd.f32 %v1154_v45, %v308_v17  ;;  %v525_v8 = vpop.f32.mrf.mxu1 }
  0xbe   :  { %v281_v19 = vpop.f32.mrf.mxu0  ;;  %621 = vmatmul.bf16.gmra.mxu2 %v360_v16 }
  0xbf   :  { %v342_v20 = vmul.f32 0.1, %v309_v18  ;;  %vm326_vm7 = vcmp.ge.f32.partialorder %v309_v18, 0.0  ;;  %v282_v26 = vadd.f32 %v1154_v45, %v281_v19 }
  0xc1   :  { %v358_v22 = vsel %vm326_vm7, %v309_v18, %v342_v20  ;;  %v331_v28 = vmul.f32 0.1, %v282_v26  ;;  %vm315_vm8 = vcmp.ge.f32.partialorder %v282_v26, 0.0 }
  0xc2   :  { %v366_v23 = vpack.c.bf16 %v358_v22, %v357_v21 }
  0xc3   :  { %v347_v31 = vsel %vm315_vm8, %v282_v26, %v331_v28 }
  0xc4   :  { %651 = vmatmul.bf16.gmra.mxu3 %v366_v23  ;;  %v550_v2 = vpop.f32.mrf.mxu3 }
  0xc5   :  { %v527_v17 = vpop.f32.mrf.mxu1 }
  0xc6   :  { %v283_v27 = vpop.f32.mrf.mxu0 }
  0xc7   :  { %v284_v29 = vadd.f32 %v1154_v45, %v283_v27 }
  0xc9   :  { %v332_v30 = vmul.f32 0.1, %v284_v29  ;;  %vm316_vm9 = vcmp.ge.f32.partialorder %v284_v29, 0.0 }
  0xcb   :  { %v348_v32 = vsel %vm316_vm9, %v284_v29, %v332_v30 }
  0xcc   :  { %v361_v34 = vpack.c.bf16 %v348_v32, %v347_v31  ;;  %v552_v3 = vpop.f32.mrf.mxu3 }
  0xcd   :  { %v530_v30 = vpop.f32.mrf.mxu1 }
  0xce   :  { %v286_v35 = vpop.f32.mrf.mxu0  ;;  %626 = vmatmul.bf16.gmra.mxu2 %v361_v34 }
  0xcf   :  { %v287_v38 = vadd.f32 %v1154_v45, %v286_v35 }
  0xd1   :  { %v333_v40 = vmul.f32 0.1, %v287_v38  ;;  %vm317_vm10 = vcmp.ge.f32.partialorder %v287_v38, 0.0 }
  0xd3   :  { %v349_v43 = vsel %vm317_vm10, %v287_v38, %v333_v40 }
  0xd4   :  { %v555_v5 = vpop.f32.mrf.mxu3 }
  0xd6   :  { %v288_v39 = vpop.f32.mrf.mxu0 }
  0xd7   :  { %v289_v41 = vadd.f32 %v1154_v45, %v288_v39 }
  0xd9   :  { %v334_v42 = vmul.f32 0.1, %v289_v41  ;;  %vm318_vm11 = vcmp.ge.f32.partialorder %v289_v41, 0.0 }
  0xdb   :  { %v350_v44 = vsel %vm318_vm11, %v289_v41, %v334_v42 }
  0xdc   :  { %v362_v47 = vpack.c.bf16 %v350_v44, %v349_v43  ;;  %v557_v7 = vpop.f32.mrf.mxu3  ;;  %v532_v43 = vpop.f32.mrf.mxu1 }
  0xde   :  { %v291_v48 = vpop.f32.mrf.mxu0  ;;  %631 = vmatmul.bf16.gmra.mxu2 %v362_v47 }
  0xdf   :  { %v292_v49 = vadd.f32 %v1154_v45, %v291_v48 }
  0xe1   :  { %v335_v51 = vmul.f32 0.1, %v292_v49  ;;  %vm319_vm12 = vcmp.ge.f32.partialorder %v292_v49, 0.0 }
  0xe3   :  { %v351_v54 = vsel %vm319_vm12, %v292_v49, %v335_v51 }
  0xe6   :  { %v293_v50 = vpop.f32.mrf.mxu0 }
  0xe7   :  { %v294_v52 = vadd.f32 %v1154_v45, %v293_v50 }
  0xe9   :  { %v336_v53 = vmul.f32 0.1, %v294_v52  ;;  %vm320_vm13 = vcmp.ge.f32.partialorder %v294_v52, 0.0 }
  0xeb   :  { %v352_v55 = vsel %vm320_vm13, %v294_v52, %v336_v53 }
  0xec   :  { %v363_v56 = vpack.c.bf16 %v352_v55, %v351_v54 }
  0xee   :  { %v296_v57 = vpop.f32.mrf.mxu0  ;;  %636 = vmatmul.bf16.gmra.mxu2 %v363_v56 }
  0xef   :  { %v297_v58 = vadd.f32 %v1154_v45, %v296_v57  ;;  %v535_v57 = vpop.f32.mrf.mxu1 }
  0xf1   :  { %v337_v60 = vmul.f32 0.1, %v297_v58  ;;  %vm321_vm14 = vcmp.ge.f32.partialorder %v297_v58, 0.0 }
  0xf3   :  { %v353_v63 = vsel %vm321_vm14, %v297_v58, %v337_v60 }
  0xf6   :  { %v298_v59 = vpop.f32.mrf.mxu0 }
  0xf7   :  { %v299_v61 = vadd.f32 %v1154_v45, %v298_v59 }
  0xf9   :  { %v338_v62 = vmul.f32 0.1, %v299_v61  ;;  %vm322_vm15 = vcmp.ge.f32.partialorder %v299_v61, 0.0 }
  0xfb   :  { %v354_v0 = vsel %vm322_vm15, %v299_v61, %v338_v62 }
  0xfc   :  { %v364_v1 = vpack.c.bf16 %v354_v0, %v353_v63  ;;  %v537_v0 = vpop.f32.mrf.mxu1 }
  0xfe   :  { %641 = vmatmul.bf16.gmra.mxu2 %v364_v1 }
 0x131   :  { %v617_v45 = vpop.f32.mrf.mxu2 }
 0x132   :  { %v618_v10 = vadd.f32 %v617_v45, %v520_v4 }
 0x134   :  { %v661_v11 = vadd.f32 %v1199_v9, %v618_v10 }
 0x136   :  { %vm677_vm0 = vcmp.ge.f32.partialorder %v661_v11, 0.0  ;;  %v693_v12 = vmul.f32 0.1, %v661_v11 }
 0x137   :  { %v647_v13 = vpop.f32.mrf.mxu3 }
 0x138   :  { %v709_v14 = vsel %vm677_vm0, %v661_v11, %v693_v12  ;;  %v648_v15 = vadd.f32 %v647_v13, %v550_v2 }
 0x139   :  { %725 = vst [vmem:[%s1272_s7] sm:$0xff] %v709_v14  ;;  %v619_v16 = vpop.f32.mrf.mxu2 }
 0x13a   :  { %v620_v18 = vadd.f32 %v619_v16, %v522_v6  ;;  %v673_v19 = vadd.f32 %v1199_v9, %v648_v15 }
 0x13c   :  { %v662_v20 = vadd.f32 %v1199_v9, %v620_v18  ;;  %vm689_vm1 = vcmp.ge.f32.partialorder %v673_v19, 0.0  ;;  %v705_v21 = vmul.f32 0.1, %v673_v19 }
 0x13e   :  { %vm678_vm2 = vcmp.ge.f32.partialorder %v662_v20, 0.0  ;;  %v694_v22 = vmul.f32 0.1, %v662_v20  ;;  %v721_v23 = vsel %vm689_vm1, %v673_v19, %v705_v21 }
 0x13f   :  { %737 = vst [vmem:[%s1272_s7 + $0x60] sm:$0xff] %v721_v23  ;;  %v649_v24 = vpop.f32.mrf.mxu3 }
 0x140   :  { %v710_v25 = vsel %vm678_vm2, %v662_v20, %v694_v22  ;;  %v650_v26 = vadd.f32 %v649_v24, %v552_v3 }
 0x141   :  { %726 = vst [vmem:[%s1272_s7 + $0x8] sm:$0xff] %v710_v25  ;;  %v622_v27 = vpop.f32.mrf.mxu2 }
 0x142   :  { %v623_v28 = vadd.f32 %v622_v27, %v525_v8  ;;  %v674_v29 = vadd.f32 %v1199_v9, %v650_v26  ;;  %v540_v8 = vpop.f32.mrf.mxu1 }
 0x144   :  { %v663_v31 = vadd.f32 %v1199_v9, %v623_v28  ;;  %vm690_vm3 = vcmp.ge.f32.partialorder %v674_v29, 0.0  ;;  %v706_v32 = vmul.f32 0.1, %v674_v29 }
 0x146   :  { %vm679_vm4 = vcmp.ge.f32.partialorder %v663_v31, 0.0  ;;  %v695_v33 = vmul.f32 0.1, %v663_v31  ;;  %v722_v34 = vsel %vm690_vm3, %v674_v29, %v706_v32 }
 0x147   :  { %738 = vst [vmem:[%s1272_s7 + $0x68] sm:$0xff] %v722_v34  ;;  %v652_v35 = vpop.f32.mrf.mxu3 }
 0x148   :  { %v711_v36 = vsel %vm679_vm4, %v663_v31, %v695_v33  ;;  %v653_v37 = vadd.f32 %v652_v35, %v555_v5 }
 0x149   :  { %727 = vst [vmem:[%s1272_s7 + $0x10] sm:$0xff] %v711_v36  ;;  %v624_v38 = vpop.f32.mrf.mxu2 }
 0x14a   :  { %v625_v39 = vadd.f32 %v624_v38, %v527_v17  ;;  %v675_v40 = vadd.f32 %v1199_v9, %v653_v37  ;;  %v542_v15 = vpop.f32.mrf.mxu1 }
 0x14c   :  { %v664_v41 = vadd.f32 %v1199_v9, %v625_v39  ;;  %vm691_vm5 = vcmp.ge.f32.partialorder %v675_v40, 0.0  ;;  %v707_v42 = vmul.f32 0.1, %v675_v40 }
 0x14e   :  { %vm680_vm6 = vcmp.ge.f32.partialorder %v664_v41, 0.0  ;;  %v696_v44 = vmul.f32 0.1, %v664_v41  ;;  %v723_v46 = vsel %vm691_vm5, %v675_v40, %v707_v42 }
 0x14f   :  { %739 = vst [vmem:[%s1272_s7 + $0x70] sm:$0xff] %v723_v46  ;;  %v654_v47 = vpop.f32.mrf.mxu3 }
 0x150   :  { %v712_v48 = vsel %vm680_vm6, %v664_v41, %v696_v44  ;;  %v655_v49 = vadd.f32 %v654_v47, %v557_v7 }
 0x151   :  { %728 = vst [vmem:[%s1272_s7 + $0x18] sm:$0xff] %v712_v48  ;;  %v627_v50 = vpop.f32.mrf.mxu2 }
 0x152   :  { %v628_v51 = vadd.f32 %v627_v50, %v530_v30  ;;  %v676_v52 = vadd.f32 %v1199_v9, %v655_v49  ;;  %v545_v22 = vpop.f32.mrf.mxu1 }
 0x154   :  { %v665_v53 = vadd.f32 %v1199_v9, %v628_v51  ;;  %vm692_vm7 = vcmp.ge.f32.partialorder %v676_v52, 0.0  ;;  %v708_v54 = vmul.f32 0.1, %v676_v52 }
 0x156   :  { %vm681_vm8 = vcmp.ge.f32.partialorder %v665_v53, 0.0  ;;  %v697_v55 = vmul.f32 0.1, %v665_v53  ;;  %v724_v56 = vsel %vm692_vm7, %v676_v52, %v708_v54 }
 0x157   :  { %740 = vst [vmem:[%s1272_s7 + $0x78] sm:$0xff] %v724_v56 }
 0x158   :  { %v713_v58 = vsel %vm681_vm8, %v665_v53, %v697_v55 }
 0x159   :  { %729 = vst [vmem:[%s1272_s7 + $0x20] sm:$0xff] %v713_v58  ;;  %v629_v59 = vpop.f32.mrf.mxu2 }
 0x15a   :  { %v630_v60 = vadd.f32 %v629_v59, %v532_v43  ;;  %v547_v29 = vpop.f32.mrf.mxu1 }
 0x15c   :  { %v666_v61 = vadd.f32 %v1199_v9, %v630_v60 }
 0x15e   :  { %vm682_vm9 = vcmp.ge.f32.partialorder %v666_v61, 0.0  ;;  %v698_v62 = vmul.f32 0.1, %v666_v61 }
 0x160   :  { %v714_v63 = vsel %vm682_vm9, %v666_v61, %v698_v62 }
 0x161   :  { %730 = vst [vmem:[%s1272_s7 + $0x28] sm:$0xff] %v714_v63  ;;  %v632_v1 = vpop.f32.mrf.mxu2 }
 0x162   :  { %v633_v2 = vadd.f32 %v632_v1, %v535_v57 }
 0x164   :  { %v667_v3 = vadd.f32 %v1199_v9, %v633_v2 }
 0x166   :  { %vm683_vm10 = vcmp.ge.f32.partialorder %v667_v3, 0.0  ;;  %v699_v4 = vmul.f32 0.1, %v667_v3 }
 0x168   :  { %v715_v5 = vsel %vm683_vm10, %v667_v3, %v699_v4 }
 0x169   :  { %731 = vst [vmem:[%s1272_s7 + $0x30] sm:$0xff] %v715_v5  ;;  %v634_v6 = vpop.f32.mrf.mxu2 }
 0x16a   :  { %v635_v7 = vadd.f32 %v634_v6, %v537_v0 }
 0x16c   :  { %v668_v45 = vadd.f32 %v1199_v9, %v635_v7 }
 0x16e   :  { %vm684_vm11 = vcmp.ge.f32.partialorder %v668_v45, 0.0  ;;  %v700_v10 = vmul.f32 0.1, %v668_v45 }
 0x170   :  { %v716_v11 = vsel %vm684_vm11, %v668_v45, %v700_v10 }
 0x171   :  { %732 = vst [vmem:[%s1272_s7 + $0x38] sm:$0xff] %v716_v11  ;;  %v637_v12 = vpop.f32.mrf.mxu2 }
 0x172   :  { %v638_v13 = vadd.f32 %v637_v12, %v540_v8 }
 0x174   :  { %v669_v14 = vadd.f32 %v1199_v9, %v638_v13 }
 0x176   :  { %vm685_vm12 = vcmp.ge.f32.partialorder %v669_v14, 0.0  ;;  %v701_v16 = vmul.f32 0.1, %v669_v14 }
 0x178   :  { %v717_v17 = vsel %vm685_vm12, %v669_v14, %v701_v16 }
 0x179   :  { %733 = vst [vmem:[%s1272_s7 + $0x40] sm:$0xff] %v717_v17  ;;  %v639_v18 = vpop.f32.mrf.mxu2 }
 0x17a   :  { %v640_v19 = vadd.f32 %v639_v18, %v542_v15 }
 0x17c   :  { %v670_v20 = vadd.f32 %v1199_v9, %v640_v19 }
 0x17e   :  { %vm686_vm13 = vcmp.ge.f32.partialorder %v670_v20, 0.0  ;;  %v702_v21 = vmul.f32 0.1, %v670_v20 }
 0x180   :  { %v718_v23 = vsel %vm686_vm13, %v670_v20, %v702_v21 }
 0x181   :  { %734 = vst [vmem:[%s1272_s7 + $0x48] sm:$0xff] %v718_v23  ;;  %v642_v24 = vpop.f32.mrf.mxu2 }
 0x182   :  { %v643_v25 = vadd.f32 %v642_v24, %v545_v22 }
 0x184   :  { %v671_v26 = vadd.f32 %v1199_v9, %v643_v25 }
 0x186   :  { %vm687_vm14 = vcmp.ge.f32.partialorder %v671_v26, 0.0  ;;  %v703_v27 = vmul.f32 0.1, %v671_v26 }
 0x188   :  { %v719_v28 = vsel %vm687_vm14, %v671_v26, %v703_v27 }
 0x189   :  { %735 = vst [vmem:[%s1272_s7 + $0x50] sm:$0xff] %v719_v28  ;;  %v644_v30 = vpop.f32.mrf.mxu2 }
 0x18a   :  { %v645_v31 = vadd.f32 %v644_v30, %v547_v29 }
 0x18c   :  { %v672_v32 = vadd.f32 %v1199_v9, %v645_v31 }
 0x18e   :  { %vm688_vm15 = vcmp.ge.f32.partialorder %v672_v32, 0.0  ;;  %v704_v33 = vmul.f32 0.1, %v672_v32 }
 0x190   :  { %v720_v34 = vsel %vm688_vm15, %v672_v32, %v704_v33 }
 0x191   :  { %736 = vst [vmem:[%s1272_s7 + $0x58] sm:$0xff] %v720_v34 }

// kernel: csp_darknet_block.6
= control target key start
LH: loop header
LB: loop body
LE: loop exit
PB: predicated region body
PF: predicated region fallthrough
CT: control target
= control target key end

     0   :  { %s3155_s18 = smov 0   ;;  %s3157_s19 = smov 0   ;;  %s3803_s0 = inlined_call_operand.vmem [shape: bf16[2,8,8,256], index: 0, kind: input, shape index: {}]   ;;  %s3804_s1 = inlined_call_operand.vmem [shape: bf16[128,128], index: 1, kind: input, shape index: {}]   ;;  %s3805_s2 = inlined_call_operand.vmem [shape: f32[1,128], index: 2, kind: input, shape index: {}]   ;;  %s3806_s3 = inlined_call_operand.vmem [shape: bf16[9,128,128], index: 3, kind: input, shape index: {}]   ;;  %s3807_s4 = inlined_call_operand.vmem [shape: f32[1,128], index: 4, kind: input, shape index: {}]   ;;  %s3808_s5 = inlined_call_operand.vmem [shape: bf16[2,8,8,128], index: 5, kind: output, shape index: {}]  }
   0x1   :  { %s3159_s20 = smov 0  }
   0x2 LB: > { %s2387_s21 = sadd.s32 4294967295, %s3122_s20   ;;  %s3172_s22 = sadd.s32 1, %s3122_s20   ;;  %s3122_s20 = sphi %s3159_s20, %s3819_s20   ;;  %s3118_s19 = sphi %s3157_s19, %s3818_s19   ;;  %s3114_s18 = sphi %s3155_s18, %s3817_s18  }
   0x3   : > { %s19_s23 = ssub.s32 %s3122_s20, %s3172_s22  ;;  %s22_s24 = sadd.s32 1, %s3118_s19 }
   0x4   : > { %p20_p0 = scmp.eq.s32.totalorder %s19_s23, 0  ;;  %p29_p1 = scmp.ne.s32.totalorder %s3118_s19, %s3114_s18 }
   0x5   : > { %p30_p2 = scmp.eq.s32.totalorder %s3122_s20, 0  ;;  %p2390_p4 = scmp.ge.s32.totalorder %s3122_s20, 2 }
   0x6   : > { %s3181_s25 = scalar_select %p20_p0, %s3118_s19, %s22_s24  }
   0x7   : > { %p31_p3 = por %p30_p2, %p29_p1  ;;  %177 = sbr.rel (%p2390_p4) target bundleno = 24 (0x18), region = 32 }
   0xc   : > { %180 = sbr.rel (!%p31_p3) target bundleno = 24 (0x18), region = 36  ;;  %s182_s26 = sand.u32 (%p31_p3), 1, %s3118_s19  }
   0xd   : > { %s2936_s27 = sshll.u32 (%p31_p3), %s3122_s20, 6  ;;  %s2391_s28 = sshll.u32 (%p31_p3), %s182_s26, 5 }
   0xe   : > { %s187_s6 = scalar_lea.vmem (%p31_p3), %s3803_s0, %s2936_s27  ;;  %s184_s7 = scalar_lea.vmem (%p31_p3), [#allocation3], %s2391_s28 }
   0xf   : > { %v204_v0 = vld [vmem:[%s187_s6] sm:$0xf] (%p31_p3)  ;;  %v206_v1 = vld [vmem:[%s187_s6 + $0x8] sm:$0xf] (%p31_p3)  ;;  %v208_v2 = vld [vmem:[%s187_s6 + $0x10] sm:$0xf] (%p31_p3) }
  0x10   : > { %205 = vst [vmem:[%s184_s7] sm:$0xf] (%p31_p3), %v204_v0  ;;  %v210_v3 = vld [vmem:[%s187_s6 + $0x18] sm:$0xf] (%p31_p3)  ;;  %v212_v4 = vld [vmem:[%s187_s6 + $0x20] sm:$0xf] (%p31_p3) }
  0x11   : > { %207 = vst [vmem:[%s184_s7 + $0x4] sm:$0xf] %v206_v1  ;;  %v214_v5 = vld [vmem:[%s187_s6 + $0x28] sm:$0xf]  ;;  %v216_v6 = vld [vmem:[%s187_s6 + $0x30] sm:$0xf] }
  0x12   : > { %209 = vst [vmem:[%s184_s7 + $0x8] sm:$0xf] %v208_v2  ;;  %v218_v7 = vld [vmem:[%s187_s6 + $0x38] sm:$0xf] }
  0x13   : > { %211 = vst [vmem:[%s184_s7 + $0xc] sm:$0xf] %v210_v3 }
  0x14   : > { %213 = vst [vmem:[%s184_s7 + $0x10] sm:$0xf] %v212_v4 }
  0x15   : > { %215 = vst [vmem:[%s184_s7 + $0x14] sm:$0xf] %v214_v5 }
  0x16   : > { %217 = vst [vmem:[%s184_s7 + $0x18] sm:$0xf] %v216_v6 }
  0x17   : > { %219 = vst [vmem:[%s184_s7 + $0x1c] sm:$0xf] %v218_v7 }
  0x18 PF: > { %p2394_p5 = scmp.ge.s32.totalorder %s3122_s20, 1  ;;  %p258_p6 = scmp.lt.s32.totalorder %s3122_s20, 3 }
  0x1a   : > { %p259_p7 = pnand %p2394_p5, %p258_p6 }
  0x1b   : > { %s265_s26 = sand.u32 (!%p259_p7), 1, %s3114_s18   ;;  %p292_p8 = scmp.lt.s32.totalorder (!%p259_p7), %s2387_s21, 1 }
  0x1c   : > { %262 = sbr.rel (%p259_p7) target bundleno = 552 (0x228), region = 77  ;;  %s2395_s29 = sshll.u32 (!%p259_p7), %s265_s26, 5 }
  0x1d   : > { %s3219_s9 = scalar_lea.vmem (!%p259_p7), [#allocation3], %s2395_s29 }
  0x21   : > { %v2949_v8 = vld [vmem:[%s3804_s1 + $0x38] sm:$0xff]  ;;  %v2948_v9 = vld [vmem:[%s3804_s1 + $0x30] sm:$0xff]  ;;  %v2947_v10 = vld [vmem:[%s3804_s1 + $0x28] sm:$0xff]  ;;  %v3124_v27 = vmov 0   ;;  %vm560_vm1 = vcmask 1043456   ;;  %vm566_vm3 = vcmask 1040384  }
  0x22   : > { %398 = vmatpush.bf16.msra.mxu0 %v2949_v8  ;;  %3057 = vmatpush.bf16.msra.mxu2 %v2949_v8  ;;  %v2946_v11 = vld [vmem:[%s3804_s1 + $0x20] sm:$0xff]  ;;  %v2945_v12 = vld [vmem:[%s3804_s1 + $0x18] sm:$0xff]  ;;  %v2944_v13 = vld [vmem:[%s3804_s1 + $0x10] sm:$0xff]  ;;  %453 = vst [vmem:[#allocation2 + $0x8] sm:$0xf] %v3124_v27  ;;  %s3821_s21 = smov (!%p292_p8, %s2387_s21), 1 }
  0x23   : > { %v2943_v14 = vld [vmem:[%s3804_s1 + $0x8] sm:$0xff]  ;;  %v2942_v15 = vld [vmem:[%s3804_s1] sm:$0xff]  ;;  %v2961_v16 = vld [vmem:[%s3806_s3 + $0x38] sm:$0xff]  ;;  %454 = vst [vmem:[#allocation2 + $0xc] sm:$0x1] %v3124_v27  ;;  %s2937_s28 = sshll.u32 %s3821_s21, 5 }
  0x24   : > { %v2938_v17 = vld [vmem:[%s3219_s9] sm:$0xff]  ;;  %v2940_v18 = vld [vmem:[%s3219_s9 + $0x10] sm:$0xff]  ;;  %v2939_v20 = vld [vmem:[%s3219_s9 + $0x8] sm:$0xff]  ;;  %451 = vst [vmem:[#allocation2] sm:$0xf] %v3124_v27  ;;  %s3767_s30 = scalar_lea.vmem %s3808_s5, %s2937_s28 }
  0x25   : > { %v2960_v19 = vld [vmem:[%s3806_s3 + $0x30] sm:$0xff]  ;;  %v2941_v21 = vld [vmem:[%s3219_s9 + $0x18] sm:$0xff]  ;;  %v2989_v23 = vld [vmem:[%s3806_s3 + $0xf8] sm:$0xff]  ;;  %452 = vst [vmem:[#allocation2 + $0x4] sm:$0x1] %v3124_v27 }
  0x26   : > { %399 = vmatpush.bf16.msra.mxu0 %v2948_v9  ;;  %3058 = vmatpush.bf16.msra.mxu2 %v2948_v9  ;;  %v2959_v22 = vld [vmem:[%s3806_s3 + $0x28] sm:$0xff]  ;;  %v2969_v24 = vld [vmem:[%s3806_s3 + $0x78] sm:$0xff]  ;;  %v2958_v25 = vld [vmem:[%s3806_s3 + $0x20] sm:$0xff]  ;;  %455 = vst [vmem:[#allocation2 + $0x10] sm:$0xf] %v3124_v27 }
  0x27   : > { %v2988_v26 = vld [vmem:[%s3806_s3 + $0xf0] sm:$0xff]  ;;  %842 = vmatpush.bf16.msra.mxu1 %v2969_v24  ;;  %3065 = vmatpush.bf16.msra.mxu3 %v2969_v24  ;;  %v2957_v29 = vld [vmem:[%s3806_s3 + $0x18] sm:$0xff]  ;;  %v2987_v30 = vld [vmem:[%s3806_s3 + $0xe8] sm:$0xff]  ;;  %456 = vst [vmem:[#allocation2 + $0x14] sm:$0x1] %v3124_v27 }
  0x28   : > { %v2968_v28 = vld [vmem:[%s3806_s3 + $0x70] sm:$0xff]  ;;  %457 = vst [vmem:[#allocation2 + $0x18] sm:$0xf] %v3124_v27  ;;  %v2967_v31 = vld [vmem:[%s3806_s3 + $0x68] sm:$0xff]  ;;  %v2986_v33 = vld [vmem:[%s3806_s3 + $0xe0] sm:$0xff] }
  0x29   : > { %458 = vst [vmem:[#allocation2 + $0x1c] sm:$0x1] %v3124_v27  ;;  %v2956_v32 = vld [vmem:[%s3806_s3 + $0x10] sm:$0xff]  ;;  %v2966_v34 = vld [vmem:[%s3806_s3 + $0x60] sm:$0xff]  ;;  %v2955_v35 = vld [vmem:[%s3806_s3 + $0x8] sm:$0xff] }
  0x2a   : > { %400 = vmatpush.bf16.msra.mxu0 %v2947_v10  ;;  %3059 = vmatpush.bf16.msra.mxu2 %v2947_v10  ;;  %459 = vst [vmem:[#allocation2 + $0x20] sm:$0xf] %v3124_v27  ;;  %v2985_v36 = vld [vmem:[%s3806_s3 + $0xd8] sm:$0xff]  ;;  %v2954_v38 = vld [vmem:[%s3806_s3] sm:$0xff]  ;;  %v2984_v39 = vld [vmem:[%s3806_s3 + $0xd0] sm:$0xff] }
  0x2b   : > { %843 = vmatpush.bf16.msra.mxu1 %v2968_v28  ;;  %3066 = vmatpush.bf16.msra.mxu3 %v2968_v28  ;;  %460 = vst [vmem:[#allocation2 + $0x24] sm:$0x1] %v3124_v27  ;;  %v2965_v37 = vld [vmem:[%s3806_s3 + $0x58] sm:$0xff]  ;;  %v2964_v40 = vld [vmem:[%s3806_s3 + $0x50] sm:$0xff]  ;;  %v2983_v41 = vld [vmem:[%s3806_s3 + $0xc8] sm:$0xff] }
  0x2c   : > { %461 = vst [vmem:[#allocation2 + $0x28] sm:$0xf] %v3124_v27  ;;  %v3288_v42 = vld [vmem:[%s3805_s2] ss:$0 sm:$0xff]  ;;  %v2963_v43 = vld [vmem:[%s3806_s3 + $0x48] sm:$0xff]  ;;  %v2997_v62 = vld [vmem:[%s3806_s3 + $0x138] sm:$0xff] }
  0x2d   : > { %462 = vst [vmem:[#allocation2 + $0x2c] sm:$0x1] %v3124_v27  ;;  %v2982_v44 = vld [vmem:[%s3806_s3 + $0xc0] sm:$0xff]  ;;  %vm561_vm2 = vsmask.f32 7938  ;;  %v2995_v24 = vld [vmem:[%s3806_s3 + $0x128] sm:$0xff] }
  0x2e   : > { %401 = vmatpush.bf16.msra.mxu0 %v2946_v11  ;;  %3060 = vmatpush.bf16.msra.mxu2 %v2946_v11  ;;  %463 = vst [vmem:[#allocation2 + $0x30] sm:$0xf] %v3124_v27  ;;  %v614_v47 = vld [vmem:[#allocation2] sm:$0xf]  ;;  %vm567_vm4 = vsmask.f32 256  ;;  %vm3306_vm6 = vmand %vm560_vm1, %vm561_vm2 }
  0x2f   : > { %844 = vmatpush.bf16.msra.mxu1 %v2967_v31  ;;  %3067 = vmatpush.bf16.msra.mxu3 %v2967_v31  ;;  %464 = vst [vmem:[#allocation2 + $0x34] sm:$0x1] %v3124_v27  ;;  %v2962_v48 = vld [vmem:[%s3806_s3 + $0x40] sm:$0xff]  ;;  %v650_v50 = vshrl.u32 %v614_v47, 16  ;;  %v653_v52 = vshll.u32 %v614_v47, 16  ;;  %vm3310_vm7 = vmand %vm566_vm3, %vm567_vm4  ;;  %vm996_vm1 = vcmask 1042432  }
  0x30   : > { %465 = vst [vmem:[#allocation2 + $0x38] sm:$0xf] %v3124_v27  ;;  %v563_v2 = vld [vmem:[#allocation2 + $0x8] sm:$0xf]  ;;  %v569_v4 = vld [vmem:[#allocation2 + $0xc] sm:$0x1] }
  0x31   : > { %466 = vst [vmem:[#allocation2 + $0x3c] sm:$0x1] %v3124_v27  ;;  %v652_v58 = vrot.slane %v650_v50, 4  ;;  %v655_v61 = vrot.slane %v653_v52, 5  ;;  %v3314_v10 = vld [vmem:[#allocation2 + $0x4] sm:$0x1] }
  0x32   : > { %402 = vmatpush.bf16.msra.mxu0 %v2945_v12  ;;  %3061 = vmatpush.bf16.msra.mxu2 %v2945_v12  ;;  %467 = vst [vmem:[#allocation2 + $0x40] sm:$0xf] %v3124_v27  ;;  %vm646_vm9 = vsmask.f32 3328  ;;  %vm647_vm10 = vsmask.f32 7440 }
  0x33   : > { %845 = vmatpush.bf16.msra.mxu1 %v2966_v34  ;;  %3068 = vmatpush.bf16.msra.mxu3 %v2966_v34  ;;  %468 = vst [vmem:[#allocation2 + $0x44] sm:$0x1] %v3124_v27  ;;  %v656_v12 = vor.u32 %v655_v61, %v652_v58  ;;  %vm3334_vm12 = vmor %vm646_vm9, %vm647_vm10  ;;  %vm997_vm2 = vcmask 1046532  }
  0x34   : > { %469 = vst [vmem:[#allocation2 + $0x48] sm:$0xf] %v3124_v27  ;;  %vm3531_vm3 = vmor %vm996_vm1, %vm997_vm2 }
  0x35   : > { %470 = vst [vmem:[#allocation2 + $0x4c] sm:$0x1] %v3124_v27 }
  0x36   : > { %403 = vmatpush.bf16.msra.mxu0 %v2944_v13  ;;  %3062 = vmatpush.bf16.msra.mxu2 %v2944_v13  ;;  %v659_v13 = vshll.u32 %v3314_v10, 16 }
  0x37   : > { %846 = vmatpush.bf16.msra.mxu1 %v2965_v37  ;;  %3069 = vmatpush.bf16.msra.mxu3 %v2965_v37 }
  0x3a   : > { %404 = vmatpush.bf16.msra.mxu0 %v2943_v14  ;;  %3063 = vmatpush.bf16.msra.mxu2 %v2943_v14  ;;  %v2996_v14 = vld [vmem:[%s3806_s3 + $0x130] sm:$0xff] }
  0x3b   : > { %847 = vmatpush.bf16.msra.mxu1 %v2964_v40  ;;  %3070 = vmatpush.bf16.msra.mxu3 %v2964_v40 }
  0x3e   : > { %405 = vmatpush.bf16.msra.mxu0 %v2942_v15  ;;  %3064 = vmatpush.bf16.msra.mxu2 %v2942_v15 }
  0x3f   : > { %848 = vmatpush.bf16.msra.mxu1 %v2963_v43  ;;  %3071 = vmatpush.bf16.msra.mxu3 %v2963_v43  ;;  %v575_v43 = vld [vmem:[#allocation2 + $0x14] sm:$0x1] }
  0x41   : > { %406 = vmatmul.bf16.vlgmr.msra.gmra.mxu0 %v2938_v17  ;;  %416 = vmatmul.bf16.vlgmr.msra.gmra.mxu2 %v2940_v18 }
  0x42   : > { %943 = vmatpush.bf16.msrb.mxu2 %v2961_v16  ;;  %1246 = vmatpush.bf16.msrb.mxu0 %v2989_v23 }
  0x43   : > { %849 = vmatpush.bf16.msra.mxu1 %v2962_v48  ;;  %3072 = vmatpush.bf16.msra.mxu3 %v2962_v48 }
  0x46   : > { %944 = vmatpush.bf16.msrb.mxu2 %v2960_v19  ;;  %1247 = vmatpush.bf16.msrb.mxu0 %v2988_v26 }
  0x47   : > { %1492 = vmatpush.bf16.msrb.mxu1 %v2997_v62 }
  0x4a   : > { %945 = vmatpush.bf16.msrb.mxu2 %v2959_v22  ;;  %1248 = vmatpush.bf16.msrb.mxu0 %v2987_v30 }
  0x4b   : > { %1493 = vmatpush.bf16.msrb.mxu1 %v2996_v14 }
  0x4e   : > { %946 = vmatpush.bf16.msrb.mxu2 %v2958_v25  ;;  %1249 = vmatpush.bf16.msrb.mxu0 %v2986_v33  ;;  %v3331_v33 = vrot.slane %v656_v12, 4 }
  0x4f   : > { %1494 = vmatpush.bf16.msrb.mxu1 %v2995_v24  ;;  %v581_v24 = vld [vmem:[#allocation2 + $0x1c] sm:$0x1] }
  0x51   : > { %411 = vmatmul.bf16.gmra.mxu0 %v2939_v20  ;;  %421 = vmatmul.bf16.gmra.mxu2 %v2941_v21  ;;  %v590_v20 = vld [vmem:[#allocation2 + $0x28] sm:$0xf]  ;;  %v593_v21 = vld [vmem:[#allocation2 + $0x2c] sm:$0x1] }
  0x52   : > { %947 = vmatpush.bf16.msrb.mxu2 %v2957_v29  ;;  %1250 = vmatpush.bf16.msrb.mxu0 %v2985_v36  ;;  %v3328_v29 = vrot.slane %v659_v13, 5  ;;  %v572_v36 = vld [vmem:[#allocation2 + $0x10] sm:$0xf] }
  0x56   : > { %948 = vmatpush.bf16.msrb.mxu2 %v2956_v32  ;;  %1251 = vmatpush.bf16.msrb.mxu0 %v2984_v39  ;;  %v2994_v39 = vld [vmem:[%s3806_s3 + $0x120] sm:$0xff] }
  0x57   : > { %1495 = vmatpush.bf16.msrb.mxu1 %v2994_v39 }
  0x5a   : > { %949 = vmatpush.bf16.msrb.mxu2 %v2955_v35  ;;  %1252 = vmatpush.bf16.msrb.mxu0 %v2983_v41 }
  0x5e   : > { %950 = vmatpush.bf16.msrb.mxu2 %v2954_v38  ;;  %1253 = vmatpush.bf16.msrb.mxu0 %v2982_v44 }
  0xbe   : > { %v407_v45 = vpop.f32.mrf.mxu0 }
  0xbf   : > { %v408_v46 = vadd.f32 %v3288_v42, %v407_v45  ;;  %v2496_v45 = vld [vmem:[#allocation2] sm:$0xf] }
  0xc1   : > { %vm427_vm0 = vcmp.ge.f32.partialorder %v408_v46, 0.0  ;;  %v435_v49 = vmul.f32 0.1, %v408_v46 }
  0xc3   : > { %v443_v51 = vsel %vm427_vm0, %v408_v46, %v435_v49 }
  0xc4   : > { %v471_v53 = vpack.c.bf16 %v443_v51, %v443_v51  ;;  %v417_v54 = vpop.f32.mrf.mxu2 }
  0xc5   : > { %v418_v55 = vadd.f32 %v3288_v42, %v417_v54 }
  0xc6   : > { %v480_v56 = vshrl.u32 %v471_v53, 16  ;;  %v409_v57 = vpop.f32.mrf.mxu0  ;;  %v483_v0 = vshll.u32 %v471_v53, 16  ;;  %v662_v53 = vsel %vm3334_vm12, %v3331_v33, %v3328_v29  ;;  %v2977_v33 = vld [vmem:[%s3806_s3 + $0xb8] sm:$0xff] }
  0xc7   : > { %vm431_vm5 = vcmp.ge.f32.partialorder %v418_v55, 0.0  ;;  %v439_v59 = vmul.f32 0.1, %v418_v55  ;;  %v410_v60 = vadd.f32 %v3288_v42, %v409_v57  ;;  %v599_v57 = vld [vmem:[#allocation2 + $0x34] sm:$0x1]  ;;  %1112 = vmatpush.bf16.msrb.mxu3 %v2977_v33 }
  0xc8   : > { %v482_v63 = vrot.slane %v480_v56, 7  ;;  %v596_v56 = vld [vmem:[#allocation2 + $0x30] sm:$0xf] }
  0xc9   : > { %v447_v5 = vsel %vm431_vm5, %v418_v55, %v439_v59  ;;  %vm428_vm8 = vcmp.ge.f32.partialorder %v410_v60, 0.0  ;;  %v436_v6 = vmul.f32 0.1, %v410_v60 }
  0xca   : > { %v485_v7 = vor.u32 %v483_v0, %v482_v63  ;;  %v486_v8 = vrot.slane %v482_v63, 4  ;;  %v475_v9 = vpack.c.bf16 %v447_v5, %v447_v5 }
  0xcb   : > { %v444_v11 = vsel %vm428_vm8, %v410_v60, %v436_v6 }
  0xcc   : > { %v564_v15 = vsel %vm3306_vm6, %v485_v7, %v563_v2  ;;  %v570_v16 = vsel %vm3310_vm7, %v486_v8, %v569_v4  ;;  %v512_v17 = vshrl.u32 %v475_v9, 16  ;;  %v515_v18 = vshll.u32 %v475_v9, 16  ;;  %v419_v19 = vpop.f32.mrf.mxu2  ;;  %v2993_v4 = vld [vmem:[%s3806_s3 + $0x118] sm:$0xff] }
  0xcd   : > { %565 = vst [vmem:[#allocation2 + $0x8] sm:$0xf] %v564_v15  ;;  %v472_v22 = vpack.c.bf16 %v444_v11, %v444_v11  ;;  %v420_v23 = vadd.f32 %v3288_v42, %v419_v19  ;;  %1496 = vmatpush.bf16.msrb.mxu1 %v2993_v4 }
  0xce   : > { %571 = vst [vmem:[#allocation2 + $0xc] sm:$0x1] %v570_v16  ;;  %v514_v25 = vrot.slane %v512_v17, 7  ;;  %v412_v26 = vpop.f32.mrf.mxu0  ;;  %v2992_v17 = vld [vmem:[%s3806_s3 + $0x110] sm:$0xff] }
  0xcf   : > { %v488_v27 = vshrl.u32 %v472_v22, 16  ;;  %vm432_vm11 = vcmp.ge.f32.partialorder %v420_v23, 0.0  ;;  %v440_v28 = vmul.f32 0.1, %v420_v23  ;;  %v413_v32 = vadd.f32 %v3288_v42, %v412_v26 }
  0xd0   : > { %v517_v30 = vor.u32 %v515_v18, %v514_v25  ;;  %v518_v31 = vrot.slane %v514_v25, 4  ;;  %v491_v35 = vshll.u32 %v472_v22, 16  ;;  %v3005_v18 = vld [vmem:[%s3806_s3 + $0x178] sm:$0xff] }
  0xd1   : > { %v490_v34 = vrot.slane %v488_v27, 7  ;;  %v448_v37 = vsel %vm432_vm11, %v420_v23, %v440_v28  ;;  %vm429_vm13 = vcmp.ge.f32.partialorder %v413_v32, 0.0  ;;  %v437_v48 = vmul.f32 0.1, %v413_v32  ;;  %v578_v22 = vld [vmem:[#allocation2 + $0x18] sm:$0xf]  ;;  %1666 = vmatpush.bf16.msra.mxu2 %v3005_v18  ;;  %1497 = vmatpush.bf16.msrb.mxu1 %v2992_v17 }
  0xd2   : > { %v591_v40 = vsel %vm3306_vm6, %v517_v30, %v590_v20  ;;  %v594_v41 = vsel %vm3310_vm7, %v518_v31, %v593_v21  ;;  %v476_v44 = vpack.c.bf16 %v448_v37, %v448_v37  ;;  %v2975_v17 = vld [vmem:[%s3806_s3 + $0xa8] sm:$0xff] }
  0xd3   : > { %592 = vst [vmem:[#allocation2 + $0x28] sm:$0xf] %v591_v40  ;;  %v493_v46 = vor.u32 %v491_v35, %v490_v34  ;;  %v494_v47 = vrot.slane %v490_v34, 4  ;;  %v445_v58 = vsel %vm429_vm13, %v413_v32, %v437_v48  ;;  %v602_v34 = vld [vmem:[#allocation2 + $0x38] sm:$0xf] }
  0xd4   : > { %595 = vst [vmem:[#allocation2 + $0x2c] sm:$0x1] %v594_v41  ;;  %v520_v49 = vshrl.u32 %v476_v44, 16  ;;  %v523_v50 = vshll.u32 %v476_v44, 16  ;;  %v422_v51 = vpop.f32.mrf.mxu2  ;;  %v2950_v52 = vld [vmem:[#allocation2 + $0x4] sm:$0xf0]  ;;  %v473_v62 = vpack.c.bf16 %v445_v58, %v445_v58  ;;  %v778_v41 = vunpack.c.l.b16 %v662_v53 }
  0xd5   : > { %v573_v54 = vsel %vm3306_vm6, %v493_v46, %v572_v36  ;;  %v576_v55 = vsel %vm3310_vm7, %v494_v47, %v575_v43  ;;  %v423_v59 = vadd.f32 %v3288_v42, %v422_v51  ;;  %v615_v60 = vld [vmem:[#allocation2 + $0x8] sm:$0xf]  ;;  %v2497_v0 = vor.u32 %v2950_v52, %v2496_v45  ;;  %v3359_v13 = vld [vmem:[#allocation2 + $0xc] sm:$0x1]  ;;  %v605_v47 = vld [vmem:[#allocation2 + $0x3c] sm:$0x1] }
  0xd6   : > { %574 = vst [vmem:[#allocation2 + $0x10] sm:$0xf] %v573_v54  ;;  %v522_v61 = vrot.slane %v520_v49, 7  ;;  %v414_v63 = vpop.f32.mrf.mxu0  ;;  %v664_v2 = vshrl.u32 %v615_v60, 16  ;;  %v667_v7 = vshll.u32 %v615_v60, 16  ;;  %v496_v11 = vshrl.u32 %v473_v62, 16 }
  0xd7   : > { %577 = vst [vmem:[#allocation2 + $0x14] sm:$0x1] %v576_v55  ;;  %vm433_vm14 = vcmp.ge.f32.partialorder %v423_v59, 0.0  ;;  %v441_v5 = vmul.f32 0.1, %v423_v59  ;;  %v415_v6 = vadd.f32 %v3288_v42, %v414_v63  ;;  %v499_v12 = vshll.u32 %v473_v62, 16  ;;  %951 = vmatmul.bf16.vlgmr.msrb.gmra.mxu2 %v2497_v0 }
  0xd8   : > { %v525_v8 = vor.u32 %v523_v50, %v522_v61  ;;  %v526_v9 = vrot.slane %v522_v61, 4  ;;  %v666_v16 = vrot.slane %v664_v2, 4  ;;  %v498_v21 = vrot.slane %v496_v11, 7  ;;  %v2616_v36 = vld [vmem:[#allocation2 + $0x8] sm:$0xf]  ;;  %v2976_v0 = vld [vmem:[%s3806_s3 + $0xb0] sm:$0xff] }
  0xd9   : > { %v449_v14 = vsel %vm433_vm14, %v423_v59, %v441_v5  ;;  %vm430_vm15 = vcmp.ge.f32.partialorder %v415_v6, 0.0  ;;  %v438_v15 = vmul.f32 0.1, %v415_v6  ;;  %v669_v26 = vrot.slane %v667_v7, 5  ;;  %v2991_v43 = vld [vmem:[%s3806_s3 + $0x108] sm:$0xff]  ;;  %1113 = vmatpush.bf16.msrb.mxu3 %v2976_v0 }
  0xda   : > { %v597_v19 = vsel %vm3306_vm6, %v525_v8, %v596_v56  ;;  %v600_v20 = vsel %vm3310_vm7, %v526_v9, %v599_v57  ;;  %v477_v23 = vpack.c.bf16 %v449_v14, %v449_v14  ;;  %v673_v27 = vshll.u32 %v3359_v13, 16  ;;  %v584_v55 = vld [vmem:[#allocation2 + $0x20] sm:$0xf]  ;;  %v587_v56 = vld [vmem:[#allocation2 + $0x24] sm:$0x1]  ;;  %1498 = vmatpush.bf16.msrb.mxu1 %v2991_v43  ;;  %v3003_v9 = vld [vmem:[%s3806_s3 + $0x168] sm:$0xff] }
  0xdb   : > { %598 = vst [vmem:[#allocation2 + $0x30] sm:$0xf] %v597_v19  ;;  %v446_v25 = vsel %vm430_vm15, %v415_v6, %v438_v15  ;;  %v501_v28 = vor.u32 %v499_v12, %v498_v21  ;;  %v502_v29 = vrot.slane %v498_v21, 4  ;;  %v670_v40 = vor.u32 %v669_v26, %v666_v16  ;;  %v619_v63 = vld [vmem:[#allocation2 + $0x28] sm:$0xf]  ;;  %v2990_v8 = vld [vmem:[%s3806_s3 + $0x100] sm:$0xff] }
  0xdc   : > { %601 = vst [vmem:[#allocation2 + $0x34] sm:$0x1] %v600_v20  ;;  %v528_v30 = vshrl.u32 %v477_v23, 16  ;;  %v531_v31 = vshll.u32 %v477_v23, 16  ;;  %v424_v32 = vpop.f32.mrf.mxu2  ;;  %v474_v35 = vpack.c.bf16 %v446_v25, %v446_v25  ;;  %v675_v52 = vrot.slane %v673_v27, 5  ;;  %v3025_v16 = vld [vmem:[%s3806_s3 + $0x1f8] sm:$0xff] }
  0xdd   : > { %v2978_v37 = vld [vmem:[#allocation2 + $0xc] sm:$0xf0]  ;;  %v425_v39 = vadd.f32 %v3288_v42, %v424_v32  ;;  %v579_v44 = vsel %vm3306_vm6, %v501_v28, %v578_v22  ;;  %v582_v45 = vsel %vm3310_vm7, %v502_v29, %v581_v24  ;;  %v671_v51 = vrot.slane %v670_v40, 4  ;;  %2047 = vmatpush.bf16.msra.mxu0 %v3025_v16  ;;  %v608_v26 = vld [vmem:[#allocation2 + $0x40] sm:$0xf]  ;;  %1114 = vmatpush.bf16.msrb.mxu3 %v2975_v17 }
  0xde   : > { %v530_v46 = vrot.slane %v528_v30, 7  ;;  %v2617_v48 = vor.u32 %v2978_v37, %v2616_v36  ;;  %v616_v49 = vld [vmem:[#allocation2 + $0x10] sm:$0xf]  ;;  %580 = vst [vmem:[#allocation2 + $0x18] sm:$0xf] %v579_v44  ;;  %v504_v50 = vshrl.u32 %v474_v35, 16  ;;  %1499 = vmatpush.bf16.msrb.mxu1 %v2990_v8 }
  0xdf   : > { %v3004_v42 = vld [vmem:[%s3806_s3 + $0x170] sm:$0xff]  ;;  %vm434_vm0 = vcmp.ge.f32.partialorder %v425_v39, 0.0  ;;  %583 = vst [vmem:[#allocation2 + $0x1c] sm:$0x1] %v582_v45  ;;  %v442_v57 = vmul.f32 0.1, %v425_v39  ;;  %v676_v61 = vsel %vm3334_vm12, %v671_v51, %v675_v52 }
  0xe0   : > { %v533_v53 = vor.u32 %v531_v31, %v530_v46  ;;  %v534_v54 = vrot.slane %v530_v46, 4  ;;  %1254 = vmatmul.bf16.vlgmr.msrb.gmra.mxu0 %v2617_v48  ;;  %v678_v58 = vshrl.u32 %v616_v49, 16  ;;  %1667 = vmatpush.bf16.msra.mxu2 %v3004_v42  ;;  %v506_v59 = vrot.slane %v504_v50, 7  ;;  %v3396_v7 = vld [vmem:[#allocation2 + $0x14] sm:$0x1]  ;;  %v3002_v46 = vld [vmem:[%s3806_s3 + $0x160] sm:$0xff] }
  0xe1   : > { %v507_v60 = vshll.u32 %v474_v35, 16  ;;  %v681_v62 = vshll.u32 %v616_v49, 16  ;;  %v450_v5 = vsel %vm434_vm0, %v425_v39, %v442_v57  ;;  %v779_v6 = vunpack.c.l.b16 %v676_v61  ;;  %v2500_v25 = vld [vmem:[#allocation2 + $0x10] sm:$0xf]  ;;  %v611_v27 = vld [vmem:[#allocation2 + $0x44] sm:$0x1] }
  0xe2   : > { %v603_v2 = vsel %vm3306_vm6, %v533_v53, %v602_v34  ;;  %v606_v4 = vsel %vm3310_vm7, %v534_v54, %v605_v47  ;;  %v510_v12 = vrot.slane %v506_v59, 4  ;;  %v478_v14 = vpack.c.bf16 %v450_v5, %v450_v5  ;;  %v3418_v45 = vld [vmem:[#allocation2 + $0x2c] sm:$0x1]  ;;  %v3024_v50 = vld [vmem:[%s3806_s3 + $0x1f0] sm:$0xff]  ;;  %v2974_v51 = vld [vmem:[%s3806_s3 + $0xa0] sm:$0xff] }
  0xe3   : > { %604 = vst [vmem:[#allocation2 + $0x38] sm:$0xf] %v603_v2  ;;  %v509_v11 = vor.u32 %v507_v60, %v506_v59  ;;  %v680_v15 = vrot.slane %v678_v58, 4  ;;  %v786_v18 = vpack.c.b16 %v779_v6, %v778_v41  ;;  %v683_v19 = vrot.slane %v681_v62, 5  ;;  %2048 = vmatpush.bf16.msra.mxu0 %v3024_v50  ;;  %1115 = vmatpush.bf16.msrb.mxu3 %v2974_v51  ;;  %v3023_v61 = vld [vmem:[%s3806_s3 + $0x1e8] sm:$0xff] }
  0xe4   : > { %607 = vst [vmem:[#allocation2 + $0x3c] sm:$0x1] %v606_v4  ;;  %v720_v20 = vshrl.u32 %v619_v63, 16  ;;  %1668 = vmatpush.bf16.msra.mxu2 %v3003_v9  ;;  %v588_v22 = vsel %vm3310_vm7, %v510_v12, %v587_v56  ;;  %v536_v23 = vshrl.u32 %v478_v14, 16  ;;  %v539_v24 = vshll.u32 %v478_v14, 16  ;;  %v3001_v56 = vld [vmem:[%s3806_s3 + $0x158] sm:$0xff] }
  0xe5   : > { %v585_v21 = vsel %vm3306_vm6, %v509_v11, %v584_v55  ;;  %850 = vmatmul.bf16.vlgmr.msra.gmra.mxu1 %v786_v18  ;;  %v2951_v28 = vld [vmem:[#allocation2 + $0x14] sm:$0xf0]  ;;  %v684_v29 = vor.u32 %v683_v19, %v680_v15  ;;  %v687_v30 = vshll.u32 %v3396_v7, 16  ;;  %589 = vst [vmem:[#allocation2 + $0x24] sm:$0x1] %v588_v22  ;;  %v723_v40 = vshll.u32 %v619_v63, 16 }
  0xe6   : > { %586 = vst [vmem:[#allocation2 + $0x20] sm:$0xf] %v585_v21  ;;  %v538_v31 = vrot.slane %v536_v23, 7  ;;  %v2501_v32 = vor.u32 %v2951_v28, %v2500_v25  ;;  %v617_v33 = vld [vmem:[#allocation2 + $0x18] sm:$0xf]  ;;  %v722_v34 = vrot.slane %v720_v20, 4 }
  0xe7   : > { %v3415_v35 = vld [vmem:[#allocation2 + $0x1c] sm:$0x1]  ;;  %v685_v36 = vrot.slane %v684_v29, 4  ;;  %v692_v37 = vshrl.u32 %v617_v33, 16  ;;  %v695_v39 = vshll.u32 %v617_v33, 16  ;;  %v689_v47 = vrot.slane %v687_v30, 5  ;;  %2049 = vmatpush.bf16.msra.mxu0 %v3023_v61 }
  0xe8   : > { %v541_v41 = vor.u32 %v539_v24, %v538_v31  ;;  %v542_v43 = vrot.slane %v538_v31, 4  ;;  %956 = vmatmul.bf16.gmra.mxu2 %v2501_v32  ;;  %v701_v44 = vshll.u32 %v3415_v35, 16  ;;  %v725_v42 = vrot.slane %v723_v40, 5  ;;  %v1283_v55 = vld [vmem:[#allocation2 + $0x8] sm:$0xf]  ;;  %v2973_v23 = vld [vmem:[%s3806_s3 + $0x98] sm:$0xff] }
  0xe9   : > { %v694_v48 = vrot.slane %v692_v37, 4  ;;  %v697_v49 = vrot.slane %v695_v39, 5  ;;  %v729_v54 = vshll.u32 %v3418_v45, 16  ;;  %1669 = vmatpush.bf16.msra.mxu2 %v3002_v46  ;;  %v2620_v57 = vld [vmem:[#allocation2 + $0x18] sm:$0xf]  ;;  %v690_v58 = vsel %vm3334_vm12, %v685_v36, %v689_v47  ;;  %v3000_v24 = vld [vmem:[%s3806_s3 + $0x150] sm:$0xff]  ;;  %1116 = vmatpush.bf16.msrb.mxu3 %v2973_v23 }
  0xea   : > { %v609_v52 = vsel %vm3306_vm6, %v541_v41, %v608_v26  ;;  %v612_v53 = vsel %vm3310_vm7, %v542_v43, %v611_v27  ;;  %v726_v60 = vor.u32 %v725_v42, %v722_v34  ;;  %v703_v3 = vrot.slane %v701_v44, 5  ;;  %v1285_v9 = vld [vmem:[#allocation2 + $0x10] sm:$0xf]  ;;  %v2952_v18 = vld [vmem:[#allocation2 + $0x24] sm:$0xf0]  ;;  %v3022_v25 = vld [vmem:[%s3806_s3 + $0x1e0] sm:$0xff] }
  0xeb   : > { %610 = vst [vmem:[#allocation2 + $0x40] sm:$0xf] %v609_v52  ;;  %v698_v59 = vor.u32 %v697_v49, %v694_v48  ;;  %v1300_v4 = vshrl.u32 %v1283_v55, 16  ;;  %v780_v5 = vunpack.c.l.b16 %v690_v58  ;;  %v731_v15 = vrot.slane %v729_v54, 5  ;;  %v3447_v22 = vld [vmem:[#allocation2 + $0x14] sm:$0x1]  ;;  %2050 = vmatpush.bf16.msra.mxu0 %v3022_v25 }
  0xec   : > { %613 = vst [vmem:[#allocation2 + $0x44] sm:$0x1] %v612_v53  ;;  %v3442_v2 = vld [vmem:[#allocation2 + $0x24] sm:$0x1]  ;;  %v727_v14 = vrot.slane %v726_v60, 4  ;;  %v1303_v16 = vshll.u32 %v1283_v55, 16 }
  0xed   : > { %v2979_v1 = vld [vmem:[#allocation2 + $0x1c] sm:$0xf0]  ;;  %v699_v63 = vrot.slane %v698_v59, 4  ;;  %1670 = vmatpush.bf16.msra.mxu2 %v3001_v56  ;;  %v715_v21 = vshll.u32 %v3442_v2, 16  ;;  %v1302_v26 = vrot.slane %v1300_v4, 4  ;;  %v1314_v28 = vshrl.u32 %v1285_v9, 16 }
  0xee   : > { %v2621_v62 = vor.u32 %v2979_v1, %v2620_v57  ;;  %v618_v0 = vld [vmem:[#allocation2 + $0x20] sm:$0xf]  ;;  %v1305_v27 = vrot.slane %v1303_v16, 5  ;;  %v620_v29 = vld [vmem:[#allocation2 + $0x30] sm:$0xf]  ;;  %v1317_v32 = vshll.u32 %v1285_v9, 16  ;;  %v732_v39 = vsel %vm3334_vm12, %v727_v14, %v731_v15 }
  0xef   : > { %v706_v6 = vshrl.u32 %v618_v0, 16  ;;  %v709_v8 = vshll.u32 %v618_v0, 16  ;;  %v704_v11 = vsel %vm3334_vm12, %v699_v63, %v703_v3  ;;  %v2504_v12 = vld [vmem:[#allocation2 + $0x20] sm:$0xf]  ;;  %v621_v33 = vld [vmem:[#allocation2 + $0x38] sm:$0xf]  ;;  %v783_v59 = vunpack.c.l.b16 %v732_v39 }
  0xf0   : > { %1259 = vmatmul.bf16.gmra.mxu0 %v2621_v62  ;;  %v781_v17 = vunpack.c.l.b16 %v704_v11  ;;  %v2972_v34 = vld [vmem:[%s3806_s3 + $0x90] sm:$0xff]  ;;  %v2999_v36 = vld [vmem:[%s3806_s3 + $0x148] sm:$0xff]  ;;  %v2505_v37 = vor.u32 %v2952_v18, %v2504_v12  ;;  %v1316_v41 = vrot.slane %v1314_v28, 4  ;;  %v717_v44 = vrot.slane %v715_v21, 5  ;;  %v3021_v48 = vld [vmem:[%s3806_s3 + $0x1d8] sm:$0xff] }
  0xf1   : > { %v708_v19 = vrot.slane %v706_v6, 4  ;;  %v711_v20 = vrot.slane %v709_v8, 5  ;;  %1671 = vmatpush.bf16.msra.mxu2 %v3000_v24  ;;  %v3466_v40 = vld [vmem:[#allocation2 + $0xc] sm:$0x1]  ;;  %v1319_v46 = vrot.slane %v1317_v32, 5  ;;  %v734_v47 = vshrl.u32 %v620_v29, 16  ;;  %1117 = vmatpush.bf16.msrb.mxu3 %v2972_v34 }
  0xf2   : > { %v787_v30 = vpack.c.b16 %v781_v17, %v780_v5  ;;  %v1306_v49 = vor.u32 %v1305_v27, %v1302_v26  ;;  %v1323_v42 = vshll.u32 %v3447_v22, 16  ;;  %v737_v50 = vshll.u32 %v620_v29, 16  ;;  %v2971_v56 = vld [vmem:[%s3806_s3 + $0x88] sm:$0xff]  ;;  %v2998_v57 = vld [vmem:[%s3806_s3 + $0x140] sm:$0xff]  ;;  %v3481_v60 = vld [vmem:[#allocation2 + $0x34] sm:$0x1]  ;;  %2051 = vmatpush.bf16.msra.mxu0 %v3021_v48 }
  0xf3   : > { %v712_v31 = vor.u32 %v711_v20, %v708_v19  ;;  %v748_v51 = vshrl.u32 %v621_v33, 16  ;;  %v1309_v53 = vshll.u32 %v3466_v40, 16  ;;  %v1320_v54 = vor.u32 %v1319_v46, %v1316_v41  ;;  %v1287_v61 = vld [vmem:[#allocation2 + $0x18] sm:$0xf]  ;;  %v2624_v62 = vld [vmem:[#allocation2 + $0x28] sm:$0xf] }
  0xf4   : > { %v751_v55 = vshll.u32 %v621_v33, 16  ;;  %v736_v1 = vrot.slane %v734_v47, 4  ;;  %v739_v3 = vrot.slane %v737_v50, 5  ;;  %v3483_v0 = vld [vmem:[#allocation2 + $0x3c] sm:$0x1]  ;;  %v3020_v6 = vld [vmem:[%s3806_s3 + $0x1d0] sm:$0xff] }
  0xf5   : > { %v713_v43 = vrot.slane %v712_v31, 4  ;;  %855 = vmatmul.bf16.gmra.mxu1 %v787_v30  ;;  %1672 = vmatpush.bf16.msra.mxu2 %v2999_v36  ;;  %v1321_v63 = vrot.slane %v1320_v54, 4  ;;  %v750_v4 = vrot.slane %v748_v51, 4  ;;  %v1307_v9 = vrot.slane %v1306_v49, 4  ;;  %v1289_v14 = vld [vmem:[#allocation2 + $0x20] sm:$0xf] }
  0xf6   : > { %v753_v5 = vrot.slane %v751_v55, 5  ;;  %v1325_v11 = vrot.slane %v1323_v42, 5  ;;  %v757_v12 = vshll.u32 %v3483_v0, 16  ;;  %v2980_v15 = vld [vmem:[#allocation2 + $0x2c] sm:$0xf0]  ;;  %v743_v16 = vshll.u32 %v3481_v60, 16  ;;  %1118 = vmatpush.bf16.msrb.mxu3 %v2971_v56  ;;  %2052 = vmatpush.bf16.msra.mxu0 %v3020_v6 }
  0xf7   : > { %v718_v52 = vsel %vm3334_vm12, %v713_v43, %v717_v44  ;;  %v1328_v18 = vshrl.u32 %v1287_v61, 16  ;;  %v1331_v19 = vshll.u32 %v1287_v61, 16  ;;  %v2970_v20 = vld [vmem:[%s3806_s3 + $0x80] sm:$0xff]  ;;  %v740_v21 = vor.u32 %v739_v3, %v736_v1  ;;  %v3017_v23 = vld [vmem:[%s3806_s3 + $0x1b8] sm:$0xff]  ;;  %v3019_v27 = vld [vmem:[%s3806_s3 + $0x1c8] sm:$0xff] }
  0xf8   : > { %v782_v58 = vunpack.c.l.b16 %v718_v52  ;;  %961 = vmatmul.bf16.gmra.mxu2 %v2505_v37  ;;  %v754_v17 = vor.u32 %v753_v5, %v750_v4  ;;  %v1311_v24 = vrot.slane %v1309_v53, 5  ;;  %v1326_v25 = vsel %vm3334_vm12, %v1321_v63, %v1325_v11  ;;  %v3503_v34 = vld [vmem:[#allocation2 + $0x1c] sm:$0x1]  ;;  %v3018_v46 = vld [vmem:[%s3806_s3 + $0x1c0] sm:$0xff]  ;;  %v2953_v48 = vld [vmem:[#allocation2 + $0x34] sm:$0xf0] }
  0xf9   : > { %1673 = vmatpush.bf16.msra.mxu2 %v2998_v57  ;;  %v1342_v26 = vshrl.u32 %v1289_v14, 16  ;;  %v2625_v28 = vor.u32 %v2980_v15, %v2624_v62  ;;  %v759_v30 = vrot.slane %v757_v12, 5  ;;  %v1345_v31 = vshll.u32 %v1289_v14, 16  ;;  %v1838_v50 = vld [vmem:[#allocation2 + $0x10] sm:$0xf] }
  0xfa   : > { %v788_v8 = vpack.c.b16 %v783_v59, %v782_v58  ;;  %v755_v29 = vrot.slane %v754_v17, 4  ;;  %v1312_v32 = vsel %vm3334_vm12, %v1307_v9, %v1311_v24  ;;  %v745_v33 = vrot.slane %v743_v16, 5  ;;  %1119 = vmatpush.bf16.msrb.mxu3 %v2970_v20  ;;  %2053 = vmatpush.bf16.msra.mxu0 %v3019_v27  ;;  %v3511_v51 = vld [vmem:[#allocation2 + $0x24] sm:$0x1]  ;;  %v2508_v54 = vld [vmem:[#allocation2 + $0x30] sm:$0xf] }
  0xfb   : > { %v1330_v36 = vrot.slane %v1328_v18, 4  ;;  %v1333_v37 = vrot.slane %v1331_v19, 5  ;;  %v1429_v39 = vunpack.c.l.b16 %v1326_v25  ;;  %v741_v41 = vrot.slane %v740_v21, 4  ;;  %v1529_v57 = vld [vmem:[#allocation2 + $0x8] sm:$0xe]  ;;  %v3016_v9 = vld [vmem:[%s3806_s3 + $0x1b0] sm:$0xff] }
  0xfc   : > { %860 = vmatmul.bf16.vlgmr.msra.gmra.mxu3 %v788_v8  ;;  %v1344_v43 = vrot.slane %v1342_v26, 4  ;;  %v1347_v44 = vrot.slane %v1345_v31, 5  ;;  %v1428_v47 = vunpack.c.l.b16 %v1312_v32  ;;  %v760_v49 = vsel %vm3334_vm12, %v755_v29, %v759_v30  ;;  %v1530_v3 = vld [vmem:[#allocation2 + $0x10] sm:$0xe]  ;;  %v1840_v61 = vld [vmem:[#allocation2 + $0x18] sm:$0xf] }
  0xfd   : > { %v1337_v42 = vshll.u32 %v3503_v34, 16  ;;  %v1334_v52 = vor.u32 %v1333_v37, %v1330_v36  ;;  %v746_v55 = vsel %vm3334_vm12, %v741_v41, %v745_v33  ;;  %v1555_v58 = vrot.slane %v3466_v40, 5  ;;  %v972_v6 = vld [vmem:[#allocation2] sm:$0xe]  ;;  %v3033_v40 = vld [vmem:[%s3806_s3 + $0x238] sm:$0xff]  ;;  %v3032_v27 = vld [vmem:[%s3806_s3 + $0x230] sm:$0xff] }
  0xfe   : > { %1801 = vmatpush.bf16.msra.mxu3 %v3017_v23  ;;  %v1436_v53 = vpack.c.b16 %v1429_v39, %v1428_v47  ;;  %v1348_v56 = vor.u32 %v1347_v44, %v1344_v43  ;;  %v2509_v59 = vor.u32 %v2953_v48, %v2508_v54  ;;  %v785_v1 = vunpack.c.l.b16 %v760_v49  ;;  %2054 = vmatpush.bf16.msra.mxu0 %v3018_v46  ;;  %v1291_v14 = vld [vmem:[#allocation2 + $0x28] sm:$0xf]  ;;  %v2981_v15 = vld [vmem:[#allocation2 + $0x3c] sm:$0xf0]  ;;  %v1293_v26 = vld [vmem:[#allocation2 + $0x30] sm:$0xf] }
  0xff   : > { %v1855_v62 = vshrl.u32 %v1838_v50, 16  ;;  %v1559_v63 = vrot.slane %v3447_v22, 5  ;;  %v3517_v4 = vrot.slane %v1337_v42, 5  ;;  %v1351_v5 = vshll.u32 %v3511_v51, 16  ;;  %v2628_v22 = vld [vmem:[#allocation2 + $0x38] sm:$0xf]  ;;  %2221 = vmatpush.bf16.msra.mxu1 %v3033_v40 }
 0x100   : > { %1264 = vmatmul.bf16.gmra.mxu0 %v2625_v28  ;;  %v1858_v8 = vshll.u32 %v1838_v50, 16  ;;  %v784_v11 = vunpack.c.l.b16 %v746_v55  ;;  %v1335_v12 = vrot.slane %v1334_v52, 4  ;;  %v1349_v16 = vrot.slane %v1348_v56, 4  ;;  %v973_v18 = vld [vmem:[#allocation2 + $0x8] sm:$0xe] }
 0x101   : > { %v2710_v17 = vrot.slane %v1529_v57, 9  ;;  %v1869_v19 = vshrl.u32 %v1840_v61, 16  ;;  %v1872_v20 = vshll.u32 %v1840_v61, 16  ;;  %v2711_v23 = vrot.slane %v1530_v3, 9  ;;  %v3535_v30 = vld [vmem:[#allocation2 + $0x14] sm:$0x1] }
 0x102   : > { %1802 = vmatpush.bf16.msra.mxu3 %v3016_v9  ;;  %v789_v21 = vpack.c.b16 %v785_v1, %v784_v11  ;;  %v1857_v24 = vrot.slane %v1855_v62, 4  ;;  %v1860_v25 = vrot.slane %v1858_v8, 5  ;;  %v1353_v28 = vrot.slane %v1351_v5, 5  ;;  %v3538_v41 = vld [vmem:[#allocation2 + $0x1c] sm:$0x1]  ;;  %v3015_v49 = vld [vmem:[%s3806_s3 + $0x1a8] sm:$0xff] }
 0x103   : > { %v1871_v31 = vrot.slane %v1869_v19, 4  ;;  %v1874_v32 = vrot.slane %v1872_v20, 5  ;;  %v1356_v33 = vshrl.u32 %v1291_v14, 16  ;;  %v2542_v36 = vrot.slane %v972_v6, 9  ;;  %2222 = vmatpush.bf16.msra.mxu1 %v3032_v27  ;;  %v3562_v61 = vld [vmem:[#allocation2 + $0x2c] sm:$0x1] }
 0x104   : > { %v1001_v37 = vrot.slane %v3314_v10, 5  ;;  %v2543_v39 = vrot.slane %v973_v18, 9  ;;  %v1359_v43 = vshll.u32 %v1291_v14, 16  ;;  %v1354_v44 = vsel %vm3334_vm12, %v1349_v16, %v1353_v28  ;;  %v3031_v10 = vld [vmem:[%s3806_s3 + $0x228] sm:$0xff]  ;;  %v1532_v40 = vld [vmem:[#allocation2 + $0x20] sm:$0xe] }
 0x105   : > { %1500 = vmatmul.bf16.vlgmr.msrb.gmra.mxu1 %v1436_v53  ;;  %v1005_v46 = vrot.slane %v3359_v13, 5  ;;  %v1370_v47 = vshrl.u32 %v1293_v26, 16  ;;  %v1373_v48 = vshll.u32 %v1293_v26, 16  ;;  %v2629_v42 = vor.u32 %v2981_v15, %v2628_v22  ;;  %v1531_v15 = vld [vmem:[#allocation2 + $0x18] sm:$0xe] }
 0x106   : > { %v1340_v50 = vsel %vm3334_vm12, %v1335_v12, %v3517_v4  ;;  %v1556_v52 = vsel %vm3531_vm3, %v2710_v17, %v1555_v58  ;;  %v1861_v13 = vor.u32 %v1860_v25, %v1857_v24  ;;  %v1560_v53 = vsel %vm3531_vm3, %v2711_v23, %v1559_v63  ;;  %1803 = vmatpush.bf16.msra.mxu3 %v3015_v49  ;;  %v3030_v4 = vld [vmem:[%s3806_s3 + $0x220] sm:$0xff]  ;;  %v1844_v27 = vld [vmem:[#allocation2 + $0x28] sm:$0xf] }
 0x107   : > { %v1875_v54 = vor.u32 %v1874_v32, %v1871_v31  ;;  %v1358_v55 = vrot.slane %v1356_v33, 4  ;;  %v1361_v56 = vrot.slane %v1359_v43, 5  ;;  %v1431_v57 = vunpack.c.l.b16 %v1354_v44  ;;  %2223 = vmatpush.bf16.msra.mxu1 %v3031_v10  ;;  %v1842_v16 = vld [vmem:[#allocation2 + $0x20] sm:$0xf]  ;;  %v3029_v44 = vld [vmem:[%s3806_s3 + $0x218] sm:$0xff] }
 0x108   : > { %966 = vmatmul.bf16.gmra.mxu2 %v2509_v59  ;;  %v1002_v59 = vsel %vm3531_vm3, %v2542_v36, %v1001_v37  ;;  %v1864_v1 = vshll.u32 %v3535_v30, 16  ;;  %v1878_v3 = vshll.u32 %v3538_v41, 16  ;;  %v1006_v58 = vsel %vm3531_vm3, %v2543_v39, %v1005_v46 }
 0x109   : > { %v1372_v62 = vrot.slane %v1370_v47, 4  ;;  %v1375_v63 = vrot.slane %v1373_v48, 5  ;;  %v1430_v5 = vunpack.c.l.b16 %v1340_v50  ;;  %v1602_v6 = vunpack.c.l.b16 %v1556_v52  ;;  %v974_v47 = vld [vmem:[#allocation2 + $0x10] sm:$0xe] }
 0x10a   : > { %v1862_v8 = vrot.slane %v1861_v13, 4  ;;  %v1365_v9 = vshll.u32 %v3562_v61, 16  ;;  %v1603_v11 = vunpack.c.l.b16 %v1560_v53  ;;  %v1048_v12 = vunpack.c.l.b16 %v1002_v59 }
 0x10b   : > { %v1876_v14 = vrot.slane %v1875_v54, 4  ;;  %v1362_v22 = vor.u32 %v1361_v56, %v1358_v55  ;;  %v1437_v17 = vpack.c.b16 %v1431_v57, %v1430_v5  ;;  %v1049_v18 = vunpack.c.l.b16 %v1006_v58  ;;  %2224 = vmatpush.bf16.msra.mxu1 %v3030_v4  ;;  %v1295_v56 = vld [vmem:[#allocation2 + $0x38] sm:$0xf]  ;;  %v3028_v57 = vld [vmem:[%s3806_s3 + $0x210] sm:$0xff]  ;;  %v3593_v5 = vld [vmem:[#allocation2 + $0x24] sm:$0x1] }
 0x10c   : > { %865 = vmatmul.bf16.gmra.mxu3 %v789_v21  ;;  %v1866_v19 = vrot.slane %v1864_v1, 5  ;;  %v1880_v20 = vrot.slane %v1878_v3, 5  ;;  %v3568_v21 = vld [vmem:[#allocation2 + $0x34] sm:$0x1]  ;;  %v1376_v23 = vor.u32 %v1375_v63, %v1372_v62  ;;  %v2713_v25 = vrot.slane %v1532_v40, 9 }
 0x10d   : > { %v1379_v24 = vshll.u32 %v3568_v21, 16  ;;  %v1567_v26 = vrot.slane %v3511_v51, 5  ;;  %v1367_v31 = vrot.slane %v1365_v9, 5  ;;  %v2712_v32 = vrot.slane %v1531_v15, 9  ;;  %v3014_v51 = vld [vmem:[%s3806_s3 + $0x1a0] sm:$0xff] }
 0x10e   : > { %v1867_v28 = vsel %vm3334_vm12, %v1862_v8, %v1866_v19  ;;  %v1883_v33 = vshrl.u32 %v1842_v16, 16  ;;  %v1881_v36 = vsel %vm3334_vm12, %v1876_v14, %v1880_v20  ;;  %v1363_v37 = vrot.slane %v1362_v22, 4  ;;  %1804 = vmatpush.bf16.msra.mxu3 %v3014_v51  ;;  %v1297_v62 = vld [vmem:[#allocation2 + $0x40] sm:$0xf]  ;;  %v3027_v14 = vld [vmem:[%s3806_s3 + $0x208] sm:$0xff] }
 0x10f   : > { %v1563_v39 = vrot.slane %v3503_v34, 5  ;;  %v1886_v43 = vshll.u32 %v1842_v16, 16  ;;  %v1610_v46 = vpack.c.b16 %v1603_v11, %v1602_v6  ;;  %v1897_v48 = vshrl.u32 %v1844_v27, 16  ;;  %v975_v34 = vld [vmem:[#allocation2 + $0x18] sm:$0xe]  ;;  %2225 = vmatpush.bf16.msra.mxu1 %v3029_v44 }
 0x110   : > { %1269 = vmatmul.bf16.gmra.mxu0 %v2629_v42  ;;  %v1900_v49 = vshll.u32 %v1844_v27, 16  ;;  %v1056_v10 = vpack.c.b16 %v1049_v18, %v1048_v12  ;;  %v1377_v42 = vrot.slane %v1376_v23, 4  ;;  %v1381_v50 = vrot.slane %v1379_v24, 5  ;;  %v976_v18 = vld [vmem:[#allocation2 + $0x20] sm:$0xe] }
 0x111   : > { %v1568_v52 = vsel %vm3531_vm3, %v2713_v25, %v1567_v26  ;;  %v1983_v13 = vunpack.c.l.b16 %v1867_v28  ;;  %v1984_v53 = vunpack.c.l.b16 %v1881_v36  ;;  %v1885_v54 = vrot.slane %v1883_v33, 4  ;;  %v3608_v23 = vld [vmem:[#allocation2 + $0x2c] sm:$0x1]  ;;  %v3620_v44 = vld [vmem:[#allocation2 + $0x3c] sm:$0x1] }
 0x112   : > { %v1888_v55 = vrot.slane %v1886_v43, 5  ;;  %v1368_v59 = vsel %vm3334_vm12, %v1363_v37, %v1367_v31  ;;  %v1564_v1 = vsel %vm3531_vm3, %v2712_v32, %v1563_v39  ;;  %v2544_v3 = vrot.slane %v974_v47, 9  ;;  %v977_v31 = vld [vmem:[#allocation2 + $0x28] sm:$0xe]  ;;  %v3026_v39 = vld [vmem:[%s3806_s3 + $0x200] sm:$0xff]  ;;  %v3012_v43 = vld [vmem:[%s3806_s3 + $0x190] sm:$0xff] }
 0x113   : > { %v1009_v58 = vrot.slane %v3396_v7, 5  ;;  %v1605_v63 = vunpack.c.l.b16 %v1568_v52  ;;  %v2545_v4 = vrot.slane %v975_v34, 9  ;;  %v1899_v6 = vrot.slane %v1897_v48, 4  ;;  %2226 = vmatpush.bf16.msra.mxu1 %v3028_v57  ;;  %v3013_v7 = vld [vmem:[%s3806_s3 + $0x198] sm:$0xff] }
 0x114   : > { %v1902_v8 = vrot.slane %v1900_v49, 5  ;;  %v1382_v9 = vsel %vm3334_vm12, %v1377_v42, %v1381_v50  ;;  %v1013_v40 = vrot.slane %v3415_v35, 5  ;;  %v1384_v11 = vshrl.u32 %v1295_v56, 16  ;;  %1805 = vmatpush.bf16.msra.mxu3 %v3013_v7  ;;  %v1533_v50 = vld [vmem:[#allocation2 + $0x28] sm:$0xe] }
 0x115   : > { %1505 = vmatmul.bf16.gmra.mxu1 %v1437_v17  ;;  %v1387_v12 = vshll.u32 %v1295_v56, 16  ;;  %v1604_v22 = vunpack.c.l.b16 %v1564_v1  ;;  %v1889_v15 = vor.u32 %v1888_v55, %v1885_v54  ;;  %v1398_v16 = vshrl.u32 %v1297_v62, 16  ;;  %v1848_v55 = vld [vmem:[#allocation2 + $0x38] sm:$0xf]  ;;  %v1534_v1 = vld [vmem:[#allocation2 + $0x30] sm:$0xe] }
 0x116   : > { %v1401_v17 = vshll.u32 %v1297_v62, 16  ;;  %v1991_v19 = vpack.c.b16 %v1984_v53, %v1983_v13  ;;  %v1432_v20 = vunpack.c.l.b16 %v1368_v59  ;;  %v3606_v35 = vsel %vm3531_vm3, %v2544_v3, %v1009_v58  ;;  %v3628_v59 = vld [vmem:[#allocation2 + $0x44] sm:$0x1] }
 0x117   : > { %v1892_v24 = vshll.u32 %v3593_v5, 16  ;;  %v1433_v25 = vunpack.c.l.b16 %v1382_v9  ;;  %v1611_v26 = vpack.c.b16 %v1605_v63, %v1604_v22  ;;  %v1903_v27 = vor.u32 %v1902_v8, %v1899_v6  ;;  %2227 = vmatpush.bf16.msra.mxu1 %v3027_v14  ;;  %v1846_v9 = vld [vmem:[#allocation2 + $0x30] sm:$0xf] }
 0x118   : > { %1674 = vmatmul.bf16.vlgmr.msra.gmra.mxu2 %v1610_v46  ;;  %v1906_v28 = vshll.u32 %v3608_v23, 16  ;;  %v1014_v32 = vsel %vm3531_vm3, %v2545_v4, %v1013_v40  ;;  %v1386_v33 = vrot.slane %v1384_v11, 4  ;;  %v1389_v36 = vrot.slane %v1387_v12, 5  ;;  %1806 = vmatpush.bf16.msra.mxu3 %v3012_v43 }
 0x119   : > { %v2546_v37 = vrot.slane %v976_v18, 9  ;;  %v1890_v51 = vrot.slane %v1889_v15, 4  ;;  %v1400_v46 = vrot.slane %v1398_v16, 4  ;;  %v1403_v47 = vrot.slane %v1401_v17, 5 }
 0x11a   : > { %v1017_v48 = vrot.slane %v3442_v2, 5  ;;  %v1050_v49 = vunpack.c.l.b16 %v3606_v35  ;;  %v1393_v42 = vshll.u32 %v3620_v44, 16  ;;  %v2547_v52 = vrot.slane %v977_v31, 9  ;;  %v978_v31 = vld [vmem:[#allocation2 + $0x30] sm:$0xe] }
 0x11b   : > { %v1904_v34 = vrot.slane %v1903_v27, 4  ;;  %v1908_v13 = vrot.slane %v1906_v28, 5  ;;  %v1021_v54 = vrot.slane %v3418_v45, 5  ;;  %v1438_v56 = vpack.c.b16 %v1433_v25, %v1432_v20  ;;  %2228 = vmatpush.bf16.msra.mxu1 %v3026_v39  ;;  %v3652_v39 = vld [vmem:[#allocation2 + $0x3c] sm:$0x1] }
 0x11c   : > { %1120 = vmatmul.bf16.vlgmr.msrb.gmra.mxu3 %v1056_v10  ;;  %v1894_v10 = vrot.slane %v1892_v24, 5  ;;  %v1018_v53 = vsel %vm3531_vm3, %v2546_v37, %v1017_v48  ;;  %v1051_v57 = vunpack.c.l.b16 %v1014_v32  ;;  %v1390_v2 = vor.u32 %v1389_v36, %v1386_v33  ;;  %v979_v32 = vld [vmem:[#allocation2 + $0x38] sm:$0xe]  ;;  %v3011_v36 = vld [vmem:[%s3806_s3 + $0x188] sm:$0xff] }
 0x11d   : > { %v1052_v3 = vunpack.c.l.b16 %v1018_v53  ;;  %v1404_v62 = vor.u32 %v1403_v47, %v1400_v46  ;;  %v1407_v63 = vshll.u32 %v3628_v59, 16  ;;  %v1022_v4 = vsel %vm3531_vm3, %v2547_v52, %v1021_v54  ;;  %1807 = vmatpush.bf16.msra.mxu3 %v3011_v36  ;;  %v3010_v54 = vld [vmem:[%s3806_s3 + $0x180] sm:$0xff] }
 0x11e   : > { %v1895_v58 = vsel %vm3334_vm12, %v1890_v51, %v1894_v10  ;;  %v1395_v45 = vrot.slane %v1393_v42, 5  ;;  %v2714_v6 = vrot.slane %v1533_v50, 9  ;;  %v1053_v8 = vunpack.c.l.b16 %v1022_v4  ;;  %v1852_v4 = vld [vmem:[#allocation2 + $0x48] sm:$0xf] }
 0x11f   : > { %v1925_v40 = vshrl.u32 %v1848_v55, 16  ;;  %v1909_v11 = vsel %vm3334_vm12, %v1904_v34, %v1908_v13  ;;  %v1571_v12 = vrot.slane %v3562_v61, 5  ;;  %v2715_v7 = vrot.slane %v1534_v1, 9  ;;  %v3657_v13 = vld [vmem:[#allocation2 + $0x34] sm:$0x1] }
 0x120   : > { %2055 = vmatmul.bf16.vlgmr.msra.gmra.mxu0 %v1991_v19  ;;  %v1928_v14 = vshll.u32 %v1848_v55, 16  ;;  %v1985_v22 = vunpack.c.l.b16 %v1895_v58  ;;  %v1391_v15 = vrot.slane %v1390_v2, 4  ;;  %v1575_v16 = vrot.slane %v3568_v21, 5 }
 0x121   : > { %v3639_v17 = vpack.c.b16 %v1053_v8, %v1052_v3  ;;  %v1405_v18 = vrot.slane %v1404_v62, 4  ;;  %v1409_v19 = vrot.slane %v1407_v63, 5  ;;  %v1911_v20 = vshrl.u32 %v1846_v9, 16  ;;  %1808 = vmatpush.bf16.msra.mxu3 %v3010_v54  ;;  %v1850_v63 = vld [vmem:[#allocation2 + $0x40] sm:$0xf] }
 0x122   : > { %v1914_v35 = vshll.u32 %v1846_v9, 16  ;;  %v1057_v24 = vpack.c.b16 %v1051_v57, %v1050_v49  ;;  %v1986_v25 = vunpack.c.l.b16 %v1909_v11  ;;  %v1927_v27 = vrot.slane %v1925_v40, 4  ;;  %v2084_v8 = vld [vmem:[#allocation2 + $0x10] sm:$0xe]  ;;  %v2085_v11 = vld [vmem:[#allocation2 + $0x18] sm:$0xe] }
 0x123   : > { %v1930_v28 = vrot.slane %v1928_v14, 5  ;;  %v1396_v33 = vsel %vm3334_vm12, %v1391_v15, %v1395_v45  ;;  %v1572_v21 = vsel %vm3531_vm3, %v2714_v6, %v1571_v12  ;;  %v1410_v37 = vsel %vm3334_vm12, %v1405_v18, %v1409_v19  ;;  %v1535_v12 = vld [vmem:[#allocation2 + $0x38] sm:$0xe] }
 0x124   : > { %v1992_v61 = vpack.c.b16 %v1986_v25, %v1985_v22  ;;  %v1913_v43 = vrot.slane %v1911_v20, 4  ;;  %v1916_v51 = vrot.slane %v1914_v35, 5  ;;  %v2548_v46 = vrot.slane %v978_v31, 9 }
 0x125   : > { %1510 = vmatmul.bf16.gmra.mxu1 %v1438_v56  ;;  %v1931_v47 = vor.u32 %v1930_v28, %v1927_v27  ;;  %v1934_v48 = vshll.u32 %v3652_v39, 16  ;;  %v1025_v49 = vrot.slane %v3481_v60, 5  ;;  %v2549_v10 = vrot.slane %v979_v32, 9 }
 0x126   : > { %v1029_v42 = vrot.slane %v3483_v0, 5  ;;  %v1434_v50 = vunpack.c.l.b16 %v1396_v33  ;;  %v1435_v52 = vunpack.c.l.b16 %v1410_v37  ;;  %v1606_v34 = vunpack.c.l.b16 %v1572_v21 }
 0x127   : > { %v1026_v53 = vsel %vm3531_vm3, %v2548_v46, %v1025_v49  ;;  %v1917_v56 = vor.u32 %v1916_v51, %v1913_v43  ;;  %v1920_v60 = vshll.u32 %v3657_v13, 16  ;;  %v1932_v57 = vrot.slane %v1931_v47, 4  ;;  %v3686_v43 = vld [vmem:[#allocation2 + $0x44] sm:$0x1]  ;;  %v3688_v51 = vld [vmem:[#allocation2 + $0x4c] sm:$0x1] }
 0x128   : > { %1679 = vmatmul.bf16.gmra.mxu2 %v1611_v26  ;;  %v1576_v26 = vsel %vm3531_vm3, %v2715_v7, %v1575_v16  ;;  %v1030_v0 = vsel %vm3531_vm3, %v2549_v10, %v1029_v42  ;;  %v1936_v2 = vrot.slane %v1934_v48, 5  ;;  %v1054_v1 = vunpack.c.l.b16 %v1026_v53  ;;  %v1536_v7 = vld [vmem:[#allocation2 + $0x40] sm:$0xe] }
 0x129   : > { %v1607_v55 = vunpack.c.l.b16 %v1576_v26  ;;  %v1055_v3 = vunpack.c.l.b16 %v1030_v0  ;;  %v1439_v58 = vpack.c.b16 %v1435_v52, %v1434_v50  ;;  %v1918_v45 = vrot.slane %v1917_v56, 4  ;;  %v2086_v56 = vld [vmem:[#allocation2 + $0x20] sm:$0xe] }
 0x12a   : > { %v1922_v6 = vrot.slane %v1920_v60, 5  ;;  %v1937_v40 = vsel %vm3334_vm12, %v1932_v57, %v1936_v2  ;;  %v1939_v14 = vshrl.u32 %v1850_v63, 16  ;;  %v1942_v22 = vshll.u32 %v1850_v63, 16  ;;  %v2087_v2 = vld [vmem:[#allocation2 + $0x28] sm:$0xe] }
 0x12b   : > { %v3667_v62 = vpack.c.b16 %v1055_v3, %v1054_v1  ;;  %v1612_v9 = vpack.c.b16 %v1607_v55, %v1606_v34  ;;  %v1953_v15 = vshrl.u32 %v1852_v4, 16  ;;  %v1956_v16 = vshll.u32 %v1852_v4, 16 }
 0x12c   : > { %1125 = vmatmul.bf16.gmra.mxu3 %v1057_v24  ;;  %v2878_v18 = vrot.slane %v2084_v8, 9  ;;  %v2110_v19 = vrot.slane %v3535_v30, 5  ;;  %v1923_v20 = vsel %vm3334_vm12, %v1918_v45, %v1922_v6  ;;  %v2879_v35 = vrot.slane %v2085_v11, 9 }
 0x12d   : > { %v2114_v24 = vrot.slane %v3538_v41, 5  ;;  %v2716_v25 = vrot.slane %v1535_v12, 9  ;;  %v1988_v27 = vunpack.c.l.b16 %v1937_v40  ;;  %v1579_v28 = vrot.slane %v3620_v44, 5  ;;  %v3006_v12 = vld [vmem:[#allocation2 + $0x14] sm:$0xf0] }
 0x12e   : > { %v2717_v31 = vrot.slane %v1536_v7, 9  ;;  %v1583_v32 = vrot.slane %v3628_v59, 5  ;;  %v1944_v33 = vrot.slane %v1942_v22, 5  ;;  %v1955_v21 = vrot.slane %v1953_v15, 4  ;;  %v2088_v7 = vld [vmem:[#allocation2 + $0x30] sm:$0xe] }
 0x12f   : > { %v1958_v26 = vrot.slane %v1956_v16, 5  ;;  %v1987_v30 = vunpack.c.l.b16 %v1923_v20  ;;  %v2115_v36 = vsel %vm3531_vm3, %v2879_v35, %v2114_v24  ;;  %v2111_v41 = vsel %vm3531_vm3, %v2878_v18, %v2110_v19 }
 0x130   : > { %2060 = vmatmul.bf16.gmra.mxu0 %v1992_v61  ;;  %v1941_v61 = vrot.slane %v1939_v14, 4  ;;  %v1580_v44 = vsel %vm3531_vm3, %v2716_v25, %v1579_v28  ;;  %v1584_v59 = vsel %vm3531_vm3, %v2717_v31, %v1583_v32  ;;  %v1962_v48 = vshll.u32 %v3688_v51, 16  ;;  %v2784_v14 = vld [vmem:[#allocation2 + $0x10] sm:$0xf]  ;;  %v2091_v32 = vld [vmem:[#allocation2 + $0x48] sm:$0xe] }
 0x131   : > { %v1993_v37 = vpack.c.b16 %v1988_v27, %v1987_v30  ;;  %v1959_v47 = vor.u32 %v1958_v26, %v1955_v21  ;;  %v2158_v49 = vunpack.c.l.b16 %v2115_v36  ;;  %v2157_v10 = vunpack.c.l.b16 %v2111_v41 }
 0x132   : > { %v1945_v46 = vor.u32 %v1944_v33, %v1941_v61  ;;  %v1608_v42 = vunpack.c.l.b16 %v1580_v44  ;;  %v1609_v50 = vunpack.c.l.b16 %v1584_v59  ;;  %v1964_v54 = vrot.slane %v1962_v48, 5  ;;  %v2788_v61 = vld [vmem:[#allocation2 + $0x20] sm:$0xf]  ;;  %v3007_v33 = vld [vmem:[#allocation2 + $0x24] sm:$0xf0] }
 0x133   : > { %v1960_v53 = vrot.slane %v1959_v47, 4  ;;  %v2165_v55 = vpack.c.b16 %v2158_v49, %v2157_v10  ;;  %v2880_v1 = vrot.slane %v2086_v56, 9  ;;  %v2118_v3 = vrot.slane %v3593_v5, 5  ;;  %v2089_v5 = vld [vmem:[#allocation2 + $0x38] sm:$0xe] }
 0x134   : > { %v1946_v52 = vrot.slane %v1945_v46, 4  ;;  %v1613_v60 = vpack.c.b16 %v1609_v50, %v1608_v42  ;;  %v2881_v4 = vrot.slane %v2087_v2, 9  ;;  %v2122_v45 = vrot.slane %v3608_v23, 5  ;;  %v2792_v10 = vld [vmem:[#allocation2 + $0x30] sm:$0xf] }
 0x135   : > { %1515 = vmatmul.bf16.gmra.mxu1 %v1439_v58  ;;  %v1965_v57 = vsel %vm3334_vm12, %v1960_v53, %v1964_v54  ;;  %v2119_v6 = vsel %vm3531_vm3, %v2880_v1, %v2118_v3  ;;  %v2883_v22 = vrot.slane %v2089_v5, 9  ;;  %v2130_v23 = vrot.slane %v3652_v39, 5  ;;  %v2090_v39 = vld [vmem:[#allocation2 + $0x40] sm:$0xe] }
 0x136   : > { %v1990_v63 = vunpack.c.l.b16 %v1965_v57  ;;  %v2123_v38 = vsel %vm3531_vm3, %v2881_v4, %v2122_v45  ;;  %v2882_v16 = vrot.slane %v2088_v7, 9  ;;  %v2126_v18 = vrot.slane %v3657_v13, 5 }
 0x137   : > { %v2160_v40 = vunpack.c.l.b16 %v2123_v38  ;;  %v2131_v19 = vsel %vm3531_vm3, %v2883_v22, %v2130_v23  ;;  %v2884_v13 = vrot.slane %v2090_v39, 9  ;;  %v2134_v21 = vrot.slane %v3686_v43, 5 }
 0x138   : > { %1684 = vmatmul.bf16.gmra.mxu2 %v1612_v9  ;;  %v2159_v9 = vunpack.c.l.b16 %v2119_v6  ;;  %v2127_v20 = vsel %vm3531_vm3, %v2882_v16, %v2126_v18  ;;  %v2162_v35 = vunpack.c.l.b16 %v2131_v19  ;;  %v2885_v26 = vrot.slane %v2091_v32, 9 }
 0x139   : > { %v2161_v24 = vunpack.c.l.b16 %v2127_v20  ;;  %v2138_v30 = vrot.slane %v3688_v51, 5  ;;  %v2789_v36 = vor.u32 %v3007_v33, %v2788_v61  ;;  %v2135_v44 = vsel %vm3531_vm3, %v2884_v13, %v2134_v21  ;;  %v3008_v51 = vld [vmem:[#allocation2 + $0x34] sm:$0xf0] }
 0x13a   : > { %v2166_v11 = vpack.c.b16 %v2160_v40, %v2159_v9  ;;  %v2163_v46 = vunpack.c.l.b16 %v2135_v44  ;;  %v2793_v42 = vor.u32 %v3008_v51, %v2792_v10 }
 0x13b   : > { %v2167_v31 = vpack.c.b16 %v2162_v35, %v2161_v24  ;;  %v2139_v59 = vsel %vm3531_vm3, %v2885_v26, %v2138_v30 }
 0x13c   : > { %1130 = vmatmul.bf16.gmra.mxu3 %v3639_v17  ;;  %v1948_v17 = vshll.u32 %v3686_v43, 16 }
 0x13e   : > { %v1950_v34 = vrot.slane %v1948_v17, 5  ;;  %v2164_v17 = vunpack.c.l.b16 %v2139_v59 }
 0x140   : > { %2065 = vmatmul.bf16.gmra.mxu0 %v1993_v37  ;;  %v1951_v0 = vsel %vm3334_vm12, %v1946_v52, %v1950_v34  ;;  %v2168_v43 = vpack.c.b16 %v2164_v17, %v2163_v46 }
 0x141   : > { %v1989_v58 = vunpack.c.l.b16 %v1951_v0  ;;  %v3009_v0 = vld [vmem:[#allocation2 + $0x44] sm:$0xf0] }
 0x143   : > { %v1994_v8 = vpack.c.b16 %v1990_v63, %v1989_v58 }
 0x145   : > { %2229 = vmatmul.bf16.vlgmr.msra.gmra.mxu1 %v2165_v55 }
 0x148   : > { %1689 = vmatmul.bf16.gmra.mxu2 %v1613_v60  ;;  %v2796_v60 = vld [vmem:[#allocation2 + $0x40] sm:$0xf] }
 0x149   : > { %v2797_v57 = vor.u32 %v3009_v0, %v2796_v60 }
 0x14c   : > { %1135 = vmatmul.bf16.gmra.mxu3 %v3667_v62  ;;  %v2785_v62 = vor.u32 %v3006_v12, %v2784_v14 }
 0x150   : > { %2070 = vmatmul.bf16.gmra.mxu0 %v1994_v8 }
 0x155   : > { %2234 = vmatmul.bf16.gmra.mxu1 %v2166_v11 }
 0x15a   : > { %v952_v15 = vpop.f32.mrf.mxu2 }
 0x15c   : > { %1809 = vmatmul.bf16.vlgmr.msra.gmra.mxu3 %v2785_v62 }
 0x15d   : > { %v1255_v54 = vpop.f32.mrf.mxu0 }
 0x162   : > { %v851_v25 = vpop.f32.mrf.mxu1  ;;  %v3709_v27 = vpop.f32.mrf.mxu2 }
 0x163   : > { %v953_v28 = vadd.f32 %v952_v15, %v851_v25 }
 0x165   : > { %2239 = vmatmul.bf16.gmra.mxu1 %v2167_v31  ;;  %v1257_v2 = vpop.f32.mrf.mxu0 }
 0x16a   : > { %v3713_v37 = vpop.f32.mrf.mxu1 }
 0x16b   : > { %v957_v41 = vpop.f32.mrf.mxu2  ;;  %v955_v44 = vadd.f32 %v3709_v27, %v3713_v37 }
 0x16c   : > { %1814 = vmatmul.bf16.gmra.mxu3 %v2789_v36 }
 0x16d   : > { %v1260_v4 = vpop.f32.mrf.mxu0 }
 0x172   : > { %v856_v47 = vpop.f32.mrf.mxu1 }
 0x173   : > { %v958_v48 = vadd.f32 %v957_v41, %v856_v47  ;;  %v3719_v49 = vpop.f32.mrf.mxu2 }
 0x175   : > { %2244 = vmatmul.bf16.gmra.mxu1 %v2168_v43  ;;  %v1262_v9 = vpop.f32.mrf.mxu0 }
 0x17a   : > { %v3721_v50 = vpop.f32.mrf.mxu1 }
 0x17b   : > { %v962_v52 = vpop.f32.mrf.mxu2  ;;  %v960_v0 = vadd.f32 %v3719_v49, %v3721_v50 }
 0x17c   : > { %1819 = vmatmul.bf16.gmra.mxu3 %v2793_v42 }
 0x17d   : > { %v1265_v12 = vpop.f32.mrf.mxu0 }
 0x17f   : > { %v861_v34 = vpop.f32.mrf.mxu3 }
 0x180   : > { %v963_v53 = vadd.f32 %v962_v52, %v861_v34 }
 0x182   : > { %v1501_v29 = vpop.f32.mrf.mxu1 }
 0x183   : > { %v3723_v55 = vpop.f32.mrf.mxu2 }
 0x185   : > { %v3731_v62 = vpop.f32.mrf.mxu0 }
 0x187   : > { %v3725_v56 = vpop.f32.mrf.mxu3 }
 0x18a   : > { %v1503_v1 = vpop.f32.mrf.mxu1 }
 0x18b   : > { %v967_v3 = vpop.f32.mrf.mxu2 }
 0x18c   : > { %1824 = vmatmul.bf16.gmra.mxu3 %v2797_v57 }
 0x18d   : > { %v1270_v19 = vpop.f32.mrf.mxu0 }
 0x18f   : > { %v866_v58 = vpop.f32.mrf.mxu3 }
 0x190   : > { %v968_v63 = vadd.f32 %v967_v3, %v866_v58 }
 0x192   : > { %v1506_v6 = vpop.f32.mrf.mxu1 }
 0x195   : > { %v3741_v39 = vpop.f32.mrf.mxu0 }
 0x197   : > { %v3727_v45 = vpop.f32.mrf.mxu3 }
 0x19a   : > { %v3729_v11 = vpop.f32.mrf.mxu1 }
 0x19d   : > { %v2056_v26 = vpop.f32.mrf.mxu0 }
 0x19f   : > { %v1121_v8 = vpop.f32.mrf.mxu3 }
 0x1a0   : > { %v1141_v38 = vadd.f32 %v1121_v8, %v953_v28  ;;  %v3737_v28 = vpop.f32.mrf.mxu2 }
 0x1a2   : > { %v1275_v40 = vadd.f32 %v1255_v54, %v1141_v38  ;;  %v1511_v7 = vpop.f32.mrf.mxu1  ;;  %v3752_v54 = vld [vmem:[%s3807_s4] ss:$0 sm:$0xff] }
 0x1a4   : > { %v1521_v18 = vadd.f32 %v1501_v29, %v1275_v40 }
 0x1a5   : > { %v2058_v17 = vpop.f32.mrf.mxu0 }
 0x1a7   : > { %v1123_v5 = vpop.f32.mrf.mxu3 }
 0x1a8   : > { %v1675_v61 = vpop.f32.mrf.mxu2  ;;  %v1142_v46 = vadd.f32 %v1123_v5, %v955_v44 }
 0x1aa   : > { %v3733_v15 = vpop.f32.mrf.mxu1  ;;  %v1276_v47 = vadd.f32 %v1257_v2, %v1142_v46 }
 0x1ac   : > { %v1522_v52 = vadd.f32 %v1503_v1, %v1276_v47  ;;  %v300_v47 = vld [vmem:[%s3219_s9 + $0x8] sm:$0xff]  }
 0x1ad   : > { %v2061_v37 = vpop.f32.mrf.mxu0 }
 0x1af   : > { %v1126_v14 = vpop.f32.mrf.mxu3 }
 0x1b0   : > { %v1143_v22 = vadd.f32 %v1126_v14, %v958_v48  ;;  %v1677_v59 = vpop.f32.mrf.mxu2  ;;  %v1695_v48 = vadd.f32 %v1675_v61, %v1521_v18 }
 0x1b1   : > { %v1696_v27 = vadd.f32 %v1677_v59, %v1522_v52  ;;  %v2297_v52 = vunpack.c.h.bf16 %v300_v47 }
 0x1b2   : > { %v1277_v23 = vadd.f32 %v1260_v4, %v1143_v22  ;;  %v3735_v24 = vpop.f32.mrf.mxu1 }
 0x1b4   : > { %v1523_v41 = vadd.f32 %v1506_v6, %v1277_v23 }
 0x1b5   : > { %v2063_v23 = vpop.f32.mrf.mxu0 }
 0x1b7   : > { %v1128_v16 = vpop.f32.mrf.mxu3 }
 0x1b8   : > { %v1680_v34 = vpop.f32.mrf.mxu2  ;;  %v1144_v1 = vadd.f32 %v1128_v16, %v960_v0 }
 0x1b9   : > { %v1697_v5 = vadd.f32 %v1680_v34, %v1523_v41 }
 0x1ba   : > { %v3743_v32 = vpop.f32.mrf.mxu1  ;;  %v1278_v38 = vadd.f32 %v1262_v9, %v1144_v1 }
 0x1bf   : > { %v1131_v20 = vpop.f32.mrf.mxu3 }
 0x1c0   : > { %v1145_v35 = vadd.f32 %v1131_v20, %v963_v53  ;;  %v1682_v8 = vpop.f32.mrf.mxu2 }
 0x1c2   : > { %v1279_v25 = vadd.f32 %v1265_v12, %v1145_v35  ;;  %v2230_v30 = vpop.f32.mrf.mxu1 }
 0x1c4   : > { %v1525_v60 = vadd.f32 %v1511_v7, %v1279_v25 }
 0x1c7   : > { %v3739_v31 = vpop.f32.mrf.mxu3 }
 0x1ca   : > { %v2232_v43 = vpop.f32.mrf.mxu1 }
 0x1cf   : > { %v1136_v33 = vpop.f32.mrf.mxu3 }
 0x1d0   : > { %v1147_v13 = vadd.f32 %v1136_v33, %v968_v63  ;;  %v298_v63 = vld [vmem:[%s3219_s9] sm:$0xff]  }
 0x1d1   : > { %v2294_v49 = vunpack.c.l.bf16 %v298_v63  ;;  %v2295_v50 = vunpack.c.h.bf16 %v298_v63  ;;  %v970_v63 = vadd.f32 %v3737_v28, %v3727_v45 }
 0x1d2   : > { %v1281_v21 = vadd.f32 %v1270_v19, %v1147_v13  ;;  %v2235_v3 = vpop.f32.mrf.mxu1  ;;  %v1524_v19 = vadd.f32 %v3729_v11, %v1278_v38  ;;  %v1685_v13 = vpop.f32.mrf.mxu2  ;;  %v965_v11 = vadd.f32 %v3723_v55, %v3725_v56 }
 0x1d4   : > { %v1698_v33 = vadd.f32 %v1682_v8, %v1524_v19  ;;  %v1146_v59 = vadd.f32 %v3739_v31, %v965_v11 }
 0x1d7   : > { %v3745_v36 = vpop.f32.mrf.mxu3 }
 0x1d8   : > { %v1148_v8 = vadd.f32 %v3745_v36, %v970_v63 }
 0x1da   : > { %v2237_v20 = vpop.f32.mrf.mxu1 }
 0x1df   : > { %v1810_v51 = vpop.f32.mrf.mxu3 }
 0x1e0   : > { %v1830_v10 = vadd.f32 %v1810_v51, %v1695_v48 }
 0x1e2   : > { %v2076_v42 = vadd.f32 %v2056_v26, %v1830_v10  ;;  %v2240_v51 = vpop.f32.mrf.mxu1  ;;  %v1280_v10 = vadd.f32 %v3731_v62, %v1146_v59 }
 0x1e4   : > { %v2250_v53 = vadd.f32 %v2230_v30, %v2076_v42  ;;  %v1527_v30 = vadd.f32 %v3735_v24, %v1281_v21  ;;  %v1699_v24 = vadd.f32 %v1685_v13, %v1525_v60  ;;  %v2296_v21 = vunpack.c.l.bf16 %v300_v47 }
 0x1e6   : > { %v2262_v57 = vadd.f32 %v3752_v54, %v2250_v53  ;;  %v1687_v53 = vpop.f32.mrf.mxu2 }
 0x1e7   : > { %v1812_v29 = vpop.f32.mrf.mxu3 }
 0x1e8   : > { %v1831_v2 = vadd.f32 %v1812_v29, %v1696_v27  ;;  %v2278_v4 = vmul.f32 0.1, %v2262_v57  ;;  %vm2270_vm4 = vcmp.ge.f32.partialorder %v2262_v57, 0.0  ;;  %v1526_v29 = vadd.f32 %v3733_v15, %v1280_v10 }
 0x1ea   : > { %v2077_v58 = vadd.f32 %v2058_v17, %v1831_v2  ;;  %v2286_v7 = vsel %vm2270_vm4, %v2262_v57, %v2278_v4  ;;  %v2066_v17 = vpop.f32.mrf.mxu0  ;;  %v1700_v60 = vadd.f32 %v1687_v53, %v1526_v29  ;;  %v2242_v1 = vpop.f32.mrf.mxu1 }
 0x1eb   : > { %v2302_v35 = vadd.f32 %v2294_v49, %v2286_v7 }
 0x1ec   : > { %v2251_v6 = vadd.f32 %v2232_v43, %v2077_v58 }
 0x1ee   : > { %v2263_v40 = vadd.f32 %v3752_v54, %v2251_v6  ;;  %v1690_v15 = vpop.f32.mrf.mxu2 }
 0x1ef   : > { %v1815_v12 = vpop.f32.mrf.mxu3  ;;  %v1701_v7 = vadd.f32 %v1690_v15, %v1527_v30 }
 0x1f0   : > { %vm2271_vm5 = vcmp.ge.f32.partialorder %v2263_v40, 0.0  ;;  %v2279_v14 = vmul.f32 0.1, %v2263_v40  ;;  %v1832_v22 = vadd.f32 %v1815_v12, %v1697_v5 }
 0x1f2   : > { %v2287_v16 = vsel %vm2271_vm5, %v2263_v40, %v2279_v14  ;;  %v2078_v18 = vadd.f32 %v2061_v37, %v1832_v22  ;;  %v2068_v2 = vpop.f32.mrf.mxu0  ;;  %v302_v40 = vld [vmem:[%s3219_s9 + $0x10] sm:$0xff]  }
 0x1f3   : > { %v2303_v9 = vadd.f32 %v2295_v50, %v2287_v16  ;;  %v1282_v50 = vadd.f32 %v3741_v39, %v1148_v8  ;;  %v2298_v22 = vunpack.c.l.bf16 %v302_v40 }
 0x1f4   : > { %v2252_v25 = vadd.f32 %v2235_v3, %v2078_v18  ;;  %v2245_v18 = vpop.f32.mrf.mxu1 }
 0x1f5   : > { %v3037_v61 = vpack.c.bf16 %v2303_v9, %v2302_v35  ;;  %v1528_v35 = vadd.f32 %v3743_v32, %v1282_v50 }
 0x1f6   : > { %v2264_v41 = vadd.f32 %v3752_v54, %v2252_v25 }
 0x1f7   : > { %3038 = vst [vmem:[%s3767_s30] sm:$0xff] %v3037_v61   ;;  %v1817_v26 = vpop.f32.mrf.mxu3  ;;  %v1692_v61 = vpop.f32.mrf.mxu2 }
 0x1f8   : > { %v1833_v44 = vadd.f32 %v1817_v26, %v1698_v33  ;;  %v2280_v48 = vmul.f32 0.1, %v2264_v41  ;;  %vm2272_vm6 = vcmp.ge.f32.partialorder %v2264_v41, 0.0  ;;  %v1702_v13 = vadd.f32 %v1692_v61, %v1528_v35 }
 0x1fa   : > { %v2079_v46 = vadd.f32 %v2063_v23, %v1833_v44  ;;  %v2288_v56 = vsel %vm2272_vm6, %v2264_v41, %v2280_v48  ;;  %v2071_v14 = vpop.f32.mrf.mxu0  ;;  %v2299_v23 = vunpack.c.h.bf16 %v302_v40 }
 0x1fb   : > { %v2304_v0 = vadd.f32 %v2296_v21, %v2288_v56 }
 0x1fc   : > { %v2253_v43 = vadd.f32 %v2237_v20, %v2079_v46  ;;  %v2247_v59 = vpop.f32.mrf.mxu1  ;;  %v304_v46 = vld [vmem:[%s3219_s9 + $0x18] sm:$0xff]  }
 0x1fd   : > { %v2300_v48 = vunpack.c.l.bf16 %v304_v46 }
 0x1fe   : > { %v2265_v42 = vadd.f32 %v3752_v54, %v2253_v43  ;;  %v2301_v43 = vunpack.c.h.bf16 %v304_v46 }
 0x1ff   : > { %v1820_v55 = vpop.f32.mrf.mxu3 }
 0x200   : > { %vm2273_vm7 = vcmp.ge.f32.partialorder %v2265_v42, 0.0  ;;  %v2281_v34 = vmul.f32 0.1, %v2265_v42  ;;  %v1834_v31 = vadd.f32 %v1820_v55, %v1699_v24 }
 0x202   : > { %v2289_v27 = vsel %vm2273_vm7, %v2265_v42, %v2281_v34  ;;  %v2080_v37 = vadd.f32 %v2066_v17, %v1834_v31  ;;  %v2073_v41 = vpop.f32.mrf.mxu0 }
 0x203   : > { %v2305_v57 = vadd.f32 %v2297_v52, %v2289_v27 }
 0x204   : > { %v2254_v62 = vadd.f32 %v2240_v51, %v2080_v37 }
 0x205   : > { %v3042_v3 = vpack.c.bf16 %v2305_v57, %v2304_v0 }
 0x206   : > { %v2266_v4 = vadd.f32 %v3752_v54, %v2254_v62 }
 0x207   : > { %3054 = vst [vmem:[%s3767_s30 + $0x8] sm:$0xff] %v3042_v3   ;;  %v1822_v58 = vpop.f32.mrf.mxu3 }
 0x208   : > { %v1835_v6 = vadd.f32 %v1822_v58, %v1700_v60  ;;  %v2282_v5 = vmul.f32 0.1, %v2266_v4  ;;  %vm2274_vm8 = vcmp.ge.f32.partialorder %v2266_v4, 0.0 }
 0x20a   : > { %v2081_v38 = vadd.f32 %v2068_v2, %v1835_v6  ;;  %v2290_v28 = vsel %vm2274_vm8, %v2266_v4, %v2282_v5 }
 0x20b   : > { %v2306_v9 = vadd.f32 %v2298_v22, %v2290_v28 }
 0x20c   : > { %v2255_v49 = vadd.f32 %v2242_v1, %v2081_v38 }
 0x20e   : > { %v2267_v12 = vadd.f32 %v3752_v54, %v2255_v49 }
 0x20f   : > { %v1825_v45 = vpop.f32.mrf.mxu3 }
 0x210   : > { %vm2275_vm9 = vcmp.ge.f32.partialorder %v2267_v12, 0.0  ;;  %v2283_v16 = vmul.f32 0.1, %v2267_v12  ;;  %v1836_v36 = vadd.f32 %v1825_v45, %v1701_v7 }
 0x212   : > { %v2291_v19 = vsel %vm2275_vm9, %v2267_v12, %v2283_v16  ;;  %v2082_v20 = vadd.f32 %v2071_v14, %v1836_v36 }
 0x213   : > { %v2307_v39 = vadd.f32 %v2299_v23, %v2291_v19 }
 0x214   : > { %v2256_v25 = vadd.f32 %v2245_v18, %v2082_v20 }
 0x215   : > { %v3047_v33 = vpack.c.bf16 %v2307_v39, %v2306_v9 }
 0x216   : > { %v2268_v30 = vadd.f32 %v3752_v54, %v2256_v25 }
 0x217   : > { %3055 = vst [vmem:[%s3767_s30 + $0x10] sm:$0xff] %v3047_v33   ;;  %v1827_v26 = vpop.f32.mrf.mxu3 }
 0x218   : > { %v1837_v11 = vadd.f32 %v1827_v26, %v1702_v13  ;;  %v2284_v17 = vmul.f32 0.1, %v2268_v30  ;;  %vm2276_vm10 = vcmp.ge.f32.partialorder %v2268_v30, 0.0 }
 0x21a   : > { %v2083_v44 = vadd.f32 %v2073_v41, %v1837_v11  ;;  %v2292_v51 = vsel %vm2276_vm10, %v2268_v30, %v2284_v17 }
 0x21b   : > { %v2308_v24 = vadd.f32 %v2300_v48, %v2292_v51 }
 0x21c   : > { %v2257_v47 = vadd.f32 %v2247_v59, %v2083_v44 }
 0x21e   : > { %v2269_v32 = vadd.f32 %v3752_v54, %v2257_v47 }
 0x220   : > { %vm2277_vm11 = vcmp.ge.f32.partialorder %v2269_v32, 0.0  ;;  %v2285_v10 = vmul.f32 0.1, %v2269_v32 }
 0x222   : > { %v2293_v42 = vsel %vm2277_vm11, %v2269_v32, %v2285_v10 }
 0x223   : > { %v2309_v21 = vadd.f32 %v2301_v43, %v2293_v42 }
 0x225   : > { %v3052_v52 = vpack.c.bf16 %v2309_v21, %v2308_v24 }
 0x227   : > { %3056 = vst [vmem:[%s3767_s30 + $0x18] sm:$0xff] %v3052_v52  }
 0x228 PF: > { %p12_p9 = scmp.ge.s32.totalorder %s3172_s22, 4   ;;  %s3817_s18 = smov %s3118_s19 }
 0x229   : > { %s3818_s19 = smov %s3181_s25  ;;  %s3819_s20 = smov %s3172_s22 }
 0x22a   :  { %14 = sbr.rel (!%p12_p9) target bundleno = 2 (0x2), region = 126 }

</bundles_post_ra>
